<compile_context>
chip_gen: v7x
topology: tpu7x:2x2x1
jax: 0.10.0
libtpu: 0.0.40
codegen_flags: <defaults>
</compile_context>

<pallas_src>
import math
from functools import partial

import jax
import jax.numpy as jnp
from jax.experimental import pallas as pl
from jax.experimental.pallas import tpu as pltpu

# Hyper-parameters (PyTorch module defaults where applicable).
INPUT_SIZE = 8       # input_size
INPUT_LEN = 8        # input_len (sequence length)
HIDDEN = 128         # hidden_size (d_model)
NUM_HEADS = 8        # nhead
FFN = 2048           # nn.TransformerEncoderLayer default dim_feedforward
FF_CHUNK = 1024      # FFN hidden chunk per grid step (2 grid steps)
EPS = 1e-5           # LayerNorm eps (PyTorch default)


def _layernorm(x, gamma, beta):
    mu = jnp.mean(x, axis=-1, keepdims=True)
    var = jnp.mean(jnp.square(x - mu), axis=-1, keepdims=True)
    return (x - mu) * jax.lax.rsqrt(var + EPS) * gamma + beta


def transformer_kernel(num_heads, B, L,
                       x_ref, w_in_ref, b_in_ref,
                       w_qkv_ref, b_qkv_ref, w_out_ref, b_out_ref,
                       g1_ref, be1_ref,
                       w_ff1_ref, b_ff1_ref, w_ff2_ref, b_ff2_ref,
                       g2_ref, be2_ref,
                       g_fc_ref, be_fc_ref, w_fc_ref, b_fc_ref,
                       out_ref,
                       x1_ref, acc_ref):
    kc = pl.program_id(0)
    N, _ = x_ref.shape                     # N = B * L
    D = w_in_ref.shape[1]
    hd = D // num_heads
    scale = 1.0 / math.sqrt(hd)

    # ---- first grid step only: input proj + self-attention + norm1 --------
    @pl.when(kc == 0)
    def _():
        # nn.Linear(input_size, hidden) + ReLU  (batched over B*L rows)
        h = jnp.maximum(
            jnp.dot(x_ref[...], w_in_ref[...],
                    preferred_element_type=jnp.float32) + b_in_ref[...], 0.0)

        # QKV projection (bf16 weights, f32 accumulation)
        qkv = jnp.dot(h.astype(jnp.bfloat16), w_qkv_ref[...],
                      preferred_element_type=jnp.float32) + b_qkv_ref[...]
        q = (qkv[:, :D] * scale).reshape(B, L, D)
        k = qkv[:, D:2 * D].reshape(B, L, D)
        v = qkv[:, 2 * D:].reshape(B, L, D)

        w_out = w_out_ref[...]
        attn = jnp.zeros((N, D), jnp.float32)
        for hh in range(num_heads):        # static, small (H = 8)
            sl = slice(hh * hd, (hh + 1) * hd)
            s = jnp.einsum('bld,bmd->blm', q[:, :, sl], k[:, :, sl],
                           preferred_element_type=jnp.float32)
            s = s - jnp.max(s, axis=-1, keepdims=True)
            p = jnp.exp(s)
            p = p * pl.reciprocal(jnp.sum(p, axis=-1, keepdims=True),
                                  approx=True)
            ctx = jnp.einsum('blm,bmd->bld', p, v[:, :, sl],
                             preferred_element_type=jnp.float32)
            # accumulate out-projection per head -> no head concatenate
            attn = attn + jnp.dot(ctx.reshape(N, hd).astype(jnp.bfloat16),
                                  w_out[sl, :],
                                  preferred_element_type=jnp.float32)
        attn = attn + b_out_ref[...]

        # Post-norm encoder layer (PyTorch default norm_first=False).
        x1_ref[...] = _layernorm(h + attn, g1_ref[...], be1_ref[...])  # norm1
        acc_ref[...] = jnp.zeros_like(acc_ref)

    # ---- every grid step: one FFN hidden chunk (Linear -> ReLU -> Linear) -
    x1b = x1_ref[...].astype(jnp.bfloat16)
    ffc = jnp.maximum(
        jnp.dot(x1b, w_ff1_ref[...],
                preferred_element_type=jnp.float32) + b_ff1_ref[...], 0.0)
    acc_ref[...] += jnp.dot(ffc.astype(jnp.bfloat16), w_ff2_ref[...],
                            preferred_element_type=jnp.float32)

    # ---- last grid step: norm2 + fc head (Flatten -> LN -> Linear(., 2)) --
    @pl.when(kc == pl.num_programs(0) - 1)
    def _():
        ff = acc_ref[...] + b_ff2_ref[...]
        x2 = _layernorm(x1_ref[...] + ff, g2_ref[...], be2_ref[...])   # norm2
        flat = x2.reshape(B, L * D)                                    # Flatten
        fl = _layernorm(flat, g_fc_ref[...], be_fc_ref[...])
        # Dropout(p=0.5): identity at inference.
        logits = jax.lax.dot_general(                                  # fl @ w_fc.T
            fl, w_fc_ref[...],
            dimension_numbers=(((1,), (1,)), ((), ())),
            preferred_element_type=jnp.float32) + b_fc_ref[...]
        out_ref[...] = logits


PARAM_ORDER = ["w_in", "b_in", "w_qkv", "b_qkv", "w_out", "b_out",
               "g1", "be1", "w_ff1", "b_ff1", "w_ff2", "b_ff2",
               "g2", "be2", "g_fc", "be_fc", "w_fc", "b_fc"]

_BF16_WEIGHTS = ("w_qkv", "w_out", "w_ff1", "w_ff2")


def _full_spec(shape):
    zeros = (0,) * len(shape)
    return pl.BlockSpec(shape, lambda k, z=zeros: z)


@jax.jit
def transformer_forward(x, params):
    B, L, Din = x.shape
    D, FF = HIDDEN, FFN
    N = B * L
    x2d = x.reshape(N, Din)                       # fuse batch on the host side

    p = dict(params)
    for name in _BF16_WEIGHTS:                    # halve weight DMA; f32 accum
        p[name] = p[name].astype(jnp.bfloat16)
    args = (x2d,) + tuple(p[k] for k in PARAM_ORDER)

    n_chunks = FF // FF_CHUNK

    in_specs = [
        _full_spec((N, Din)),                                   # x
        _full_spec((Din, D)), _full_spec((1, D)),               # w_in, b_in
        _full_spec((D, 3 * D)), _full_spec((1, 3 * D)),         # w_qkv, b_qkv
        _full_spec((D, D)), _full_spec((1, D)),                 # w_out, b_out
        _full_spec((1, D)), _full_spec((1, D)),                 # g1, be1
        pl.BlockSpec((D, FF_CHUNK), lambda k: (0, k)),          # w_ff1 (chunked)
        pl.BlockSpec((1, FF_CHUNK), lambda k: (0, k)),          # b_ff1 (chunked)
        pl.BlockSpec((FF_CHUNK, D), lambda k: (k, 0)),          # w_ff2 (chunked)
        _full_spec((1, D)),                                     # b_ff2
        _full_spec((1, D)), _full_spec((1, D)),                 # g2, be2
        _full_spec((1, L * D)), _full_spec((1, L * D)),         # g_fc, be_fc
        _full_spec((2, L * D)),                                 # w_fc (lane-dense)
        _full_spec((1, 2)),                                     # b_fc
    ]

    return pl.pallas_call(
        partial(transformer_kernel, NUM_HEADS, B, L),
        out_shape=jax.ShapeDtypeStruct((B, 2), jnp.float32),
        grid_spec=pltpu.PrefetchScalarGridSpec(
            num_scalar_prefetch=0,
            grid=(n_chunks,),
            in_specs=in_specs,
            out_specs=pl.BlockSpec((B, 2), lambda k: (0, 0)),
            scratch_shapes=[pltpu.VMEM((N, D), jnp.float32),    # x1 (norm1 out)
                            pltpu.VMEM((N, D), jnp.float32)],   # ff2 accumulator
        ),
        compiler_params=pltpu.CompilerParams(
            dimension_semantics=("arbitrary",),
            vmem_limit_bytes=8 * 1024 * 1024),
    )(*args)


def init_params(key):
    ks = jax.random.split(key, 12)

    def w(k, shape, scale=0.05):
        return (scale * jax.random.normal(k, shape)).astype(jnp.float32)

    D, L, FF = HIDDEN, INPUT_LEN, FFN
    return dict(
        # input projection
        w_in=w(ks[0], (INPUT_SIZE, D)), b_in=w(ks[1], (1, D)),
        # self-attention in_proj / out_proj
        w_qkv=w(ks[2], (D, 3 * D)), b_qkv=w(ks[3], (1, 3 * D)),
        w_out=w(ks[4], (D, D)), b_out=w(ks[5], (1, D)),
        # encoder layernorms
        g1=jnp.ones((1, D), jnp.float32), be1=jnp.zeros((1, D), jnp.float32),
        # feed-forward
        w_ff1=w(ks[6], (D, FF)), b_ff1=w(ks[7], (1, FF)),
        w_ff2=w(ks[8], (FF, D)), b_ff2=w(ks[9], (1, D)),
        g2=jnp.ones((1, D), jnp.float32), be2=jnp.zeros((1, D), jnp.float32),
        # fc head (w_fc stored lane-dense as (out=2, in=L*D), PyTorch layout)
        g_fc=jnp.ones((1, L * D), jnp.float32),
        be_fc=jnp.zeros((1, L * D), jnp.float32),
        w_fc=w(ks[10], (2, L * D)), b_fc=w(ks[11], (1, 2)),
    )


if __name__ == "__main__":
    key = jax.random.PRNGKey(0)
    kx, kp = jax.random.split(key)
    x = jax.random.normal(kx, (2, INPUT_LEN, INPUT_SIZE), dtype=jnp.float32)
    params = init_params(kp)

    out = transformer_forward(x, params)
    jax.block_until_ready(out)
    assert out.shape == (2, 2) and out.dtype == jnp.float32
    assert bool(jnp.all(jnp.isfinite(out)))
    print("KERNEL_OK")
</pallas_src>

<mosaic_0001>
module attributes {stable_mosaic.version = 11 : i64} {
  func.func @transformer_kernel(%arg0: i32, %arg1: memref<16x8xf32, #tpu.memory_space<vmem>>, %arg2: memref<8x128xf32, #tpu.memory_space<vmem>>, %arg3: memref<1x128xf32, #tpu.memory_space<vmem>>, %arg4: memref<128x384xbf16, #tpu.memory_space<vmem>>, %arg5: memref<1x384xf32, #tpu.memory_space<vmem>>, %arg6: memref<128x128xbf16, #tpu.memory_space<vmem>>, %arg7: memref<1x128xf32, #tpu.memory_space<vmem>>, %arg8: memref<1x128xf32, #tpu.memory_space<vmem>>, %arg9: memref<1x128xf32, #tpu.memory_space<vmem>>, %arg10: memref<128x1024xbf16, #tpu.memory_space<vmem>>, %arg11: memref<1x1024xf32, #tpu.memory_space<vmem>>, %arg12: memref<1024x128xbf16, #tpu.memory_space<vmem>>, %arg13: memref<1x128xf32, #tpu.memory_space<vmem>>, %arg14: memref<1x128xf32, #tpu.memory_space<vmem>>, %arg15: memref<1x128xf32, #tpu.memory_space<vmem>>, %arg16: memref<1x1024xf32, #tpu.memory_space<vmem>>, %arg17: memref<1x1024xf32, #tpu.memory_space<vmem>>, %arg18: memref<2x1024xf32, #tpu.memory_space<vmem>>, %arg19: memref<1x2xf32, #tpu.memory_space<vmem>>, %arg20: memref<2x2xf32, #tpu.memory_space<vmem>>, %arg21: memref<16x128xf32, #tpu.memory_space<vmem>>, %arg22: memref<16x128xf32, #tpu.memory_space<vmem>>) attributes {dimension_semantics = [#tpu.dimension_semantics<arbitrary>], iteration_bounds = array<i64: 2>, scalar_prefetch = 0 : i64, scratch_operands = 2 : i64, tpu.core_type = #tpu.core_type<tc>, window_params = [{pipeline_mode = #tpu.pipeline_mode<synchronous>, transform_indices = @transform_0, window_bounds = array<i64: 16, 8>}, {pipeline_mode = #tpu.pipeline_mode<synchronous>, transform_indices = @transform_1, window_bounds = array<i64: 8, 128>}, {pipeline_mode = #tpu.pipeline_mode<synchronous>, transform_indices = @transform_2, window_bounds = array<i64: 1, 128>}, {pipeline_mode = #tpu.pipeline_mode<synchronous>, transform_indices = @transform_3, window_bounds = array<i64: 128, 384>}, {pipeline_mode = #tpu.pipeline_mode<synchronous>, transform_indices = @transform_4, window_bounds = array<i64: 1, 384>}, {pipeline_mode = #tpu.pipeline_mode<synchronous>, transform_indices = @transform_5, window_bounds = array<i64: 128, 128>}, {pipeline_mode = #tpu.pipeline_mode<synchronous>, transform_indices = @transform_6, window_bounds = array<i64: 1, 128>}, {pipeline_mode = #tpu.pipeline_mode<synchronous>, transform_indices = @transform_7, window_bounds = array<i64: 1, 128>}, {pipeline_mode = #tpu.pipeline_mode<synchronous>, transform_indices = @transform_8, window_bounds = array<i64: 1, 128>}, {transform_indices = @transform_9, window_bounds = array<i64: 128, 1024>}, {transform_indices = @transform_10, window_bounds = array<i64: 1, 1024>}, {transform_indices = @transform_11, window_bounds = array<i64: 1024, 128>}, {pipeline_mode = #tpu.pipeline_mode<synchronous>, transform_indices = @transform_12, window_bounds = array<i64: 1, 128>}, {pipeline_mode = #tpu.pipeline_mode<synchronous>, transform_indices = @transform_13, window_bounds = array<i64: 1, 128>}, {pipeline_mode = #tpu.pipeline_mode<synchronous>, transform_indices = @transform_14, window_bounds = array<i64: 1, 128>}, {pipeline_mode = #tpu.pipeline_mode<synchronous>, transform_indices = @transform_15, window_bounds = array<i64: 1, 1024>}, {pipeline_mode = #tpu.pipeline_mode<synchronous>, transform_indices = @transform_16, window_bounds = array<i64: 1, 1024>}, {pipeline_mode = #tpu.pipeline_mode<synchronous>, transform_indices = @transform_17, window_bounds = array<i64: 2, 1024>}, {pipeline_mode = #tpu.pipeline_mode<synchronous>, transform_indices = @transform_18, window_bounds = array<i64: 1, 2>}, {pipeline_mode = #tpu.pipeline_mode<synchronous>, transform_indices = @transform_19, window_bounds = array<i64: 2, 2>}]} {
    %c0_i32 = arith.constant 0 : i32
    %0 = arith.cmpi eq, %arg0, %c0_i32 : i32
    %1 = arith.extui %0 : i1 to i32
    %c0_i32_0 = arith.constant 0 : i32
    %2 = arith.cmpi ne, %1, %c0_i32_0 : i32
    scf.if %2 {
      %c0_15 = arith.constant 0 : index
      %c0_16 = arith.constant 0 : index
      %21 = vector.load %arg1[%c0_15, %c0_16] : memref<16x8xf32, #tpu.memory_space<vmem>>, vector<16x8xf32>
      %c0_17 = arith.constant 0 : index
      %c0_18 = arith.constant 0 : index
      %22 = vector.load %arg2[%c0_17, %c0_18] : memref<8x128xf32, #tpu.memory_space<vmem>>, vector<8x128xf32>
      %cst_19 = arith.constant dense<0.000000e+00> : vector<16x128xf32>
      %23 = tpu.matmul %21, %22, %cst_19 {dimension_numbers = #tpu.dot_dimension_numbers<[1], [0], [0], [1], [0, 0, 1, 1], [], []>} : vector<16x8xf32>, vector<8x128xf32>, vector<16x128xf32> -> vector<16x128xf32>
      %c0_20 = arith.constant 0 : index
      %c0_21 = arith.constant 0 : index
      %24 = vector.load %arg3[%c0_20, %c0_21] : memref<1x128xf32, #tpu.memory_space<vmem>>, vector<1x128xf32>
      %25 = vector.broadcast %24 : vector<1x128xf32> to vector<16x128xf32>
      %26 = arith.addf %23, %25 : vector<16x128xf32>
      %cst_22 = arith.constant 0.000000e+00 : f32
      %27 = vector.broadcast %cst_22 : f32 to vector<16x128xf32>
      %28 = arith.maximumf %26, %27 : vector<16x128xf32>
      %29 = arith.truncf %28 : vector<16x128xf32> to vector<16x128xbf16>
      %c0_23 = arith.constant 0 : index
      %c0_24 = arith.constant 0 : index
      %30 = vector.load %arg4[%c0_23, %c0_24] : memref<128x384xbf16, #tpu.memory_space<vmem>>, vector<128x384xbf16>
      %cst_25 = arith.constant dense<0.000000e+00> : vector<16x384xf32>
      %31 = tpu.matmul %29, %30, %cst_25 {dimension_numbers = #tpu.dot_dimension_numbers<[1], [0], [0], [1], [0, 0, 1, 1], [], []>} : vector<16x128xbf16>, vector<128x384xbf16>, vector<16x384xf32> -> vector<16x384xf32>
      %c0_26 = arith.constant 0 : index
      %c0_27 = arith.constant 0 : index
      %32 = vector.load %arg5[%c0_26, %c0_27] : memref<1x384xf32, #tpu.memory_space<vmem>>, vector<1x384xf32>
      %33 = vector.broadcast %32 : vector<1x384xf32> to vector<16x384xf32>
      %34 = arith.addf %31, %33 : vector<16x384xf32>
      %35 = vector.extract_strided_slice %34 {offsets = [0, 0], sizes = [16, 128], strides = [1, 1]} : vector<16x384xf32> to vector<16x128xf32>
      %cst_28 = arith.constant 2.500000e-01 : f32
      %36 = vector.broadcast %cst_28 : f32 to vector<16x128xf32>
      %37 = arith.mulf %35, %36 : vector<16x128xf32>
      %38 = vector.shape_cast %37 : vector<16x128xf32> to vector<2x8x128xf32>
      %39 = vector.extract_strided_slice %34 {offsets = [0, 128], sizes = [16, 128], strides = [1, 1]} : vector<16x384xf32> to vector<16x128xf32>
      %40 = vector.shape_cast %39 : vector<16x128xf32> to vector<2x8x128xf32>
      %41 = vector.extract_strided_slice %34 {offsets = [0, 256], sizes = [16, 128], strides = [1, 1]} : vector<16x384xf32> to vector<16x128xf32>
      %42 = vector.shape_cast %41 : vector<16x128xf32> to vector<2x8x128xf32>
      %c0_29 = arith.constant 0 : index
      %c0_30 = arith.constant 0 : index
      %43 = vector.load %arg6[%c0_29, %c0_30] : memref<128x128xbf16, #tpu.memory_space<vmem>>, vector<128x128xbf16>
      %cst_31 = arith.constant 0.000000e+00 : f32
      %44 = vector.broadcast %cst_31 : f32 to vector<16x128xf32>
      %45 = vector.extract_strided_slice %38 {offsets = [0, 0, 0], sizes = [2, 8, 16], strides = [1, 1, 1]} : vector<2x8x128xf32> to vector<2x8x16xf32>
      %46 = vector.extract_strided_slice %40 {offsets = [0, 0, 0], sizes = [2, 8, 16], strides = [1, 1, 1]} : vector<2x8x128xf32> to vector<2x8x16xf32>
      "tpu.trace_start"() <{level = 10 : i32, message = "bld,bmd->blm"}> : () -> ()
      %cst_32 = arith.constant dense<0.000000e+00> : vector<2x8x8xf32>
      %47 = tpu.matmul %45, %46, %cst_32 {dimension_numbers = #tpu.dot_dimension_numbers<[2], [2], [1], [1], [0, 0, 0, 1, 1, 1], [0], [0]>} : vector<2x8x16xf32>, vector<2x8x16xf32>, vector<2x8x8xf32> -> vector<2x8x8xf32>
      "tpu.trace_stop"() : () -> ()
      %cst_33 = arith.constant dense<0xFF800000> : vector<2x8xf32>
      %48 = vector.multi_reduction <maximumf>, %47, %cst_33 [2] : vector<2x8x8xf32> to vector<2x8xf32>
      %49 = vector.shape_cast %48 : vector<2x8xf32> to vector<2x8x1xf32>
      %50 = vector.broadcast %49 : vector<2x8x1xf32> to vector<2x8x8xf32>
      %51 = arith.subf %47, %50 : vector<2x8x8xf32>
      %52 = math.exp %51 : vector<2x8x8xf32>
      %cst_34 = arith.constant dense<0.000000e+00> : vector<2x8xf32>
      %53 = vector.multi_reduction <add>, %52, %cst_34 [2] : vector<2x8x8xf32> to vector<2x8xf32>
      %54 = vector.shape_cast %53 : vector<2x8xf32> to vector<2x8x1xf32>
      %55 = tpu.reciprocal %54 {approx = true} : vector<2x8x1xf32> -> vector<2x8x1xf32>
      %56 = vector.broadcast %55 : vector<2x8x1xf32> to vector<2x8x8xf32>
      %57 = arith.mulf %52, %56 : vector<2x8x8xf32>
      %58 = vector.extract_strided_slice %42 {offsets = [0, 0, 0], sizes = [2, 8, 16], strides = [1, 1, 1]} : vector<2x8x128xf32> to vector<2x8x16xf32>
      "tpu.trace_start"() <{level = 10 : i32, message = "blm,bmd->bld"}> : () -> ()
      %cst_35 = arith.constant dense<0.000000e+00> : vector<2x8x16xf32>
      %59 = tpu.matmul %57, %58, %cst_35 {dimension_numbers = #tpu.dot_dimension_numbers<[2], [1], [1], [2], [0, 0, 0, 1, 1, 2], [0], [0]>} : vector<2x8x8xf32>, vector<2x8x16xf32>, vector<2x8x16xf32> -> vector<2x8x16xf32>
      "tpu.trace_stop"() : () -> ()
      %60 = vector.shape_cast %59 : vector<2x8x16xf32> to vector<16x16xf32>
      %61 = arith.truncf %60 : vector<16x16xf32> to vector<16x16xbf16>
      %62 = vector.extract_strided_slice %43 {offsets = [0, 0], sizes = [16, 128], strides = [1, 1]} : vector<128x128xbf16> to vector<16x128xbf16>
      %cst_36 = arith.constant dense<0.000000e+00> : vector<16x128xf32>
      %63 = tpu.matmul %61, %62, %cst_36 {dimension_numbers = #tpu.dot_dimension_numbers<[1], [0], [0], [1], [0, 0, 1, 1], [], []>} : vector<16x16xbf16>, vector<16x128xbf16>, vector<16x128xf32> -> vector<16x128xf32>
      %64 = arith.addf %44, %63 : vector<16x128xf32>
      %65 = vector.extract_strided_slice %38 {offsets = [0, 0, 16], sizes = [2, 8, 16], strides = [1, 1, 1]} : vector<2x8x128xf32> to vector<2x8x16xf32>
      %66 = vector.extract_strided_slice %40 {offsets = [0, 0, 16], sizes = [2, 8, 16], strides = [1, 1, 1]} : vector<2x8x128xf32> to vector<2x8x16xf32>
      "tpu.trace_start"() <{level = 10 : i32, message = "bld,bmd->blm"}> : () -> ()
      %cst_37 = arith.constant dense<0.000000e+00> : vector<2x8x8xf32>
      %67 = tpu.matmul %65, %66, %cst_37 {dimension_numbers = #tpu.dot_dimension_numbers<[2], [2], [1], [1], [0, 0, 0, 1, 1, 1], [0], [0]>} : vector<2x8x16xf32>, vector<2x8x16xf32>, vector<2x8x8xf32> -> vector<2x8x8xf32>
      "tpu.trace_stop"() : () -> ()
      %cst_38 = arith.constant dense<0xFF800000> : vector<2x8xf32>
      %68 = vector.multi_reduction <maximumf>, %67, %cst_38 [2] : vector<2x8x8xf32> to vector<2x8xf32>
      %69 = vector.shape_cast %68 : vector<2x8xf32> to vector<2x8x1xf32>
      %70 = vector.broadcast %69 : vector<2x8x1xf32> to vector<2x8x8xf32>
      %71 = arith.subf %67, %70 : vector<2x8x8xf32>
      %72 = math.exp %71 : vector<2x8x8xf32>
      %cst_39 = arith.constant dense<0.000000e+00> : vector<2x8xf32>
      %73 = vector.multi_reduction <add>, %72, %cst_39 [2] : vector<2x8x8xf32> to vector<2x8xf32>
      %74 = vector.shape_cast %73 : vector<2x8xf32> to vector<2x8x1xf32>
      %75 = tpu.reciprocal %74 {approx = true} : vector<2x8x1xf32> -> vector<2x8x1xf32>
      %76 = vector.broadcast %75 : vector<2x8x1xf32> to vector<2x8x8xf32>
      %77 = arith.mulf %72, %76 : vector<2x8x8xf32>
      %78 = vector.extract_strided_slice %42 {offsets = [0, 0, 16], sizes = [2, 8, 16], strides = [1, 1, 1]} : vector<2x8x128xf32> to vector<2x8x16xf32>
      "tpu.trace_start"() <{level = 10 : i32, message = "blm,bmd->bld"}> : () -> ()
      %cst_40 = arith.constant dense<0.000000e+00> : vector<2x8x16xf32>
      %79 = tpu.matmul %77, %78, %cst_40 {dimension_numbers = #tpu.dot_dimension_numbers<[2], [1], [1], [2], [0, 0, 0, 1, 1, 2], [0], [0]>} : vector<2x8x8xf32>, vector<2x8x16xf32>, vector<2x8x16xf32> -> vector<2x8x16xf32>
      "tpu.trace_stop"() : () -> ()
      %80 = vector.shape_cast %79 : vector<2x8x16xf32> to vector<16x16xf32>
      %81 = arith.truncf %80 : vector<16x16xf32> to vector<16x16xbf16>
      %82 = vector.extract_strided_slice %43 {offsets = [16, 0], sizes = [16, 128], strides = [1, 1]} : vector<128x128xbf16> to vector<16x128xbf16>
      %cst_41 = arith.constant dense<0.000000e+00> : vector<16x128xf32>
      %83 = tpu.matmul %81, %82, %cst_41 {dimension_numbers = #tpu.dot_dimension_numbers<[1], [0], [0], [1], [0, 0, 1, 1], [], []>} : vector<16x16xbf16>, vector<16x128xbf16>, vector<16x128xf32> -> vector<16x128xf32>
      %84 = arith.addf %64, %83 : vector<16x128xf32>
      %85 = vector.extract_strided_slice %38 {offsets = [0, 0, 32], sizes = [2, 8, 16], strides = [1, 1, 1]} : vector<2x8x128xf32> to vector<2x8x16xf32>
      %86 = vector.extract_strided_slice %40 {offsets = [0, 0, 32], sizes = [2, 8, 16], strides = [1, 1, 1]} : vector<2x8x128xf32> to vector<2x8x16xf32>
      "tpu.trace_start"() <{level = 10 : i32, message = "bld,bmd->blm"}> : () -> ()
      %cst_42 = arith.constant dense<0.000000e+00> : vector<2x8x8xf32>
      %87 = tpu.matmul %85, %86, %cst_42 {dimension_numbers = #tpu.dot_dimension_numbers<[2], [2], [1], [1], [0, 0, 0, 1, 1, 1], [0], [0]>} : vector<2x8x16xf32>, vector<2x8x16xf32>, vector<2x8x8xf32> -> vector<2x8x8xf32>
      "tpu.trace_stop"() : () -> ()
      %cst_43 = arith.constant dense<0xFF800000> : vector<2x8xf32>
      %88 = vector.multi_reduction <maximumf>, %87, %cst_43 [2] : vector<2x8x8xf32> to vector<2x8xf32>
      %89 = vector.shape_cast %88 : vector<2x8xf32> to vector<2x8x1xf32>
      %90 = vector.broadcast %89 : vector<2x8x1xf32> to vector<2x8x8xf32>
      %91 = arith.subf %87, %90 : vector<2x8x8xf32>
      %92 = math.exp %91 : vector<2x8x8xf32>
      %cst_44 = arith.constant dense<0.000000e+00> : vector<2x8xf32>
      %93 = vector.multi_reduction <add>, %92, %cst_44 [2] : vector<2x8x8xf32> to vector<2x8xf32>
      %94 = vector.shape_cast %93 : vector<2x8xf32> to vector<2x8x1xf32>
      %95 = tpu.reciprocal %94 {approx = true} : vector<2x8x1xf32> -> vector<2x8x1xf32>
      %96 = vector.broadcast %95 : vector<2x8x1xf32> to vector<2x8x8xf32>
      %97 = arith.mulf %92, %96 : vector<2x8x8xf32>
      %98 = vector.extract_strided_slice %42 {offsets = [0, 0, 32], sizes = [2, 8, 16], strides = [1, 1, 1]} : vector<2x8x128xf32> to vector<2x8x16xf32>
      "tpu.trace_start"() <{level = 10 : i32, message = "blm,bmd->bld"}> : () -> ()
      %cst_45 = arith.constant dense<0.000000e+00> : vector<2x8x16xf32>
      %99 = tpu.matmul %97, %98, %cst_45 {dimension_numbers = #tpu.dot_dimension_numbers<[2], [1], [1], [2], [0, 0, 0, 1, 1, 2], [0], [0]>} : vector<2x8x8xf32>, vector<2x8x16xf32>, vector<2x8x16xf32> -> vector<2x8x16xf32>
      "tpu.trace_stop"() : () -> ()
      %100 = vector.shape_cast %99 : vector<2x8x16xf32> to vector<16x16xf32>
      %101 = arith.truncf %100 : vector<16x16xf32> to vector<16x16xbf16>
      %102 = vector.extract_strided_slice %43 {offsets = [32, 0], sizes = [16, 128], strides = [1, 1]} : vector<128x128xbf16> to vector<16x128xbf16>
      %cst_46 = arith.constant dense<0.000000e+00> : vector<16x128xf32>
      %103 = tpu.matmul %101, %102, %cst_46 {dimension_numbers = #tpu.dot_dimension_numbers<[1], [0], [0], [1], [0, 0, 1, 1], [], []>} : vector<16x16xbf16>, vector<16x128xbf16>, vector<16x128xf32> -> vector<16x128xf32>
      %104 = arith.addf %84, %103 : vector<16x128xf32>
      %105 = vector.extract_strided_slice %38 {offsets = [0, 0, 48], sizes = [2, 8, 16], strides = [1, 1, 1]} : vector<2x8x128xf32> to vector<2x8x16xf32>
      %106 = vector.extract_strided_slice %40 {offsets = [0, 0, 48], sizes = [2, 8, 16], strides = [1, 1, 1]} : vector<2x8x128xf32> to vector<2x8x16xf32>
      "tpu.trace_start"() <{level = 10 : i32, message = "bld,bmd->blm"}> : () -> ()
      %cst_47 = arith.constant dense<0.000000e+00> : vector<2x8x8xf32>
      %107 = tpu.matmul %105, %106, %cst_47 {dimension_numbers = #tpu.dot_dimension_numbers<[2], [2], [1], [1], [0, 0, 0, 1, 1, 1], [0], [0]>} : vector<2x8x16xf32>, vector<2x8x16xf32>, vector<2x8x8xf32> -> vector<2x8x8xf32>
      "tpu.trace_stop"() : () -> ()
      %cst_48 = arith.constant dense<0xFF800000> : vector<2x8xf32>
      %108 = vector.multi_reduction <maximumf>, %107, %cst_48 [2] : vector<2x8x8xf32> to vector<2x8xf32>
      %109 = vector.shape_cast %108 : vector<2x8xf32> to vector<2x8x1xf32>
      %110 = vector.broadcast %109 : vector<2x8x1xf32> to vector<2x8x8xf32>
      %111 = arith.subf %107, %110 : vector<2x8x8xf32>
      %112 = math.exp %111 : vector<2x8x8xf32>
      %cst_49 = arith.constant dense<0.000000e+00> : vector<2x8xf32>
      %113 = vector.multi_reduction <add>, %112, %cst_49 [2] : vector<2x8x8xf32> to vector<2x8xf32>
      %114 = vector.shape_cast %113 : vector<2x8xf32> to vector<2x8x1xf32>
      %115 = tpu.reciprocal %114 {approx = true} : vector<2x8x1xf32> -> vector<2x8x1xf32>
      %116 = vector.broadcast %115 : vector<2x8x1xf32> to vector<2x8x8xf32>
      %117 = arith.mulf %112, %116 : vector<2x8x8xf32>
      %118 = vector.extract_strided_slice %42 {offsets = [0, 0, 48], sizes = [2, 8, 16], strides = [1, 1, 1]} : vector<2x8x128xf32> to vector<2x8x16xf32>
      "tpu.trace_start"() <{level = 10 : i32, message = "blm,bmd->bld"}> : () -> ()
      %cst_50 = arith.constant dense<0.000000e+00> : vector<2x8x16xf32>
      %119 = tpu.matmul %117, %118, %cst_50 {dimension_numbers = #tpu.dot_dimension_numbers<[2], [1], [1], [2], [0, 0, 0, 1, 1, 2], [0], [0]>} : vector<2x8x8xf32>, vector<2x8x16xf32>, vector<2x8x16xf32> -> vector<2x8x16xf32>
      "tpu.trace_stop"() : () -> ()
      %120 = vector.shape_cast %119 : vector<2x8x16xf32> to vector<16x16xf32>
      %121 = arith.truncf %120 : vector<16x16xf32> to vector<16x16xbf16>
      %122 = vector.extract_strided_slice %43 {offsets = [48, 0], sizes = [16, 128], strides = [1, 1]} : vector<128x128xbf16> to vector<16x128xbf16>
      %cst_51 = arith.constant dense<0.000000e+00> : vector<16x128xf32>
      %123 = tpu.matmul %121, %122, %cst_51 {dimension_numbers = #tpu.dot_dimension_numbers<[1], [0], [0], [1], [0, 0, 1, 1], [], []>} : vector<16x16xbf16>, vector<16x128xbf16>, vector<16x128xf32> -> vector<16x128xf32>
      %124 = arith.addf %104, %123 : vector<16x128xf32>
      %125 = vector.extract_strided_slice %38 {offsets = [0, 0, 64], sizes = [2, 8, 16], strides = [1, 1, 1]} : vector<2x8x128xf32> to vector<2x8x16xf32>
      %126 = vector.extract_strided_slice %40 {offsets = [0, 0, 64], sizes = [2, 8, 16], strides = [1, 1, 1]} : vector<2x8x128xf32> to vector<2x8x16xf32>
      "tpu.trace_start"() <{level = 10 : i32, message = "bld,bmd->blm"}> : () -> ()
      %cst_52 = arith.constant dense<0.000000e+00> : vector<2x8x8xf32>
      %127 = tpu.matmul %125, %126, %cst_52 {dimension_numbers = #tpu.dot_dimension_numbers<[2], [2], [1], [1], [0, 0, 0, 1, 1, 1], [0], [0]>} : vector<2x8x16xf32>, vector<2x8x16xf32>, vector<2x8x8xf32> -> vector<2x8x8xf32>
      "tpu.trace_stop"() : () -> ()
      %cst_53 = arith.constant dense<0xFF800000> : vector<2x8xf32>
      %128 = vector.multi_reduction <maximumf>, %127, %cst_53 [2] : vector<2x8x8xf32> to vector<2x8xf32>
      %129 = vector.shape_cast %128 : vector<2x8xf32> to vector<2x8x1xf32>
      %130 = vector.broadcast %129 : vector<2x8x1xf32> to vector<2x8x8xf32>
      %131 = arith.subf %127, %130 : vector<2x8x8xf32>
      %132 = math.exp %131 : vector<2x8x8xf32>
      %cst_54 = arith.constant dense<0.000000e+00> : vector<2x8xf32>
      %133 = vector.multi_reduction <add>, %132, %cst_54 [2] : vector<2x8x8xf32> to vector<2x8xf32>
      %134 = vector.shape_cast %133 : vector<2x8xf32> to vector<2x8x1xf32>
      %135 = tpu.reciprocal %134 {approx = true} : vector<2x8x1xf32> -> vector<2x8x1xf32>
      %136 = vector.broadcast %135 : vector<2x8x1xf32> to vector<2x8x8xf32>
      %137 = arith.mulf %132, %136 : vector<2x8x8xf32>
      %138 = vector.extract_strided_slice %42 {offsets = [0, 0, 64], sizes = [2, 8, 16], strides = [1, 1, 1]} : vector<2x8x128xf32> to vector<2x8x16xf32>
      "tpu.trace_start"() <{level = 10 : i32, message = "blm,bmd->bld"}> : () -> ()
      %cst_55 = arith.constant dense<0.000000e+00> : vector<2x8x16xf32>
      %139 = tpu.matmul %137, %138, %cst_55 {dimension_numbers = #tpu.dot_dimension_numbers<[2], [1], [1], [2], [0, 0, 0, 1, 1, 2], [0], [0]>} : vector<2x8x8xf32>, vector<2x8x16xf32>, vector<2x8x16xf32> -> vector<2x8x16xf32>
      "tpu.trace_stop"() : () -> ()
      %140 = vector.shape_cast %139 : vector<2x8x16xf32> to vector<16x16xf32>
      %141 = arith.truncf %140 : vector<16x16xf32> to vector<16x16xbf16>
      %142 = vector.extract_strided_slice %43 {offsets = [64, 0], sizes = [16, 128], strides = [1, 1]} : vector<128x128xbf16> to vector<16x128xbf16>
      %cst_56 = arith.constant dense<0.000000e+00> : vector<16x128xf32>
      %143 = tpu.matmul %141, %142, %cst_56 {dimension_numbers = #tpu.dot_dimension_numbers<[1], [0], [0], [1], [0, 0, 1, 1], [], []>} : vector<16x16xbf16>, vector<16x128xbf16>, vector<16x128xf32> -> vector<16x128xf32>
      %144 = arith.addf %124, %143 : vector<16x128xf32>
      %145 = vector.extract_strided_slice %38 {offsets = [0, 0, 80], sizes = [2, 8, 16], strides = [1, 1, 1]} : vector<2x8x128xf32> to vector<2x8x16xf32>
      %146 = vector.extract_strided_slice %40 {offsets = [0, 0, 80], sizes = [2, 8, 16], strides = [1, 1, 1]} : vector<2x8x128xf32> to vector<2x8x16xf32>
      "tpu.trace_start"() <{level = 10 : i32, message = "bld,bmd->blm"}> : () -> ()
      %cst_57 = arith.constant dense<0.000000e+00> : vector<2x8x8xf32>
      %147 = tpu.matmul %145, %146, %cst_57 {dimension_numbers = #tpu.dot_dimension_numbers<[2], [2], [1], [1], [0, 0, 0, 1, 1, 1], [0], [0]>} : vector<2x8x16xf32>, vector<2x8x16xf32>, vector<2x8x8xf32> -> vector<2x8x8xf32>
      "tpu.trace_stop"() : () -> ()
      %cst_58 = arith.constant dense<0xFF800000> : vector<2x8xf32>
      %148 = vector.multi_reduction <maximumf>, %147, %cst_58 [2] : vector<2x8x8xf32> to vector<2x8xf32>
      %149 = vector.shape_cast %148 : vector<2x8xf32> to vector<2x8x1xf32>
      %150 = vector.broadcast %149 : vector<2x8x1xf32> to vector<2x8x8xf32>
      %151 = arith.subf %147, %150 : vector<2x8x8xf32>
      %152 = math.exp %151 : vector<2x8x8xf32>
      %cst_59 = arith.constant dense<0.000000e+00> : vector<2x8xf32>
      %153 = vector.multi_reduction <add>, %152, %cst_59 [2] : vector<2x8x8xf32> to vector<2x8xf32>
      %154 = vector.shape_cast %153 : vector<2x8xf32> to vector<2x8x1xf32>
      %155 = tpu.reciprocal %154 {approx = true} : vector<2x8x1xf32> -> vector<2x8x1xf32>
      %156 = vector.broadcast %155 : vector<2x8x1xf32> to vector<2x8x8xf32>
      %157 = arith.mulf %152, %156 : vector<2x8x8xf32>
      %158 = vector.extract_strided_slice %42 {offsets = [0, 0, 80], sizes = [2, 8, 16], strides = [1, 1, 1]} : vector<2x8x128xf32> to vector<2x8x16xf32>
      "tpu.trace_start"() <{level = 10 : i32, message = "blm,bmd->bld"}> : () -> ()
      %cst_60 = arith.constant dense<0.000000e+00> : vector<2x8x16xf32>
      %159 = tpu.matmul %157, %158, %cst_60 {dimension_numbers = #tpu.dot_dimension_numbers<[2], [1], [1], [2], [0, 0, 0, 1, 1, 2], [0], [0]>} : vector<2x8x8xf32>, vector<2x8x16xf32>, vector<2x8x16xf32> -> vector<2x8x16xf32>
      "tpu.trace_stop"() : () -> ()
      %160 = vector.shape_cast %159 : vector<2x8x16xf32> to vector<16x16xf32>
      %161 = arith.truncf %160 : vector<16x16xf32> to vector<16x16xbf16>
      %162 = vector.extract_strided_slice %43 {offsets = [80, 0], sizes = [16, 128], strides = [1, 1]} : vector<128x128xbf16> to vector<16x128xbf16>
      %cst_61 = arith.constant dense<0.000000e+00> : vector<16x128xf32>
      %163 = tpu.matmul %161, %162, %cst_61 {dimension_numbers = #tpu.dot_dimension_numbers<[1], [0], [0], [1], [0, 0, 1, 1], [], []>} : vector<16x16xbf16>, vector<16x128xbf16>, vector<16x128xf32> -> vector<16x128xf32>
      %164 = arith.addf %144, %163 : vector<16x128xf32>
      %165 = vector.extract_strided_slice %38 {offsets = [0, 0, 96], sizes = [2, 8, 16], strides = [1, 1, 1]} : vector<2x8x128xf32> to vector<2x8x16xf32>
      %166 = vector.extract_strided_slice %40 {offsets = [0, 0, 96], sizes = [2, 8, 16], strides = [1, 1, 1]} : vector<2x8x128xf32> to vector<2x8x16xf32>
      "tpu.trace_start"() <{level = 10 : i32, message = "bld,bmd->blm"}> : () -> ()
      %cst_62 = arith.constant dense<0.000000e+00> : vector<2x8x8xf32>
      %167 = tpu.matmul %165, %166, %cst_62 {dimension_numbers = #tpu.dot_dimension_numbers<[2], [2], [1], [1], [0, 0, 0, 1, 1, 1], [0], [0]>} : vector<2x8x16xf32>, vector<2x8x16xf32>, vector<2x8x8xf32> -> vector<2x8x8xf32>
      "tpu.trace_stop"() : () -> ()
      %cst_63 = arith.constant dense<0xFF800000> : vector<2x8xf32>
      %168 = vector.multi_reduction <maximumf>, %167, %cst_63 [2] : vector<2x8x8xf32> to vector<2x8xf32>
      %169 = vector.shape_cast %168 : vector<2x8xf32> to vector<2x8x1xf32>
      %170 = vector.broadcast %169 : vector<2x8x1xf32> to vector<2x8x8xf32>
      %171 = arith.subf %167, %170 : vector<2x8x8xf32>
      %172 = math.exp %171 : vector<2x8x8xf32>
      %cst_64 = arith.constant dense<0.000000e+00> : vector<2x8xf32>
      %173 = vector.multi_reduction <add>, %172, %cst_64 [2] : vector<2x8x8xf32> to vector<2x8xf32>
      %174 = vector.shape_cast %173 : vector<2x8xf32> to vector<2x8x1xf32>
      %175 = tpu.reciprocal %174 {approx = true} : vector<2x8x1xf32> -> vector<2x8x1xf32>
      %176 = vector.broadcast %175 : vector<2x8x1xf32> to vector<2x8x8xf32>
      %177 = arith.mulf %172, %176 : vector<2x8x8xf32>
      %178 = vector.extract_strided_slice %42 {offsets = [0, 0, 96], sizes = [2, 8, 16], strides = [1, 1, 1]} : vector<2x8x128xf32> to vector<2x8x16xf32>
      "tpu.trace_start"() <{level = 10 : i32, message = "blm,bmd->bld"}> : () -> ()
      %cst_65 = arith.constant dense<0.000000e+00> : vector<2x8x16xf32>
      %179 = tpu.matmul %177, %178, %cst_65 {dimension_numbers = #tpu.dot_dimension_numbers<[2], [1], [1], [2], [0, 0, 0, 1, 1, 2], [0], [0]>} : vector<2x8x8xf32>, vector<2x8x16xf32>, vector<2x8x16xf32> -> vector<2x8x16xf32>
      "tpu.trace_stop"() : () -> ()
      %180 = vector.shape_cast %179 : vector<2x8x16xf32> to vector<16x16xf32>
      %181 = arith.truncf %180 : vector<16x16xf32> to vector<16x16xbf16>
      %182 = vector.extract_strided_slice %43 {offsets = [96, 0], sizes = [16, 128], strides = [1, 1]} : vector<128x128xbf16> to vector<16x128xbf16>
      %cst_66 = arith.constant dense<0.000000e+00> : vector<16x128xf32>
      %183 = tpu.matmul %181, %182, %cst_66 {dimension_numbers = #tpu.dot_dimension_numbers<[1], [0], [0], [1], [0, 0, 1, 1], [], []>} : vector<16x16xbf16>, vector<16x128xbf16>, vector<16x128xf32> -> vector<16x128xf32>
      %184 = arith.addf %164, %183 : vector<16x128xf32>
      %185 = vector.extract_strided_slice %38 {offsets = [0, 0, 112], sizes = [2, 8, 16], strides = [1, 1, 1]} : vector<2x8x128xf32> to vector<2x8x16xf32>
      %186 = vector.extract_strided_slice %40 {offsets = [0, 0, 112], sizes = [2, 8, 16], strides = [1, 1, 1]} : vector<2x8x128xf32> to vector<2x8x16xf32>
      "tpu.trace_start"() <{level = 10 : i32, message = "bld,bmd->blm"}> : () -> ()
      %cst_67 = arith.constant dense<0.000000e+00> : vector<2x8x8xf32>
      %187 = tpu.matmul %185, %186, %cst_67 {dimension_numbers = #tpu.dot_dimension_numbers<[2], [2], [1], [1], [0, 0, 0, 1, 1, 1], [0], [0]>} : vector<2x8x16xf32>, vector<2x8x16xf32>, vector<2x8x8xf32> -> vector<2x8x8xf32>
      "tpu.trace_stop"() : () -> ()
      %cst_68 = arith.constant dense<0xFF800000> : vector<2x8xf32>
      %188 = vector.multi_reduction <maximumf>, %187, %cst_68 [2] : vector<2x8x8xf32> to vector<2x8xf32>
      %189 = vector.shape_cast %188 : vector<2x8xf32> to vector<2x8x1xf32>
      %190 = vector.broadcast %189 : vector<2x8x1xf32> to vector<2x8x8xf32>
      %191 = arith.subf %187, %190 : vector<2x8x8xf32>
      %192 = math.exp %191 : vector<2x8x8xf32>
      %cst_69 = arith.constant dense<0.000000e+00> : vector<2x8xf32>
      %193 = vector.multi_reduction <add>, %192, %cst_69 [2] : vector<2x8x8xf32> to vector<2x8xf32>
      %194 = vector.shape_cast %193 : vector<2x8xf32> to vector<2x8x1xf32>
      %195 = tpu.reciprocal %194 {approx = true} : vector<2x8x1xf32> -> vector<2x8x1xf32>
      %196 = vector.broadcast %195 : vector<2x8x1xf32> to vector<2x8x8xf32>
      %197 = arith.mulf %192, %196 : vector<2x8x8xf32>
      %198 = vector.extract_strided_slice %42 {offsets = [0, 0, 112], sizes = [2, 8, 16], strides = [1, 1, 1]} : vector<2x8x128xf32> to vector<2x8x16xf32>
      "tpu.trace_start"() <{level = 10 : i32, message = "blm,bmd->bld"}> : () -> ()
      %cst_70 = arith.constant dense<0.000000e+00> : vector<2x8x16xf32>
      %199 = tpu.matmul %197, %198, %cst_70 {dimension_numbers = #tpu.dot_dimension_numbers<[2], [1], [1], [2], [0, 0, 0, 1, 1, 2], [0], [0]>} : vector<2x8x8xf32>, vector<2x8x16xf32>, vector<2x8x16xf32> -> vector<2x8x16xf32>
      "tpu.trace_stop"() : () -> ()
      %200 = vector.shape_cast %199 : vector<2x8x16xf32> to vector<16x16xf32>
      %201 = arith.truncf %200 : vector<16x16xf32> to vector<16x16xbf16>
      %202 = vector.extract_strided_slice %43 {offsets = [112, 0], sizes = [16, 128], strides = [1, 1]} : vector<128x128xbf16> to vector<16x128xbf16>
      %cst_71 = arith.constant dense<0.000000e+00> : vector<16x128xf32>
      %203 = tpu.matmul %201, %202, %cst_71 {dimension_numbers = #tpu.dot_dimension_numbers<[1], [0], [0], [1], [0, 0, 1, 1], [], []>} : vector<16x16xbf16>, vector<16x128xbf16>, vector<16x128xf32> -> vector<16x128xf32>
      %204 = arith.addf %184, %203 : vector<16x128xf32>
      %c0_72 = arith.constant 0 : index
      %c0_73 = arith.constant 0 : index
      %205 = vector.load %arg7[%c0_72, %c0_73] : memref<1x128xf32, #tpu.memory_space<vmem>>, vector<1x128xf32>
      %206 = vector.broadcast %205 : vector<1x128xf32> to vector<16x128xf32>
      %207 = arith.addf %204, %206 : vector<16x128xf32>
      %208 = arith.addf %28, %207 : vector<16x128xf32>
      %c0_74 = arith.constant 0 : index
      %c0_75 = arith.constant 0 : index
      %209 = vector.load %arg8[%c0_74, %c0_75] : memref<1x128xf32, #tpu.memory_space<vmem>>, vector<1x128xf32>
      %c0_76 = arith.constant 0 : index
      %c0_77 = arith.constant 0 : index
      %210 = vector.load %arg9[%c0_76, %c0_77] : memref<1x128xf32, #tpu.memory_space<vmem>>, vector<1x128xf32>
      %cst_78 = arith.constant dense<0.000000e+00> : vector<16xf32>
      %211 = vector.multi_reduction <add>, %208, %cst_78 [1] : vector<16x128xf32> to vector<16xf32>
      %212 = vector.shape_cast %211 : vector<16xf32> to vector<16x1xf32>
      %cst_79 = arith.constant 1.280000e+02 : f32
      %213 = vector.broadcast %cst_79 : f32 to vector<16x1xf32>
      %214 = arith.divf %212, %213 : vector<16x1xf32>
      %215 = vector.broadcast %214 : vector<16x1xf32> to vector<16x128xf32>
      %216 = arith.subf %208, %215 : vector<16x128xf32>
      %217 = arith.mulf %216, %216 : vector<16x128xf32>
      %cst_80 = arith.constant dense<0.000000e+00> : vector<16xf32>
      %218 = vector.multi_reduction <add>, %217, %cst_80 [1] : vector<16x128xf32> to vector<16xf32>
      %219 = vector.shape_cast %218 : vector<16xf32> to vector<16x1xf32>
      %cst_81 = arith.constant 1.280000e+02 : f32
      %220 = vector.broadcast %cst_81 : f32 to vector<16x1xf32>
      %221 = arith.divf %219, %220 : vector<16x1xf32>
      %222 = vector.broadcast %214 : vector<16x1xf32> to vector<16x128xf32>
      %223 = arith.subf %208, %222 : vector<16x128xf32>
      %cst_82 = arith.constant 9.99999974E-6 : f32
      %224 = vector.broadcast %cst_82 : f32 to vector<16x1xf32>
      %225 = arith.addf %221, %224 : vector<16x1xf32>
      %226 = math.rsqrt %225 : vector<16x1xf32>
      %227 = vector.broadcast %226 : vector<16x1xf32> to vector<16x128xf32>
      %228 = arith.mulf %223, %227 : vector<16x128xf32>
      %229 = vector.broadcast %209 : vector<1x128xf32> to vector<16x128xf32>
      %230 = arith.mulf %228, %229 : vector<16x128xf32>
      %231 = vector.broadcast %210 : vector<1x128xf32> to vector<16x128xf32>
      %232 = arith.addf %230, %231 : vector<16x128xf32>
      %c0_83 = arith.constant 0 : index
      %c0_84 = arith.constant 0 : index
      %233 = vector.load %arg21[%c0_83, %c0_84] : memref<16x128xf32, #tpu.memory_space<vmem>>, vector<16x128xf32>
      tpu.vector_store %arg21[%c0_83, %c0_84], %232 {strides = array<i32>} : memref<16x128xf32, #tpu.memory_space<vmem>>, vector<16x128xf32>,
      %cst_85 = arith.constant 0.000000e+00 : f32
      %234 = vector.broadcast %cst_85 : f32 to vector<16x128xf32>
      %c0_86 = arith.constant 0 : index
      %c0_87 = arith.constant 0 : index
      %235 = vector.load %arg22[%c0_86, %c0_87] : memref<16x128xf32, #tpu.memory_space<vmem>>, vector<16x128xf32>
      tpu.vector_store %arg22[%c0_86, %c0_87], %234 {strides = array<i32>} : memref<16x128xf32, #tpu.memory_space<vmem>>, vector<16x128xf32>,
    } else {
    }
    %c0 = arith.constant 0 : index
    %c0_1 = arith.constant 0 : index
    %3 = vector.load %arg21[%c0, %c0_1] : memref<16x128xf32, #tpu.memory_space<vmem>>, vector<16x128xf32>
    %4 = arith.truncf %3 : vector<16x128xf32> to vector<16x128xbf16>
    %c0_2 = arith.constant 0 : index
    %c0_3 = arith.constant 0 : index
    %5 = vector.load %arg10[%c0_2, %c0_3] : memref<128x1024xbf16, #tpu.memory_space<vmem>>, vector<128x1024xbf16>
    %cst = arith.constant dense<0.000000e+00> : vector<16x1024xf32>
    %6 = tpu.matmul %4, %5, %cst {dimension_numbers = #tpu.dot_dimension_numbers<[1], [0], [0], [1], [0, 0, 1, 1], [], []>} : vector<16x128xbf16>, vector<128x1024xbf16>, vector<16x1024xf32> -> vector<16x1024xf32>
    %c0_4 = arith.constant 0 : index
    %c0_5 = arith.constant 0 : index
    %7 = vector.load %arg11[%c0_4, %c0_5] : memref<1x1024xf32, #tpu.memory_space<vmem>>, vector<1x1024xf32>
    %8 = vector.broadcast %7 : vector<1x1024xf32> to vector<16x1024xf32>
    %9 = arith.addf %6, %8 : vector<16x1024xf32>
    %cst_6 = arith.constant 0.000000e+00 : f32
    %10 = vector.broadcast %cst_6 : f32 to vector<16x1024xf32>
    %11 = arith.maximumf %9, %10 : vector<16x1024xf32>
    %c0_7 = arith.constant 0 : index
    %c0_8 = arith.constant 0 : index
    %12 = vector.load %arg22[%c0_7, %c0_8] : memref<16x128xf32, #tpu.memory_space<vmem>>, vector<16x128xf32>
    %13 = arith.truncf %11 : vector<16x1024xf32> to vector<16x1024xbf16>
    %c0_9 = arith.constant 0 : index
    %c0_10 = arith.constant 0 : index
    %14 = vector.load %arg12[%c0_9, %c0_10] : memref<1024x128xbf16, #tpu.memory_space<vmem>>, vector<1024x128xbf16>
    %cst_11 = arith.constant dense<0.000000e+00> : vector<16x128xf32>
    %15 = tpu.matmul %13, %14, %cst_11 {dimension_numbers = #tpu.dot_dimension_numbers<[1], [0], [0], [1], [0, 0, 1, 1], [], []>} : vector<16x1024xbf16>, vector<1024x128xbf16>, vector<16x128xf32> -> vector<16x128xf32>
    %16 = arith.addf %12, %15 : vector<16x128xf32>
    %c0_12 = arith.constant 0 : index
    %c0_13 = arith.constant 0 : index
    %17 = vector.load %arg22[%c0_12, %c0_13] : memref<16x128xf32, #tpu.memory_space<vmem>>, vector<16x128xf32>
    tpu.vector_store %arg22[%c0_12, %c0_13], %16 {strides = array<i32>} : memref<16x128xf32, #tpu.memory_space<vmem>>, vector<16x128xf32>,
    %c1_i32 = arith.constant 1 : i32
    %18 = arith.cmpi eq, %arg0, %c1_i32 : i32
    %19 = arith.extui %18 : i1 to i32
    %c0_i32_14 = arith.constant 0 : i32
    %20 = arith.cmpi ne, %19, %c0_i32_14 : i32
    scf.if %20 {
      %c0_15 = arith.constant 0 : index
      %c0_16 = arith.constant 0 : index
      %21 = vector.load %arg22[%c0_15, %c0_16] : memref<16x128xf32, #tpu.memory_space<vmem>>, vector<16x128xf32>
      %c0_17 = arith.constant 0 : index
      %c0_18 = arith.constant 0 : index
      %22 = vector.load %arg13[%c0_17, %c0_18] : memref<1x128xf32, #tpu.memory_space<vmem>>, vector<1x128xf32>
      %23 = vector.broadcast %22 : vector<1x128xf32> to vector<16x128xf32>
      %24 = arith.addf %21, %23 : vector<16x128xf32>
      %c0_19 = arith.constant 0 : index
      %c0_20 = arith.constant 0 : index
      %25 = vector.load %arg21[%c0_19, %c0_20] : memref<16x128xf32, #tpu.memory_space<vmem>>, vector<16x128xf32>
      %26 = arith.addf %25, %24 : vector<16x128xf32>
      %c0_21 = arith.constant 0 : index
      %c0_22 = arith.constant 0 : index
      %27 = vector.load %arg14[%c0_21, %c0_22] : memref<1x128xf32, #tpu.memory_space<vmem>>, vector<1x128xf32>
      %c0_23 = arith.constant 0 : index
      %c0_24 = arith.constant 0 : index
      %28 = vector.load %arg15[%c0_23, %c0_24] : memref<1x128xf32, #tpu.memory_space<vmem>>, vector<1x128xf32>
      %cst_25 = arith.constant dense<0.000000e+00> : vector<16xf32>
      %29 = vector.multi_reduction <add>, %26, %cst_25 [1] : vector<16x128xf32> to vector<16xf32>
      %30 = vector.shape_cast %29 : vector<16xf32> to vector<16x1xf32>
      %cst_26 = arith.constant 1.280000e+02 : f32
      %31 = vector.broadcast %cst_26 : f32 to vector<16x1xf32>
      %32 = arith.divf %30, %31 : vector<16x1xf32>
      %33 = vector.broadcast %32 : vector<16x1xf32> to vector<16x128xf32>
      %34 = arith.subf %26, %33 : vector<16x128xf32>
      %35 = arith.mulf %34, %34 : vector<16x128xf32>
      %cst_27 = arith.constant dense<0.000000e+00> : vector<16xf32>
      %36 = vector.multi_reduction <add>, %35, %cst_27 [1] : vector<16x128xf32> to vector<16xf32>
      %37 = vector.shape_cast %36 : vector<16xf32> to vector<16x1xf32>
      %cst_28 = arith.constant 1.280000e+02 : f32
      %38 = vector.broadcast %cst_28 : f32 to vector<16x1xf32>
      %39 = arith.divf %37, %38 : vector<16x1xf32>
      %40 = vector.broadcast %32 : vector<16x1xf32> to vector<16x128xf32>
      %41 = arith.subf %26, %40 : vector<16x128xf32>
      %cst_29 = arith.constant 9.99999974E-6 : f32
      %42 = vector.broadcast %cst_29 : f32 to vector<16x1xf32>
      %43 = arith.addf %39, %42 : vector<16x1xf32>
      %44 = math.rsqrt %43 : vector<16x1xf32>
      %45 = vector.broadcast %44 : vector<16x1xf32> to vector<16x128xf32>
      %46 = arith.mulf %41, %45 : vector<16x128xf32>
      %47 = vector.broadcast %27 : vector<1x128xf32> to vector<16x128xf32>
      %48 = arith.mulf %46, %47 : vector<16x128xf32>
      %49 = vector.broadcast %28 : vector<1x128xf32> to vector<16x128xf32>
      %50 = arith.addf %48, %49 : vector<16x128xf32>
      %51 = vector.shape_cast %50 : vector<16x128xf32> to vector<2x1024xf32>
      %c0_30 = arith.constant 0 : index
      %c0_31 = arith.constant 0 : index
      %52 = vector.load %arg16[%c0_30, %c0_31] : memref<1x1024xf32, #tpu.memory_space<vmem>>, vector<1x1024xf32>
      %c0_32 = arith.constant 0 : index
      %c0_33 = arith.constant 0 : index
      %53 = vector.load %arg17[%c0_32, %c0_33] : memref<1x1024xf32, #tpu.memory_space<vmem>>, vector<1x1024xf32>
      %cst_34 = arith.constant dense<0.000000e+00> : vector<2xf32>
      %54 = vector.multi_reduction <add>, %51, %cst_34 [1] : vector<2x1024xf32> to vector<2xf32>
      %55 = vector.shape_cast %54 : vector<2xf32> to vector<2x1xf32>
      %cst_35 = arith.constant 1.024000e+03 : f32
      %56 = vector.broadcast %cst_35 : f32 to vector<2x1xf32>
      %57 = arith.divf %55, %56 : vector<2x1xf32>
      %58 = vector.broadcast %57 : vector<2x1xf32> to vector<2x1024xf32>
      %59 = arith.subf %51, %58 : vector<2x1024xf32>
      %60 = arith.mulf %59, %59 : vector<2x1024xf32>
      %cst_36 = arith.constant dense<0.000000e+00> : vector<2xf32>
      %61 = vector.multi_reduction <add>, %60, %cst_36 [1] : vector<2x1024xf32> to vector<2xf32>
      %62 = vector.shape_cast %61 : vector<2xf32> to vector<2x1xf32>
      %cst_37 = arith.constant 1.024000e+03 : f32
      %63 = vector.broadcast %cst_37 : f32 to vector<2x1xf32>
      %64 = arith.divf %62, %63 : vector<2x1xf32>
      %65 = vector.broadcast %57 : vector<2x1xf32> to vector<2x1024xf32>
      %66 = arith.subf %51, %65 : vector<2x1024xf32>
      %cst_38 = arith.constant 9.99999974E-6 : f32
      %67 = vector.broadcast %cst_38 : f32 to vector<2x1xf32>
      %68 = arith.addf %64, %67 : vector<2x1xf32>
      %69 = math.rsqrt %68 : vector<2x1xf32>
      %70 = vector.broadcast %69 : vector<2x1xf32> to vector<2x1024xf32>
      %71 = arith.mulf %66, %70 : vector<2x1024xf32>
      %72 = vector.broadcast %52 : vector<1x1024xf32> to vector<2x1024xf32>
      %73 = arith.mulf %71, %72 : vector<2x1024xf32>
      %74 = vector.broadcast %53 : vector<1x1024xf32> to vector<2x1024xf32>
      %75 = arith.addf %73, %74 : vector<2x1024xf32>
      %c0_39 = arith.constant 0 : index
      %c0_40 = arith.constant 0 : index
      %76 = vector.load %arg18[%c0_39, %c0_40] : memref<2x1024xf32, #tpu.memory_space<vmem>>, vector<2x1024xf32>
      %cst_41 = arith.constant dense<0.000000e+00> : vector<2x2xf32>
      %77 = tpu.matmul %75, %76, %cst_41 {dimension_numbers = #tpu.dot_dimension_numbers<[1], [1], [0], [0], [0, 0, 1, 0], [], []>} : vector<2x1024xf32>, vector<2x1024xf32>, vector<2x2xf32> -> vector<2x2xf32>
      %c0_42 = arith.constant 0 : index
      %c0_43 = arith.constant 0 : index
      %78 = vector.load %arg19[%c0_42, %c0_43] : memref<1x2xf32, #tpu.memory_space<vmem>>, vector<1x2xf32>
      %79 = vector.broadcast %78 : vector<1x2xf32> to vector<2x2xf32>
      %80 = arith.addf %77, %79 : vector<2x2xf32>
      %c0_44 = arith.constant 0 : index
      %c0_45 = arith.constant 0 : index
      %81 = vector.load %arg20[%c0_44, %c0_45] : memref<2x2xf32, #tpu.memory_space<vmem>>, vector<2x2xf32>
      tpu.vector_store %arg20[%c0_44, %c0_45], %80 {strides = array<i32>} : memref<2x2xf32, #tpu.memory_space<vmem>>, vector<2x2xf32>,
    } else {
    }
    return
  }
  func.func @transform_0(%arg0: i32) -> (i32, i32) {
    %c0_i32 = arith.constant 0 : i32
    %c0_i32_0 = arith.constant 0 : i32
    %c0_i32_1 = arith.constant 0 : i32
    return %c0_i32, %c0_i32_0 : i32, i32
  }
  func.func @transform_1(%arg0: i32) -> (i32, i32) {
    %c0_i32 = arith.constant 0 : i32
    %c0_i32_0 = arith.constant 0 : i32
    %c0_i32_1 = arith.constant 0 : i32
    return %c0_i32, %c0_i32_0 : i32, i32
  }
  func.func @transform_2(%arg0: i32) -> (i32, i32) {
    %c0_i32 = arith.constant 0 : i32
    %c0_i32_0 = arith.constant 0 : i32
    %c0_i32_1 = arith.constant 0 : i32
    return %c0_i32, %c0_i32_0 : i32, i32
  }
  func.func @transform_3(%arg0: i32) -> (i32, i32) {
    %c0_i32 = arith.constant 0 : i32
    %c0_i32_0 = arith.constant 0 : i32
    %c0_i32_1 = arith.constant 0 : i32
    return %c0_i32, %c0_i32_0 : i32, i32
  }
  func.func @transform_4(%arg0: i32) -> (i32, i32) {
    %c0_i32 = arith.constant 0 : i32
    %c0_i32_0 = arith.constant 0 : i32
    %c0_i32_1 = arith.constant 0 : i32
    return %c0_i32, %c0_i32_0 : i32, i32
  }
  func.func @transform_5(%arg0: i32) -> (i32, i32) {
    %c0_i32 = arith.constant 0 : i32
    %c0_i32_0 = arith.constant 0 : i32
    %c0_i32_1 = arith.constant 0 : i32
    return %c0_i32, %c0_i32_0 : i32, i32
  }
  func.func @transform_6(%arg0: i32) -> (i32, i32) {
    %c0_i32 = arith.constant 0 : i32
    %c0_i32_0 = arith.constant 0 : i32
    %c0_i32_1 = arith.constant 0 : i32
    return %c0_i32, %c0_i32_0 : i32, i32
  }
  func.func @transform_7(%arg0: i32) -> (i32, i32) {
    %c0_i32 = arith.constant 0 : i32
    %c0_i32_0 = arith.constant 0 : i32
    %c0_i32_1 = arith.constant 0 : i32
    return %c0_i32, %c0_i32_0 : i32, i32
  }
  func.func @transform_8(%arg0: i32) -> (i32, i32) {
    %c0_i32 = arith.constant 0 : i32
    %c0_i32_0 = arith.constant 0 : i32
    %c0_i32_1 = arith.constant 0 : i32
    return %c0_i32, %c0_i32_0 : i32, i32
  }
  func.func @transform_9(%arg0: i32) -> (i32, i32) {
    %c0_i32 = arith.constant 0 : i32
    %c0_i32_0 = arith.constant 0 : i32
    return %c0_i32, %arg0 : i32, i32
  }
  func.func @transform_10(%arg0: i32) -> (i32, i32) {
    %c0_i32 = arith.constant 0 : i32
    %c0_i32_0 = arith.constant 0 : i32
    return %c0_i32, %arg0 : i32, i32
  }
  func.func @transform_11(%arg0: i32) -> (i32, i32) {
    %c0_i32 = arith.constant 0 : i32
    %c0_i32_0 = arith.constant 0 : i32
    return %arg0, %c0_i32 : i32, i32
  }
  func.func @transform_12(%arg0: i32) -> (i32, i32) {
    %c0_i32 = arith.constant 0 : i32
    %c0_i32_0 = arith.constant 0 : i32
    %c0_i32_1 = arith.constant 0 : i32
    return %c0_i32, %c0_i32_0 : i32, i32
  }
  func.func @transform_13(%arg0: i32) -> (i32, i32) {
    %c0_i32 = arith.constant 0 : i32
    %c0_i32_0 = arith.constant 0 : i32
    %c0_i32_1 = arith.constant 0 : i32
    return %c0_i32, %c0_i32_0 : i32, i32
  }
  func.func @transform_14(%arg0: i32) -> (i32, i32) {
    %c0_i32 = arith.constant 0 : i32
    %c0_i32_0 = arith.constant 0 : i32
    %c0_i32_1 = arith.constant 0 : i32
    return %c0_i32, %c0_i32_0 : i32, i32
  }
  func.func @transform_15(%arg0: i32) -> (i32, i32) {
    %c0_i32 = arith.constant 0 : i32
    %c0_i32_0 = arith.constant 0 : i32
    %c0_i32_1 = arith.constant 0 : i32
    return %c0_i32, %c0_i32_0 : i32, i32
  }
  func.func @transform_16(%arg0: i32) -> (i32, i32) {
    %c0_i32 = arith.constant 0 : i32
    %c0_i32_0 = arith.constant 0 : i32
    %c0_i32_1 = arith.constant 0 : i32
    return %c0_i32, %c0_i32_0 : i32, i32
  }
  func.func @transform_17(%arg0: i32) -> (i32, i32) {
    %c0_i32 = arith.constant 0 : i32
    %c0_i32_0 = arith.constant 0 : i32
    %c0_i32_1 = arith.constant 0 : i32
    return %c0_i32, %c0_i32_0 : i32, i32
  }
  func.func @transform_18(%arg0: i32) -> (i32, i32) {
    %c0_i32 = arith.constant 0 : i32
    %c0_i32_0 = arith.constant 0 : i32
    %c0_i32_1 = arith.constant 0 : i32
    return %c0_i32, %c0_i32_0 : i32, i32
  }
  func.func @transform_19(%arg0: i32) -> (i32, i32) {
    %c0_i32 = arith.constant 0 : i32
    %c0_i32_0 = arith.constant 0 : i32
    %c0_i32_1 = arith.constant 0 : i32
    return %c0_i32, %c0_i32_0 : i32, i32
  }
}

</mosaic_0001>

<bundles_post_ra>
// kernel: transformer_forward.1
= control target key start
LH: loop header
LB: loop body
LE: loop exit
PB: predicated region body
PF: predicated region fallthrough
CT: control target
= control target key end

     0   :  { %s8589_s0 = inlined_call_operand.vmem [shape: f32[16,8], index: 0, kind: input, shape index: {}]   ;;  %s8590_s1 = inlined_call_operand.vmem [shape: f32[8,128], index: 1, kind: input, shape index: {}]   ;;  %s8591_s2 = inlined_call_operand.vmem [shape: f32[1,128], index: 2, kind: input, shape index: {}]   ;;  %s8592_s3 = inlined_call_operand.vmem [shape: bf16[128,384], index: 3, kind: input, shape index: {}]   ;;  %s8593_s4 = inlined_call_operand.vmem [shape: f32[1,384], index: 4, kind: input, shape index: {}]   ;;  %s8594_s5 = inlined_call_operand.vmem [shape: bf16[128,128], index: 5, kind: input, shape index: {}]   ;;  %s8595_s6 = inlined_call_operand.vmem [shape: f32[1,128], index: 6, kind: input, shape index: {}]   ;;  %s8596_s7 = inlined_call_operand.vmem [shape: f32[1,128], index: 7, kind: input, shape index: {}]   ;;  %s8597_s8 = inlined_call_operand.vmem [shape: f32[1,128], index: 8, kind: input, shape index: {}]   ;;  %s8598_s9 = inlined_call_operand.vmem [shape: bf16[128,2048], index: 9, kind: input, shape index: {}]   ;;  %s8599_s10 = inlined_call_operand.vmem [shape: f32[1,2048], index: 10, kind: input, shape index: {}]   ;;  %s8600_s11 = inlined_call_operand.vmem [shape: bf16[2048,128], index: 11, kind: input, shape index: {}]   ;;  %s8601_s12 = inlined_call_operand.vmem [shape: f32[1,128], index: 12, kind: input, shape index: {}]   ;;  %s8602_s13 = inlined_call_operand.vmem [shape: f32[1,128], index: 13, kind: input, shape index: {}]   ;;  %s8603_s14 = inlined_call_operand.vmem [shape: f32[1,128], index: 14, kind: input, shape index: {}]   ;;  %s8604_s15 = inlined_call_operand.vmem [shape: f32[1,1024], index: 15, kind: input, shape index: {}]   ;;  %s8605_s16 = inlined_call_operand.vmem [shape: f32[1,1024], index: 16, kind: input, shape index: {}]   ;;  %s8606_s17 = inlined_call_operand.vmem [shape: f32[2,1024], index: 17, kind: input, shape index: {}]   ;;  %s8607_s18 = inlined_call_operand.vmem [shape: f32[1,2], index: 18, kind: input, shape index: {}]   ;;  %s8608_s19 = inlined_call_operand.hbm [shape: f32[2,2], index: 19, kind: output, shape index: {}]  }
   0x1   :  { %8615 = sst [smem:[#allocation11_spill]] %s8589_s0 }
   0x2   :  { %8616 = sst [smem:[#allocation12_spill]] %s8590_s1 }
   0x3   :  { %8617 = sst [smem:[#allocation13_spill]] %s8591_s2 }
   0x4   :  { %8618 = sst [smem:[#allocation14_spill]] %s8592_s3 }
   0x5   :  { %8619 = sst [smem:[#allocation15_spill]] %s8598_s9 }
   0x6   :  { %8620 = sst [smem:[#allocation16_spill]] %s8608_s19 }
   0x7   :  { %24 = vsyncpa [#allocation6], 0  ;;  %s7552_s0 = smov 0   ;;  %s7554_s30 = smov 0  }
   0x8   :  { %s7556_s20 = smov 0  }
   0x9 LB: > { %8621 = sst [smem:[#allocation8_spill]] %s7432_s30  ;;  %s7568_s21 = sadd.s32 4294967295, %s7436_s20   ;;  %s7436_s20 = sphi %s7556_s20, %s8630_s20   ;;  %s7432_s30 = sphi %s7554_s30, %s8632_s30   ;;  %s7428_s0 = sphi %s7552_s0, %s8631_s0  }
   0xa   : > { %s7571_s1 = sadd.s32 1, %s7436_s20   ;;  %s226_s2 = sadd.s32 1, %s7432_s30 }
   0xb   : > { %8622 = sst [smem:[#allocation9_spill]] %s7571_s1  ;;  %s223_s22 = ssub.s32 %s7436_s20, %s7571_s1 }
   0xc   : > { %p224_p0 = scmp.eq.s32.totalorder %s223_s22, 0  ;;  %p233_p1 = scmp.ne.s32.totalorder %s7432_s30, %s7428_s0 }
   0xd   : > { %p234_p2 = scmp.eq.s32.totalorder %s7436_s20, 0  ;;  %p6498_p4 = scmp.ge.s32.totalorder %s7436_s20, 2 }
   0xe   : > { %s7580_s23 = scalar_select %p224_p0, %s7432_s30, %s226_s2  }
   0xf   : > { %p235_p3 = por %p234_p2, %p233_p1  ;;  %527 = sbr.rel (%p6498_p4) target bundleno = 64 (0x40), region = 80 }
  0x10   : > { %8623 = sst [smem:[#allocation10_spill]] %s7580_s23 }
  0x16   : > { %530 = sbr.rel (!%p235_p3) target bundleno = 64 (0x40), region = 84  ;;  %s532_s24 = sand.u32 (%p235_p3), 1, %s7432_s30  }
  0x17   : > { %s6739_s25 = sshll.u32 (%p235_p3), %s7436_s20, 5  ;;  %s6499_s3 = sshll.u32 (%p235_p3), %s532_s24, 9 }
  0x18   : > { %s8624_s9 = sld [smem:[#allocation15_spill]] (%p235_p3)  ;;  %s7593_s29 = scalar_lea.vmem (%p235_p3), [#allocation4], %s6499_s3 }
  0x1e   : > { %s7588_s28 = scalar_lea.vmem %s8624_s9, %s6739_s25 }
  0x1f   : > { %v550_v0 = vld [vmem:[%s7588_s28] sm:$0xff]  ;;  %v552_v1 = vld [vmem:[%s7588_s28 + $0x8] sm:$0xff]  ;;  %v554_v2 = vld [vmem:[%s7588_s28 + $0x10] sm:$0xff] }
  0x20   : > { %551 = vst [vmem:[%s7593_s29] sm:$0xff] %v550_v0  ;;  %553 = vst [vmem:[%s7593_s29 + $0x8] sm:$0xff] %v552_v1  ;;  %v556_v3 = vld [vmem:[%s7588_s28 + $0x18] sm:$0xff]  ;;  %v558_v4 = vld [vmem:[%s7588_s28 + $0x40] sm:$0xff] }
  0x21   : > { %555 = vst [vmem:[%s7593_s29 + $0x10] sm:$0xff] %v554_v2  ;;  %v560_v5 = vld [vmem:[%s7588_s28 + $0x48] sm:$0xff]  ;;  %557 = vst [vmem:[%s7593_s29 + $0x18] sm:$0xff] %v556_v3  ;;  %v562_v6 = vld [vmem:[%s7588_s28 + $0x50] sm:$0xff] }
  0x22   : > { %559 = vst [vmem:[%s7593_s29 + $0x20] sm:$0xff] %v558_v4  ;;  %561 = vst [vmem:[%s7593_s29 + $0x28] sm:$0xff] %v560_v5  ;;  %v564_v7 = vld [vmem:[%s7588_s28 + $0x58] sm:$0xff]  ;;  %v566_v8 = vld [vmem:[%s7588_s28 + $0x80] sm:$0xff] }
  0x23   : > { %563 = vst [vmem:[%s7593_s29 + $0x30] sm:$0xff] %v562_v6  ;;  %565 = vst [vmem:[%s7593_s29 + $0x38] sm:$0xff] %v564_v7  ;;  %v568_v9 = vld [vmem:[%s7588_s28 + $0x88] sm:$0xff]  ;;  %v570_v10 = vld [vmem:[%s7588_s28 + $0x90] sm:$0xff] }
  0x24   : > { %567 = vst [vmem:[%s7593_s29 + $0x40] sm:$0xff] %v566_v8  ;;  %v572_v11 = vld [vmem:[%s7588_s28 + $0x98] sm:$0xff]  ;;  %569 = vst [vmem:[%s7593_s29 + $0x48] sm:$0xff] %v568_v9  ;;  %v574_v12 = vld [vmem:[%s7588_s28 + $0xc0] sm:$0xff] }
  0x25   : > { %571 = vst [vmem:[%s7593_s29 + $0x50] sm:$0xff] %v570_v10  ;;  %573 = vst [vmem:[%s7593_s29 + $0x58] sm:$0xff] %v572_v11  ;;  %v576_v13 = vld [vmem:[%s7588_s28 + $0xc8] sm:$0xff]  ;;  %v578_v14 = vld [vmem:[%s7588_s28 + $0xd0] sm:$0xff] }
  0x26   : > { %575 = vst [vmem:[%s7593_s29 + $0x60] sm:$0xff] %v574_v12  ;;  %577 = vst [vmem:[%s7593_s29 + $0x68] sm:$0xff] %v576_v13  ;;  %v580_v15 = vld [vmem:[%s7588_s28 + $0xd8] sm:$0xff]  ;;  %v582_v16 = vld [vmem:[%s7588_s28 + $0x100] sm:$0xff] }
  0x27   : > { %579 = vst [vmem:[%s7593_s29 + $0x70] sm:$0xff] %v578_v14  ;;  %v584_v17 = vld [vmem:[%s7588_s28 + $0x108] sm:$0xff]  ;;  %581 = vst [vmem:[%s7593_s29 + $0x78] sm:$0xff] %v580_v15  ;;  %v586_v18 = vld [vmem:[%s7588_s28 + $0x110] sm:$0xff] }
  0x28   : > { %583 = vst [vmem:[%s7593_s29 + $0x80] sm:$0xff] %v582_v16  ;;  %585 = vst [vmem:[%s7593_s29 + $0x88] sm:$0xff] %v584_v17  ;;  %v588_v19 = vld [vmem:[%s7588_s28 + $0x118] sm:$0xff]  ;;  %v590_v20 = vld [vmem:[%s7588_s28 + $0x140] sm:$0xff] }
  0x29   : > { %587 = vst [vmem:[%s7593_s29 + $0x90] sm:$0xff] %v586_v18  ;;  %589 = vst [vmem:[%s7593_s29 + $0x98] sm:$0xff] %v588_v19  ;;  %v592_v21 = vld [vmem:[%s7588_s28 + $0x148] sm:$0xff]  ;;  %v594_v22 = vld [vmem:[%s7588_s28 + $0x150] sm:$0xff] }
  0x2a   : > { %591 = vst [vmem:[%s7593_s29 + $0xa0] sm:$0xff] %v590_v20  ;;  %v596_v23 = vld [vmem:[%s7588_s28 + $0x158] sm:$0xff]  ;;  %593 = vst [vmem:[%s7593_s29 + $0xa8] sm:$0xff] %v592_v21  ;;  %v598_v24 = vld [vmem:[%s7588_s28 + $0x180] sm:$0xff] }
  0x2b   : > { %595 = vst [vmem:[%s7593_s29 + $0xb0] sm:$0xff] %v594_v22  ;;  %597 = vst [vmem:[%s7593_s29 + $0xb8] sm:$0xff] %v596_v23  ;;  %v600_v25 = vld [vmem:[%s7588_s28 + $0x188] sm:$0xff]  ;;  %v602_v26 = vld [vmem:[%s7588_s28 + $0x190] sm:$0xff] }
  0x2c   : > { %599 = vst [vmem:[%s7593_s29 + $0xc0] sm:$0xff] %v598_v24  ;;  %601 = vst [vmem:[%s7593_s29 + $0xc8] sm:$0xff] %v600_v25  ;;  %v604_v27 = vld [vmem:[%s7588_s28 + $0x198] sm:$0xff]  ;;  %v606_v28 = vld [vmem:[%s7588_s28 + $0x1c0] sm:$0xff] }
  0x2d   : > { %603 = vst [vmem:[%s7593_s29 + $0xd0] sm:$0xff] %v602_v26  ;;  %v608_v29 = vld [vmem:[%s7588_s28 + $0x1c8] sm:$0xff]  ;;  %605 = vst [vmem:[%s7593_s29 + $0xd8] sm:$0xff] %v604_v27  ;;  %v610_v30 = vld [vmem:[%s7588_s28 + $0x1d0] sm:$0xff] }
  0x2e   : > { %607 = vst [vmem:[%s7593_s29 + $0xe0] sm:$0xff] %v606_v28  ;;  %609 = vst [vmem:[%s7593_s29 + $0xe8] sm:$0xff] %v608_v29  ;;  %v612_v31 = vld [vmem:[%s7588_s28 + $0x1d8] sm:$0xff]  ;;  %v614_v32 = vld [vmem:[%s7588_s28 + $0x200] sm:$0xff] }
  0x2f   : > { %611 = vst [vmem:[%s7593_s29 + $0xf0] sm:$0xff] %v610_v30  ;;  %613 = vst [vmem:[%s7593_s29 + $0xf8] sm:$0xff] %v612_v31  ;;  %v616_v33 = vld [vmem:[%s7588_s28 + $0x208] sm:$0xff]  ;;  %v618_v34 = vld [vmem:[%s7588_s28 + $0x210] sm:$0xff] }
  0x30   : > { %615 = vst [vmem:[%s7593_s29 + $0x100] sm:$0xff] %v614_v32  ;;  %v620_v35 = vld [vmem:[%s7588_s28 + $0x218] sm:$0xff]  ;;  %617 = vst [vmem:[%s7593_s29 + $0x108] sm:$0xff] %v616_v33  ;;  %v622_v36 = vld [vmem:[%s7588_s28 + $0x240] sm:$0xff] }
  0x31   : > { %619 = vst [vmem:[%s7593_s29 + $0x110] sm:$0xff] %v618_v34  ;;  %621 = vst [vmem:[%s7593_s29 + $0x118] sm:$0xff] %v620_v35  ;;  %v624_v37 = vld [vmem:[%s7588_s28 + $0x248] sm:$0xff]  ;;  %v626_v38 = vld [vmem:[%s7588_s28 + $0x250] sm:$0xff] }
  0x32   : > { %623 = vst [vmem:[%s7593_s29 + $0x120] sm:$0xff] %v622_v36  ;;  %625 = vst [vmem:[%s7593_s29 + $0x128] sm:$0xff] %v624_v37  ;;  %v628_v39 = vld [vmem:[%s7588_s28 + $0x258] sm:$0xff]  ;;  %v630_v40 = vld [vmem:[%s7588_s28 + $0x280] sm:$0xff] }
  0x33   : > { %627 = vst [vmem:[%s7593_s29 + $0x130] sm:$0xff] %v626_v38  ;;  %v632_v41 = vld [vmem:[%s7588_s28 + $0x288] sm:$0xff]  ;;  %629 = vst [vmem:[%s7593_s29 + $0x138] sm:$0xff] %v628_v39  ;;  %v634_v42 = vld [vmem:[%s7588_s28 + $0x290] sm:$0xff] }
  0x34   : > { %631 = vst [vmem:[%s7593_s29 + $0x140] sm:$0xff] %v630_v40  ;;  %633 = vst [vmem:[%s7593_s29 + $0x148] sm:$0xff] %v632_v41  ;;  %v636_v43 = vld [vmem:[%s7588_s28 + $0x298] sm:$0xff]  ;;  %v638_v44 = vld [vmem:[%s7588_s28 + $0x2c0] sm:$0xff] }
  0x35   : > { %635 = vst [vmem:[%s7593_s29 + $0x150] sm:$0xff] %v634_v42  ;;  %637 = vst [vmem:[%s7593_s29 + $0x158] sm:$0xff] %v636_v43  ;;  %v640_v45 = vld [vmem:[%s7588_s28 + $0x2c8] sm:$0xff]  ;;  %v642_v46 = vld [vmem:[%s7588_s28 + $0x2d0] sm:$0xff] }
  0x36   : > { %639 = vst [vmem:[%s7593_s29 + $0x160] sm:$0xff] %v638_v44  ;;  %v644_v47 = vld [vmem:[%s7588_s28 + $0x2d8] sm:$0xff]  ;;  %641 = vst [vmem:[%s7593_s29 + $0x168] sm:$0xff] %v640_v45  ;;  %v646_v48 = vld [vmem:[%s7588_s28 + $0x300] sm:$0xff] }
  0x37   : > { %643 = vst [vmem:[%s7593_s29 + $0x170] sm:$0xff] %v642_v46  ;;  %645 = vst [vmem:[%s7593_s29 + $0x178] sm:$0xff] %v644_v47  ;;  %v648_v49 = vld [vmem:[%s7588_s28 + $0x308] sm:$0xff]  ;;  %v650_v50 = vld [vmem:[%s7588_s28 + $0x310] sm:$0xff] }
  0x38   : > { %647 = vst [vmem:[%s7593_s29 + $0x180] sm:$0xff] %v646_v48  ;;  %649 = vst [vmem:[%s7593_s29 + $0x188] sm:$0xff] %v648_v49  ;;  %v652_v51 = vld [vmem:[%s7588_s28 + $0x318] sm:$0xff]  ;;  %v654_v52 = vld [vmem:[%s7588_s28 + $0x340] sm:$0xff] }
  0x39   : > { %651 = vst [vmem:[%s7593_s29 + $0x190] sm:$0xff] %v650_v50  ;;  %v656_v53 = vld [vmem:[%s7588_s28 + $0x348] sm:$0xff]  ;;  %653 = vst [vmem:[%s7593_s29 + $0x198] sm:$0xff] %v652_v51  ;;  %v658_v54 = vld [vmem:[%s7588_s28 + $0x350] sm:$0xff] }
  0x3a   : > { %655 = vst [vmem:[%s7593_s29 + $0x1a0] sm:$0xff] %v654_v52  ;;  %657 = vst [vmem:[%s7593_s29 + $0x1a8] sm:$0xff] %v656_v53  ;;  %v660_v55 = vld [vmem:[%s7588_s28 + $0x358] sm:$0xff]  ;;  %v662_v56 = vld [vmem:[%s7588_s28 + $0x380] sm:$0xff] }
  0x3b   : > { %659 = vst [vmem:[%s7593_s29 + $0x1b0] sm:$0xff] %v658_v54  ;;  %661 = vst [vmem:[%s7593_s29 + $0x1b8] sm:$0xff] %v660_v55  ;;  %v664_v57 = vld [vmem:[%s7588_s28 + $0x388] sm:$0xff]  ;;  %v666_v58 = vld [vmem:[%s7588_s28 + $0x390] sm:$0xff] }
  0x3c   : > { %663 = vst [vmem:[%s7593_s29 + $0x1c0] sm:$0xff] %v662_v56  ;;  %v668_v59 = vld [vmem:[%s7588_s28 + $0x398] sm:$0xff]  ;;  %665 = vst [vmem:[%s7593_s29 + $0x1c8] sm:$0xff] %v664_v57  ;;  %v670_v60 = vld [vmem:[%s7588_s28 + $0x3c0] sm:$0xff] }
  0x3d   : > { %667 = vst [vmem:[%s7593_s29 + $0x1d0] sm:$0xff] %v666_v58  ;;  %669 = vst [vmem:[%s7593_s29 + $0x1d8] sm:$0xff] %v668_v59  ;;  %v672_v61 = vld [vmem:[%s7588_s28 + $0x3c8] sm:$0xff]  ;;  %v674_v62 = vld [vmem:[%s7588_s28 + $0x3d0] sm:$0xff] }
  0x3e   : > { %671 = vst [vmem:[%s7593_s29 + $0x1e0] sm:$0xff] %v670_v60  ;;  %673 = vst [vmem:[%s7593_s29 + $0x1e8] sm:$0xff] %v672_v61  ;;  %v676_v63 = vld [vmem:[%s7588_s28 + $0x3d8] sm:$0xff] }
  0x3f   : > { %675 = vst [vmem:[%s7593_s29 + $0x1f0] sm:$0xff] %v674_v62  ;;  %677 = vst [vmem:[%s7593_s29 + $0x1f8] sm:$0xff] %v676_v63 }
  0x40 PF: > { %p6502_p5 = scmp.ge.s32.totalorder %s7436_s20, 1  ;;  %p699_p6 = scmp.lt.s32.totalorder %s7436_s20, 3 }
  0x42   : > { %p700_p7 = pnand %p6502_p5, %p699_p6 }
  0x43   : > { %s706_s22 = sand.u32 (!%p700_p7), 1, %s7428_s0   ;;  %s6504_s2 = sshll.u32 (!%p700_p7), %s7568_s21, 3 }
  0x44   : > { %703 = sbr.rel (%p700_p7) target bundleno = 7005 (0x1b5d), region = 115  ;;  %s6503_s24 = sshll.u32 (!%p700_p7), %s706_s22, 9 }
  0x45   : > { %p767_p8 = scmp.lt.s32.totalorder (!%p700_p7), %s6504_s2, 15  ;;  %s6505_s25 = sshll.u32 (!%p700_p7), %s7568_s21, 7 }
  0x46   : > { %p772_p9 = scmp.lt.s32.totalorder (!%p700_p7), %s6505_s25, 255  ;;  %s7736_s0 = scalar_lea.vmem (!%p700_p7), [#allocation4], %s6503_s24 }
  0x47   : > { %p6507_p10 = scmp.ne.s32.totalorder (!%p700_p7), %s7568_s21, 0 }
  0x4b   : > { %s8634_s2 = smov (!%p767_p8, %s6504_s2), 15  ;;  %s8636_s25 = smov (!%p772_p9, %s6505_s25), 255 }
  0x4c   : > { %s769_s27 = scalar_lea.vmem %s8599_s10, %s8634_s2  ;;  %s6506_s20 = sshll.u32 %s8636_s25, 2  ;;  %vm792_vm0 = vcmask (!%p6507_p10), 64512   ;;  %v7438_v4 = vmov (!%p6507_p10), 0.0   ;;  %v7439_v28 = vmov (!%p6507_p10), 0   ;;  %vm7440_vm1 = vmmov (!%p6507_p10), 0  }
  0x4d   : > { %s7734_s9 = scalar_lea.vmem %s8600_s11, %s6506_s20  ;;  %781 = sbr.rel (%p6507_p10) target bundleno = 5541 (0x15a5), region = 123  ;;  %4263 = vst [vmem:[#allocation3] sm:$0xff] (!%p6507_p10), %v7438_v4  ;;  %4264 = vst [vmem:[#allocation3 + $0x8] sm:$0xff] (!%p6507_p10), %v7438_v4  ;;  %1086 = vmatprep.mubr.bf16.mxu1 (!%p6507_p10), %v7439_v28  ;;  %v911_v37 = vlaneseq (!%p6507_p10)  ;;  %v909_v41 = vld [vmem:[%s8593_s4] sm:$0x7] (!%p6507_p10)  ;;  %vm1156_vm2 = vcmask (!%p6507_p10), 130048  }
  0x4e   : > { %s8625_s30 = sld [smem:[#allocation12_spill]] (!%p6507_p10)  ;;  %s8626_s3 = sld [smem:[#allocation11_spill]] (!%p6507_p10) }
  0x4f   : > { %s8627_s28 = sld [smem:[#allocation14_spill]] (!%p6507_p10)  ;;  %s8628_s24 = sld [smem:[#allocation13_spill]] (!%p6507_p10)  ;;  %v912_v38 = vshrl.u32 (!%p6507_p10), %v911_v37, 7 }
  0x50   : > { %s7442_s1 = smov (!%p6507_p10), 96   ;;  %s7443_s23 = smov (!%p6507_p10), 80  }
  0x51   : > { %v913_v39 = vsub.s32 (!%p6507_p10), 0, %v912_v38  ;;  %v921_v40 = vsub.s32 (!%p6507_p10), 2, %v912_v38  ;;  %v917_v42 = vsub.s32 (!%p6507_p10), 1, %v912_v38  ;;  %s7444_s25 = smov (!%p6507_p10), 64   ;;  %s7445_s20 = smov (!%p6507_p10), 48  }
  0x52   : > { %s7447_s22 = smov (!%p6507_p10), 16  }
  0x53   : > { %v914_v43 = vrot.slane (!%p6507_p10), %v909_v41, %v913_v39  ;;  %v922_v44 = vrot.slane (!%p6507_p10), %v909_v41, %v921_v40  ;;  %v918_v45 = vrot.slane (!%p6507_p10), %v909_v41, %v917_v42 }
  0x54   : > { %v784_v0 = vld [vmem:[%s8625_s30] sm:$0xff]  ;;  %v783_v2 = vld [vmem:[%s8626_s3 + $0x8] sm:$0xff]  ;;  %s7441_s30 = smov 112  }
  0x55   : > { %v782_v1 = vld [vmem:[%s8626_s3] sm:$0xff]  ;;  %6920 = vmatprep.subr.mxu0 %v784_v0  ;;  %v7206_v6 = vld [vmem:[%s8627_s28 + $0x8] ss:$12 sps:$4 sm:$0xff]   ;;  %v7213_v11 = vld [vmem:[%s8627_s28 + $0x30] ss:$12 sps:$4 sm:$0xff]  }
  0x56   : > { %6922 = vmatprep.mubr.msk.f32.mxu0 %vm792_vm0, %v782_v1  ;;  %v7203_v3 = vld [vmem:[%s8627_s28 + $0x4] ss:$12 sps:$4 sm:$0xff]   ;;  %6921 = vmatpush3.msra.mxu0 %v784_v0  ;;  %v7205_v5 = vld [vmem:[%s8627_s28] ss:$12 sps:$4 sm:$0xff]   ;;  %v7207_v7 = vld [vmem:[%s8627_s28 + $0x1c] ss:$12 sps:$4 sm:$0xff]  }
  0x57   : > { %6923 = vmatmul.mubr.msk.f32.vlgmr.msra.gmra.mrb[0].mxu0 %vm792_vm0, %v783_v2  ;;  %1054 = vmatprep.subr.bf16.mxu1 %v7203_v3  ;;  %v7209_v8 = vld [vmem:[%s8627_s28 + $0x18] ss:$12 sps:$4 sm:$0xff]   ;;  %v7210_v9 = vld [vmem:[%s8627_s28 + $0x20] ss:$12 sps:$4 sm:$0xff]   ;;  %v7217_v14 = vld [vmem:[%s8627_s28 + $0x48] ss:$12 sps:$4 sm:$0xff]  }
  0x58   : > { %6925 = vmatprep.subr.bf16.mxu0 %v7438_v4  ;;  %1055 = vmatpush1.bf16.msra.mxu1 %v7205_v5  ;;  %v7211_v10 = vld [vmem:[%s8627_s28 + $0x34] ss:$12 sps:$4 sm:$0xff]   ;;  %v7214_v12 = vld [vmem:[%s8627_s28 + $0x38] ss:$12 sps:$4 sm:$0xff]   ;;  %v7218_v15 = vld [vmem:[%s8627_s28 + $0x50] ss:$12 sps:$4 sm:$0xff]  }
  0x59   : > { %6926 = vmatpush3.bf16.msra.mxu0 %v7206_v6  ;;  %1056 = vmatprep.subr.bf16.mxu1 %v7207_v7  ;;  %v7215_v13 = vld [vmem:[%s8627_s28 + $0x4c] ss:$12 sps:$4 sm:$0xff]   ;;  %v7219_v16 = vld [vmem:[%s8627_s28 + $0x64] ss:$12 sps:$4 sm:$0xff]   ;;  %v7222_v18 = vld [vmem:[%s8627_s28 + $0x68] ss:$12 sps:$4 sm:$0xff]  }
  0x5a   : > { %6927 = vmatprep.subr.bf16.mxu0 %v7438_v4  ;;  %v7221_v17 = vld [vmem:[%s8627_s28 + $0x60] ss:$12 sps:$4 sm:$0xff]   ;;  %v7223_v19 = vld [vmem:[%s8627_s28 + $0x7c] ss:$12 sps:$4 sm:$0xff]   ;;  %v7225_v20 = vld [vmem:[%s8627_s28 + $0x78] ss:$12 sps:$4 sm:$0xff]   ;;  %6941 = vmatprep.mubr.msk.bf16.mxu0 %vm7440_vm1, %v7438_v4 }
  0x5b   : > { %v7226_v21 = vld [vmem:[%s8627_s28 + $0x80] ss:$12 sps:$4 sm:$0xff]   ;;  %v7229_v23 = vld [vmem:[%s8627_s28 + $0x90] ss:$12 sps:$4 sm:$0xff]   ;;  %v7230_v24 = vld [vmem:[%s8627_s28 + $0x98] ss:$12 sps:$4 sm:$0xff]  }
  0x5c   : > { %1057 = vmatpush1.bf16.msra.mxu1 %v7209_v8  ;;  %v7227_v22 = vld [vmem:[%s8627_s28 + $0x94] ss:$12 sps:$4 sm:$0xff]   ;;  %v7231_v25 = vld [vmem:[%s8627_s28 + $0xac] ss:$12 sps:$4 sm:$0xff]   ;;  %v7234_v27 = vld [vmem:[%s8627_s28 + $0xb0] ss:$12 sps:$4 sm:$0xff]  }
  0x5d   : > { %6928 = vmatpush3.bf16.msra.mxu0 %v7210_v9  ;;  %1058 = vmatprep.subr.bf16.mxu1 %v7211_v10  ;;  %v7233_v26 = vld [vmem:[%s8627_s28 + $0xa8] ss:$12 sps:$4 sm:$0xff]   ;;  %v6508_v29 = vld [vmem:[%s8628_s24] ss:$0 sm:$0xff] }
  0x5e   : > { %6929 = vmatprep.subr.bf16.mxu0 %v7438_v4 }
  0x60   : > { %1059 = vmatpush1.bf16.msra.mxu1 %v7213_v11 }
  0x61   : > { %6930 = vmatpush3.bf16.msra.mxu0 %v7214_v12  ;;  %1060 = vmatprep.subr.bf16.mxu1 %v7215_v13 }
  0x62   : > { %6931 = vmatprep.subr.bf16.mxu0 %v7438_v4 }
  0x64   : > { %1061 = vmatpush1.bf16.msra.mxu1 %v7217_v14 }
  0x65   : > { %6932 = vmatpush3.bf16.msra.mxu0 %v7218_v15  ;;  %1062 = vmatprep.subr.bf16.mxu1 %v7219_v16 }
  0x66   : > { %6933 = vmatprep.subr.bf16.mxu0 %v7438_v4 }
  0x68   : > { %1063 = vmatpush1.bf16.msra.mxu1 %v7221_v17 }
  0x69   : > { %6934 = vmatpush3.bf16.msra.mxu0 %v7222_v18  ;;  %1064 = vmatprep.subr.bf16.mxu1 %v7223_v19 }
  0x6a   : > { %6935 = vmatprep.subr.bf16.mxu0 %v7438_v4 }
  0x6c   : > { %1065 = vmatpush1.bf16.msra.mxu1 %v7225_v20 }
  0x6d   : > { %6936 = vmatpush3.bf16.msra.mxu0 %v7226_v21  ;;  %1066 = vmatprep.subr.bf16.mxu1 %v7227_v22 }
  0x6e   : > { %6937 = vmatprep.subr.bf16.mxu0 %v7438_v4 }
  0x70   : > { %1067 = vmatpush1.bf16.msra.mxu1 %v7229_v23 }
  0x71   : > { %6938 = vmatpush3.bf16.msra.mxu0 %v7230_v24  ;;  %1068 = vmatprep.subr.bf16.mxu1 %v7231_v25 }
  0x72   : > { %6939 = vmatprep.subr.bf16.mxu0 %v7438_v4 }
  0x74   : > { %1069 = vmatpush1.bf16.msra.mxu1 %v7233_v26 }
  0x75   : > { %6940 = vmatpush3.bf16.msra.mxu0 %v7234_v27  ;;  %6955 = vmatprep.subr.mxu1 %v7438_v4 }
  0x76   : > { %6945 = vmatprep.subr.mxu0 %v7438_v4 }
 0x12a   : > { %v6924_v30 = vpop.f32.mrb[0].mxu0 }
 0x12b   : > { %v7839_v31 = vadd.f32 %v6924_v30, %v6508_v29  ;;  %v865_v32 = vpop.f32.mrb[1].mxu0 }
 0x12c   : > { %v7841_v33 = vadd.f32 %v6508_v29, %v865_v32 }
 0x12d   : > { %v875_v34 = vmax.f32 %v7839_v31, 0.0 }
 0x12e   : > { %v874_v35 = vmax.f32 %v7841_v33, 0.0 }
 0x130   : > { %v876_v36 = vpack.c.bf16 %v875_v34, %v874_v35 }
 0x132   : > { %1087 = vmatmul.mubr.bf16.vlgmr.msra.gmra.mrb[0].mxu1 %v876_v36  ;;  %6942 = vmatmul.mubr.bf16.vlgmr.msra.gmra.mrb[4].mxu0 %v876_v36 }
 0x133   : > { %6947 = vmatprep.mubr.msk.f32.mxu0 %vm7440_vm1, %v7438_v4  ;;  %6957 = vmatprep.mubr.msk.f32.mxu1 %vm7440_vm1, %v7438_v4 }
 0x205   : > { %v1088_v46 = vpop.f32.mrb[0].mxu1  ;;  %v1131_v47 = vpop.f32.mrb[4].mxu0 }
 0x206   : > { %v1089_v48 = vadd.f32 %v1088_v46, %v914_v43  ;;  %v7856_v49 = vadd.f32 %v1131_v47, %v922_v44  ;;  %v1090_v50 = vpop.f32.mrb[1].mxu1  ;;  %v6943_v51 = vpop.f32.mrb[5].mxu0 }
 0x207   : > { %v7858_v52 = vadd.f32 %v1090_v50, %v918_v45  ;;  %v1092_v53 = vpop.f32.mrb[2].mxu1  ;;  %v1134_v54 = vpop.f32.mrb[6].mxu0 }
 0x208   : > { %v1094_v55 = vpop.f32.mrb[3].mxu1  ;;  %v6944_v56 = vpop.f32.mrb[7].mxu0  ;;  %6956 = vmatpush3.msra.mxu1 %v7856_v49  ;;  %v1093_v57 = vadd.f32 %v1092_v53, %v914_v43  ;;  %v7866_v59 = vmul.f32 0.25, %v1089_v48  ;;  %v7880_v61 = vadd.f32 %v1134_v54, %v922_v44  ;;  %v7235_v44 = vld [vmem:[%s8594_s5] sm:$0xff]  }
 0x209   : > { %v7861_v58 = vadd.f32 %v1094_v55, %v918_v45  ;;  %6946 = vmatpush3.xpose.msk.msra.mxu0 %vm1156_vm2, %v7858_v52  ;;  %6965 = vmatprep.subr.mxu1 %v7438_v4 }
 0x20a   : > { %6950 = vmatprep.subr.mxu0 %v7438_v4  ;;  %v7873_v60 = vmul.f32 0.25, %v1093_v57 }
 0x20b   : > { %1558 = vrot.lane.b32.xlu1 %v7861_v58, %s7441_s30 }
 0x20c   : > { %6948 = vmatmul.mubr.msk.f32.vlgmr.msra.gmra.mrb[2].mxu0 %vm1156_vm2, %v7866_v59 }
 0x20d   : > { %6951 = vmatpush3.xpose.msk.msra.mxu0 %vm1156_vm2, %v7861_v58  ;;  %6952 = vmatprep.mubr.msk.f32.mxu0 %vm7440_vm1, %v7438_v4 }
 0x20e   : > { %6960 = vmatprep.subr.mxu0 %v7438_v4 }
 0x20f   : > { %1556 = vrot.lane.b32.xlu1 %v7873_v60, %s7441_s30 }
 0x210   : > { %6953 = vmatmul.mubr.msk.f32.vlgmr.msra.gmra.mrb[8].mxu0 %vm1156_vm2, %v7873_v60 }
 0x211   : > { %6961 = vmatpush3.msra.mxu0 %v7880_v61  ;;  %6962 = vmatprep.mubr.msk.f32.mxu0 %vm7440_vm1, %v7438_v4 }
 0x212   : > { %6970 = vmatprep.subr.mxu0 %v7438_v4 }
 0x27d   : > { %v1559_v15 = vpop.permute.xlu1 %1558 }
 0x281   : > { %v1557_v17 = vpop.permute.xlu1 %1556 }
 0x2df   : > { %v1229_v62 = vpop.f32.mrb[2].mxu0 }
 0x2e0   : > { %v6949_v63 = vpop.f32.mrb[3].mxu0  ;;  %v1309_v9 = vsel %vm792_vm0, %v1229_v62, -inf }
 0x2e3   : > { %v1305_v0 = vpop.f32.mrb[8].mxu0 }
 0x2e4   : > { %v6954_v1 = vpop.f32.mrb[9].mxu0  ;;  %v1312_v2 = vsel %vm792_vm0, %v1305_v0, -inf }
 0x2e5   : > { %1313 = vmax.xlane.f32.xlu0 %v1312_v2 }
 0x372   : > { %v1314_v3 = vpop.xlane.xlu0 %1313 }
 0x373   : > { %v1316_v5 = vsub.f32 %v1305_v0, %v1314_v3 }
 0x375   : > { %v1319_v6 = vmul.f32 1.442695, %v1316_v5 }
 0x377   : > { %7243 = vpow2.f32 %v1319_v6 }
 0x381   : > { %v7244_v7 = vpop.eup %7243 }
 0x382   : > { %v1324_v8 = vsel %vm792_vm0, %v7244_v7, 0.0 }
 0x383   : > { %1325 = vadd.xlane.f32.xlu0 %v1324_v8 }
 0x387   : > { %1310 = vmax.xlane.f32.xlu0 %v1309_v9 }
 0x410   : > { %v1326_v10 = vpop.xlane.xlu0 %1325 }
 0x411   : > { %7245 = vrcp.f32 %v1326_v10 }
 0x414   : > { %v1311_v11 = vpop.xlane.xlu0 %1310 }
 0x415   : > { %v1315_v12 = vsub.f32 %v1229_v62, %v1311_v11 }
 0x417   : > { %v1317_v13 = vmul.f32 1.442695, %v1315_v12 }
 0x419   : > { %7247 = vpow2.f32 %v1317_v13 }
 0x41b   : > { %v7246_v14 = vpop.eup %7245 }
 0x41c   : > { %v1330_v16 = vmul.f32 %v7246_v14, %v7244_v7 }
 0x41e   : > { %6963 = vmatmul.mubr.msk.f32.vlgmr.msra.gmra.mrb[10].mxu0 %vm792_vm0, %v1330_v16 }
 0x41f   : > { %6971 = vmatpush3.xpose.msk.msra.mxu0 %vm1156_vm2, %v1559_v15  ;;  %6972 = vmatprep.mubr.msk.f32.mxu0 %vm7440_vm1, %v7438_v4 }
 0x420   : > { %6980 = vmatprep.subr.mxu0 %v7438_v4 }
 0x422   : > { %6973 = vmatmul.mubr.msk.f32.vlgmr.msra.gmra.mrb[12].mxu0 %vm1156_vm2, %v1557_v17 }
 0x423   : > { %v7248_v18 = vpop.eup %7247  ;;  %6982 = vmatprep.mubr.msk.f32.mxu0 %vm7440_vm1, %v7438_v4 }
 0x424   : > { %v1321_v19 = vsel %vm792_vm0, %v7248_v18, 0.0 }
 0x425   : > { %1322 = vadd.xlane.f32.xlu1 %v1321_v19 }
 0x436   : > { %1989 = vrot.lane.b32.xlu1 %v7873_v60, %s7442_s1 }
 0x43a   : > { %2296 = vrot.lane.b32.xlu1 %v7858_v52, %s7443_s23 }
 0x4b2   : > { %v1323_v20 = vpop.xlane.xlu1 %1322 }
 0x4b3   : > { %7249 = vrcp.f32 %v1323_v20 }
 0x4b6   : > { %v1990_v48 = vpop.permute.xlu1 %1989 }
 0x4bd   : > { %v7250_v21 = vpop.eup %7249 }
 0x4be   : > { %v1329_v22 = vmul.f32 %v7250_v21, %v7248_v18  ;;  %v2297_v18 = vpop.permute.xlu1 %2296 }
 0x4c0   : > { %6958 = vmatmul.mubr.msk.f32.vlgmr.msra.gmra.mrb[4].mxu1 %vm792_vm0, %v1329_v22 }
 0x4c1   : > { %6967 = vmatprep.mubr.msk.f32.mxu1 %vm7440_vm1, %v7438_v4 }
 0x4f1   : > { %v1473_v23 = vpop.f32.mrb[10].mxu0 }
 0x4f2   : > { %v6964_v24 = vpop.f32.mrb[11].mxu0 }
 0x4f5   : > { %v1630_v25 = vpop.f32.mrb[12].mxu0 }
 0x4f6   : > { %v6974_v26 = vpop.f32.mrb[13].mxu0  ;;  %v1637_v27 = vsel %vm792_vm0, %v1630_v25, -inf }
 0x4f7   : > { %1638 = vmax.xlane.f32.xlu0 %v1637_v27  ;;  %v7236_v26 = vld [vmem:[%s8594_s5 + $0x8] sm:$0xff]  }
 0x584   : > { %v1639_v28 = vpop.xlane.xlu0 %1638 }
 0x585   : > { %v1641_v29 = vsub.f32 %v1630_v25, %v1639_v28 }
 0x587   : > { %v1644_v30 = vmul.f32 1.442695, %v1641_v29 }
 0x589   : > { %7251 = vpow2.f32 %v1644_v30 }
 0x593   : > { %v7252_v32 = vpop.eup %7251  ;;  %v1400_v36 = vpop.f32.mrb[4].mxu1 }
 0x594   : > { %v1477_v37 = vpack.c.bf16 %v1473_v23, %v1400_v36  ;;  %v6959_v38 = vpop.f32.mrb[5].mxu1  ;;  %v1649_v39 = vsel %vm792_vm0, %v7252_v32, 0.0 }
 0x595   : > { %1650 = vadd.xlane.f32.xlu0 %v1649_v39 }
 0x5ab   : > { %1734 = vrot.lane.b32.xlu0 %v7880_v61, %s7441_s30 }
 0x5af   : > { %1991 = vrot.lane.b32.xlu0 %v7861_v58, %s7442_s1 }
 0x5b3   : > { %1480 = vrot.lane.b32.xlu0 %v7858_v52, %s7441_s30 }
 0x5b7   : > { %1478 = vrot.lane.b32.xlu0 %v7866_v59, %s7441_s30 }
 0x622   : > { %v1651_v40 = vpop.xlane.xlu0 %1650 }
 0x623   : > { %7253 = vrcp.f32 %v1651_v40 }
 0x626   : > { %v1735_v41 = vpop.permute.xlu0 %1734 }
 0x627   : > { %6981 = vmatpush3.msra.mxu0 %v1735_v41 }
 0x628   : > { %6991 = vmatprep.subr.bf16.mxu0 %v7438_v4 }
 0x62a   : > { %v1992_v42 = vpop.permute.xlu0 %1991 }
 0x62d   : > { %v7254_v43 = vpop.eup %7253 }
 0x62e   : > { %v1655_v45 = vmul.f32 %v7254_v43, %v7252_v32  ;;  %v1481_v46 = vpop.permute.xlu0 %1480 }
 0x62f   : > { %6966 = vmatpush3.xpose.msk.msra.mxu1 %vm1156_vm2, %v1481_v46 }
 0x630   : > { %6983 = vmatmul.mubr.msk.f32.vlgmr.msra.gmra.mrb[14].mxu0 %vm792_vm0, %v1655_v45  ;;  %6975 = vmatprep.subr.mxu1 %v7438_v4 }
 0x631   : > { %6992 = vmatpush3.bf16.msra.mxu0 %v7235_v44  ;;  %6993 = vmatprep.mubr.msk.bf16.mxu0 %vm7440_vm1, %v7438_v4 }
 0x632   : > { %v1479_v47 = vpop.permute.xlu0 %1478  ;;  %7002 = vmatprep.subr.mxu0 %v7438_v4 }
 0x633   : > { %6968 = vmatmul.mubr.msk.f32.vlgmr.msra.gmra.mrb[6].mxu1 %vm1156_vm2, %v1479_v47 }
 0x634   : > { %6994 = vmatmul.mubr.msk.bf16.vlgmr.msra.gmra.mrb[16].mxu0 %vm1156_vm2, %v1477_v37  ;;  %6977 = vmatprep.mubr.msk.f32.mxu1 %vm7440_vm1, %v7438_v4 }
 0x635   : > { %7004 = vmatprep.mubr.msk.f32.mxu0 %vm7440_vm1, %v7438_v4 }
 0x63a   : > { %7003 = vmatpush3.xpose.msk.msra.mxu0 %vm1156_vm2, %v1992_v42 }
 0x63b   : > { %7012 = vmatprep.subr.mxu0 %v7438_v4 }
 0x63d   : > { %7005 = vmatmul.mubr.msk.f32.vlgmr.msra.gmra.mrb[20].mxu0 %vm1156_vm2, %v1990_v48 }
 0x63e   : > { %7014 = vmatprep.mubr.msk.f32.mxu0 %vm7440_vm1, %v7438_v4 }
 0x703   : > { %v7940_v50 = vpop.f32.mrb[14].mxu0 }
 0x704   : > { %v6984_v51 = vpop.f32.mrb[15].mxu0 }
 0x706   : > { %v1552_v53 = vpop.f32.mrb[6].mxu1 }
 0x707   : > { %v6969_v54 = vpop.f32.mrb[7].mxu1  ;;  %v7942_v55 = vpop.f32.mrb[16].mxu0  ;;  %v1634_v2 = vsel %vm792_vm0, %v1552_v53, -inf }
 0x708   : > { %v6995_v56 = vpop.f32.mrb[17].mxu0 }
 0x709   : > { %v7944_v57 = vpop.f32.mrb[18].mxu0 }
 0x70a   : > { %v6996_v62 = vpop.f32.mrb[19].mxu0 }
 0x710   : > { %v2063_v63 = vpop.f32.mrb[20].mxu0 }
 0x711   : > { %v7006_v0 = vpop.f32.mrb[21].mxu0  ;;  %v2070_v1 = vsel %vm792_vm0, %v2063_v63, -inf }
 0x712   : > { %2071 = vmax.xlane.f32.xlu0 %v2070_v1 }
 0x728   : > { %2165 = vrot.lane.b32.xlu0 %v7880_v61, %s7442_s1 }
 0x72c   : > { %2294 = vrot.lane.b32.xlu0 %v7866_v59, %s7443_s23 }
 0x730   : > { %2374 = vrot.lane.b32.xlu0 %v7861_v58, %s7443_s23 }
 0x74f   : > { %1635 = vmax.xlane.f32.xlu0 %v1634_v2 }
 0x765   : > { %1657 = vrot.lane.b32.xlu0 %v7856_v49, %s7441_s30 }
 0x769   : > { %2679 = vrot.lane.b32.xlu0 %v7858_v52, %s7444_s25 }
 0x76d   : > { %2677 = vrot.lane.b32.xlu0 %v7866_v59, %s7444_s25 }
 0x771   : > { %2757 = vrot.lane.b32.xlu0 %v7861_v58, %s7444_s25 }
 0x775   : > { %1913 = vrot.lane.b32.xlu0 %v7858_v52, %s7442_s1 }
 0x79f   : > { %v2072_v3 = vpop.xlane.xlu0 %2071 }
 0x7a0   : > { %v2074_v5 = vsub.f32 %v2063_v63, %v2072_v3 }
 0x7a2   : > { %v2077_v6 = vmul.f32 1.442695, %v2074_v5 }
 0x7a3   : > { %v2166_v7 = vpop.permute.xlu0 %2165 }
 0x7a4   : > { %7255 = vpow2.f32 %v2077_v6  ;;  %7013 = vmatpush3.msra.mxu0 %v2166_v7 }
 0x7a5   : > { %7023 = vmatprep.subr.mxu0 %v7438_v4 }
 0x7a7   : > { %v2295_v10 = vpop.permute.xlu0 %2294 }
 0x7ab   : > { %v2375_v11 = vpop.permute.xlu0 %2374 }
 0x7ae   : > { %v7256_v8 = vpop.eup %7255 }
 0x7af   : > { %v2082_v9 = vsel %vm792_vm0, %v7256_v8, 0.0 }
 0x7b0   : > { %2083 = vadd.xlane.f32.xlu1 %v2082_v9 }
 0x7c1   : > { %2372 = vrot.lane.b32.xlu1 %v7873_v60, %s7443_s23 }
 0x7dc   : > { %v1636_v12 = vpop.xlane.xlu0 %1635 }
 0x7dd   : > { %v1640_v13 = vsub.f32 %v1552_v53, %v1636_v12 }
 0x7df   : > { %v1642_v14 = vmul.f32 1.442695, %v1640_v13 }
 0x7e0   : > { %v1658_v15 = vpop.permute.xlu0 %1657 }
 0x7e1   : > { %7257 = vpow2.f32 %v1642_v14  ;;  %6976 = vmatpush3.msra.mxu1 %v1658_v15 }
 0x7e2   : > { %6985 = vmatprep.subr.bf16.mxu1 %v7438_v4 }
 0x7e4   : > { %v2680_v38 = vpop.permute.xlu0 %2679 }
 0x7e8   : > { %v2678_v39 = vpop.permute.xlu0 %2677 }
 0x7eb   : > { %v7258_v16 = vpop.eup %7257 }
 0x7ec   : > { %v1646_v17 = vsel %vm792_vm0, %v7258_v16, 0.0  ;;  %v2758_v40 = vpop.permute.xlu0 %2757 }
 0x7ed   : > { %1647 = vadd.xlane.f32.xlu1 %v1646_v17 }
 0x7f0   : > { %v1914_v44 = vpop.permute.xlu0 %1913 }
 0x83d   : > { %v2084_v19 = vpop.xlane.xlu1 %2083 }
 0x83e   : > { %7259 = vrcp.f32 %v2084_v19 }
 0x841   : > { %v2373_v22 = vpop.permute.xlu1 %2372 }
 0x848   : > { %v7260_v20 = vpop.eup %7259 }
 0x849   : > { %v2088_v21 = vmul.f32 %v7260_v20, %v7256_v8 }
 0x84b   : > { %7015 = vmatmul.mubr.msk.f32.vlgmr.msra.gmra.mrb[22].mxu0 %vm792_vm0, %v2088_v21 }
 0x84c   : > { %7024 = vmatpush3.xpose.msk.msra.mxu0 %vm1156_vm2, %v2297_v18  ;;  %7025 = vmatprep.mubr.msk.f32.mxu0 %vm7440_vm1, %v7438_v4 }
 0x84d   : > { %7028 = vmatprep.subr.mxu0 %v7438_v4 }
 0x84f   : > { %7026 = vmatmul.mubr.msk.f32.vlgmr.msra.gmra.mrb[24].mxu0 %vm1156_vm2, %v2295_v10 }
 0x850   : > { %7029 = vmatpush3.xpose.msk.msra.mxu0 %vm1156_vm2, %v2375_v11  ;;  %7030 = vmatprep.mubr.msk.f32.mxu0 %vm7440_vm1, %v7438_v4 }
 0x851   : > { %7038 = vmatprep.subr.mxu0 %v7438_v4 }
 0x853   : > { %7031 = vmatmul.mubr.msk.f32.vlgmr.msra.gmra.mrb[26].mxu0 %vm1156_vm2, %v2373_v22 }
 0x854   : > { %7040 = vmatprep.mubr.msk.f32.mxu0 %vm7440_vm1, %v7438_v4 }
 0x87a   : > { %v1648_v23 = vpop.xlane.xlu1 %1647 }
 0x87b   : > { %7261 = vrcp.f32 %v1648_v23 }
 0x885   : > { %v7262_v24 = vpop.eup %7261 }
 0x886   : > { %v1654_v25 = vmul.f32 %v7262_v24, %v7258_v16 }
 0x888   : > { %6978 = vmatmul.mubr.msk.f32.vlgmr.msra.gmra.mrb[8].mxu1 %vm792_vm0, %v1654_v25 }
 0x889   : > { %6987 = vmatprep.mubr.msk.bf16.mxu1 %vm7440_vm1, %v7438_v4  ;;  %6986 = vmatpush3.bf16.msra.mxu1 %v7236_v26 }
 0x88a   : > { %6997 = vmatprep.subr.mxu1 %v7438_v4 }
 0x91e   : > { %v7990_v27 = vpop.f32.mrb[22].mxu0 }
 0x91f   : > { %v7016_v28 = vpop.f32.mrb[23].mxu0 }
 0x922   : > { %v7992_v29 = vpop.f32.mrb[24].mxu0 }
 0x923   : > { %v7027_v30 = vpop.f32.mrb[25].mxu0  ;;  %v2450_v15 = vsel %vm792_vm0, %v7992_v29, -inf }
 0x926   : > { %v2446_v32 = vpop.f32.mrb[26].mxu0 }
 0x927   : > { %v7032_v36 = vpop.f32.mrb[27].mxu0  ;;  %v2453_v37 = vsel %vm792_vm0, %v2446_v32, -inf }
 0x928   : > { %2454 = vmax.xlane.f32.xlu1 %v2453_v37 }
 0x939   : > { %2548 = vrot.lane.b32.xlu1 %v7880_v61, %s7443_s23 }
 0x95b   : > { %v1729_v41 = vpop.f32.mrb[8].mxu1 }
 0x95c   : > { %v1810_v42 = vpack.c.bf16 %v7940_v50, %v1729_v41  ;;  %v6979_v43 = vpop.f32.mrb[9].mxu1 }
 0x95e   : > { %6988 = vmatmul.mubr.msk.bf16.vlgmr.msra.gmra.mrb[12].mxu1 %vm1156_vm2, %v1810_v42 }
 0x95f   : > { %6998 = vmatpush3.xpose.msk.msra.mxu1 %vm1156_vm2, %v1914_v44  ;;  %6999 = vmatprep.mubr.msk.f32.mxu1 %vm7440_vm1, %v7438_v4 }
 0x960   : > { %7007 = vmatprep.subr.mxu1 %v7438_v4 }
 0x9b5   : > { %v2455_v45 = vpop.xlane.xlu1 %2454 }
 0x9b6   : > { %v2457_v46 = vsub.f32 %v2446_v32, %v2455_v45 }
 0x9b8   : > { %v2460_v47 = vmul.f32 1.442695, %v2457_v46 }
 0x9b9   : > { %v2549_v48 = vpop.permute.xlu1 %2548 }
 0x9ba   : > { %7263 = vpow2.f32 %v2460_v47  ;;  %7039 = vmatpush3.msra.mxu0 %v2549_v48 }
 0x9bb   : > { %7049 = vmatprep.subr.mxu0 %v7438_v4 }
 0x9c4   : > { %v7264_v50 = vpop.eup %7263 }
 0x9c5   : > { %v2465_v51 = vsel %vm792_vm0, %v7264_v50, 0.0 }
 0x9c6   : > { %2466 = vadd.xlane.f32.xlu1 %v2465_v51 }
 0x9d7   : > { %2755 = vrot.lane.b32.xlu1 %v7873_v60, %s7444_s25 }
 0x9db   : > { %1911 = vrot.lane.b32.xlu1 %v7866_v59, %s7442_s1 }
 0xa31   : > { %v1854_v53 = vpop.f32.mrb[12].mxu1 }
 0xa32   : > { %v8010_v54 = vadd.f32 %v7942_v55, %v1854_v53  ;;  %v6989_v56 = vpop.f32.mrb[13].mxu1 }
 0xa33   : > { %v1857_v62 = vpop.f32.mrb[14].mxu1 }
 0xa34   : > { %v8013_v63 = vadd.f32 %v7944_v57, %v1857_v62  ;;  %v6990_v0 = vpop.f32.mrb[15].mxu1 }
 0xa53   : > { %v2467_v1 = vpop.xlane.xlu1 %2466 }
 0xa54   : > { %7265 = vrcp.f32 %v2467_v1 }
 0xa57   : > { %v2756_v2 = vpop.permute.xlu1 %2755 }
 0xa5b   : > { %v1912_v3 = vpop.permute.xlu1 %1911 }
 0xa5c   : > { %7000 = vmatmul.mubr.msk.f32.vlgmr.msra.gmra.mrb[10].mxu1 %vm1156_vm2, %v1912_v3 }
 0xa5d   : > { %7009 = vmatprep.mubr.msk.f32.mxu1 %vm7440_vm1, %v7438_v4 }
 0xa5e   : > { %v7266_v5 = vpop.eup %7265 }
 0xa5f   : > { %v2471_v6 = vmul.f32 %v7266_v5, %v7264_v50  ;;  %v7237_v50 = vld [vmem:[%s8594_s5 + $0x10] sm:$0xff]  }
 0xa61   : > { %7041 = vmatmul.mubr.msk.f32.vlgmr.msra.gmra.mrb[28].mxu0 %vm792_vm0, %v2471_v6 }
 0xa62   : > { %7050 = vmatpush3.xpose.msk.msra.mxu0 %vm1156_vm2, %v2680_v38  ;;  %7051 = vmatprep.mubr.msk.f32.mxu0 %vm7440_vm1, %v7438_v4 }
 0xa63   : > { %7054 = vmatprep.subr.mxu0 %v7438_v4 }
 0xa65   : > { %7052 = vmatmul.mubr.msk.f32.vlgmr.msra.gmra.mrb[30].mxu0 %vm1156_vm2, %v2678_v39 }
 0xa66   : > { %7055 = vmatpush3.xpose.msk.msra.mxu0 %vm1156_vm2, %v2758_v40  ;;  %7056 = vmatprep.mubr.msk.f32.mxu0 %vm7440_vm1, %v7438_v4 }
 0xa67   : > { %7064 = vmatprep.subr.mxu0 %v7438_v4 }
 0xa69   : > { %7057 = vmatmul.mubr.msk.f32.vlgmr.msra.gmra.mrb[32].mxu0 %vm1156_vm2, %v2756_v2 }
 0xa6a   : > { %7066 = vmatprep.mubr.msk.f32.mxu0 %vm7440_vm1, %v7438_v4 }
 0xb2f   : > { %v1985_v55 = vpop.f32.mrb[10].mxu1 }
 0xb30   : > { %v7001_v57 = vpop.f32.mrb[11].mxu1  ;;  %v2067_v7 = vsel %vm792_vm0, %v1985_v55, -inf }
 0xb31   : > { %2068 = vmax.xlane.f32.xlu1 %v2067_v7 }
 0xb34   : > { %v8032_v8 = vpop.f32.mrb[28].mxu0 }
 0xb35   : > { %v7042_v9 = vpop.f32.mrb[29].mxu0 }
 0xb38   : > { %v8034_v10 = vpop.f32.mrb[30].mxu0 }
 0xb39   : > { %v7053_v11 = vpop.f32.mrb[31].mxu0 }
 0xb3c   : > { %v2829_v12 = vpop.f32.mrb[32].mxu0 }
 0xb3d   : > { %v7058_v13 = vpop.f32.mrb[33].mxu0  ;;  %v2836_v14 = vsel %vm792_vm0, %v2829_v12, -inf }
 0xb3e   : > { %2837 = vmax.xlane.f32.xlu0 %v2836_v14 }
 0xb42   : > { %3062 = vrot.lane.b32.xlu1 %v7858_v52, %s7445_s20 }
 0xb46   : > { %3060 = vrot.lane.b32.xlu1 %v7866_v59, %s7445_s20 }
 0xb4a   : > { %3138 = vrot.lane.b32.xlu1 %v7873_v60, %s7445_s20 }
 0xb4e   : > { %2089 = vrot.lane.b32.xlu1 %v7856_v49, %s7442_s1  ;;  %s7446_s1 = smov 32  }
 0xb72   : > { %2451 = vmax.xlane.f32.xlu1 %v2450_v15  ;;  %v2833_v15 = vsel %vm792_vm0, %v8034_v10, -inf }
 0xb83   : > { %3314 = vrot.lane.b32.xlu1 %v7880_v61, %s7445_s20 }
 0xbbe   : > { %v2069_v16 = vpop.xlane.xlu1 %2068 }
 0xbbf   : > { %v2073_v17 = vsub.f32 %v1985_v55, %v2069_v16 }
 0xbc1   : > { %v2075_v30 = vmul.f32 1.442695, %v2073_v17  ;;  %v7238_v17 = vld [vmem:[%s8594_s5 + $0x18] sm:$0xff]  }
 0xbc2   : > { %v3063_v18 = vpop.permute.xlu1 %3062 }
 0xbc6   : > { %v3061_v19 = vpop.permute.xlu1 %3060 }
 0xbca   : > { %v3139_v20 = vpop.permute.xlu1 %3138 }
 0xbcb   : > { %v2838_v21 = vpop.xlane.xlu0 %2837 }
 0xbcc   : > { %v2840_v22 = vsub.f32 %v2829_v12, %v2838_v21 }
 0xbce   : > { %v2843_v23 = vmul.f32 1.442695, %v2840_v22  ;;  %v2090_v24 = vpop.permute.xlu1 %2089 }
 0xbcf   : > { %7008 = vmatpush3.msra.mxu1 %v2090_v24 }
 0xbd0   : > { %7267 = vpow2.f32 %v2843_v23  ;;  %7017 = vmatprep.subr.bf16.mxu1 %v7438_v4 }
 0xbd1   : > { %7269 = vpow2.f32 %v2075_v30 }
 0xbda   : > { %v7268_v25 = vpop.eup %7267 }
 0xbdb   : > { %v2848_v26 = vsel %vm792_vm0, %v7268_v25, 0.0  ;;  %v7270_v37 = vpop.eup %7269 }
 0xbdc   : > { %2849 = vadd.xlane.f32.xlu0 %v2848_v26  ;;  %v2079_v38 = vsel %vm792_vm0, %v7270_v37, 0.0 }
 0xbf2   : > { %2931 = vrot.lane.b32.xlu0 %v7880_v61, %s7444_s25 }
 0xbf6   : > { %3140 = vrot.lane.b32.xlu0 %v7861_v58, %s7445_s20 }
 0xbff   : > { %v2452_v28 = vpop.xlane.xlu1 %2451 }
 0xc00   : > { %v2456_v32 = vsub.f32 %v7992_v29, %v2452_v28 }
 0xc02   : > { %v2458_v36 = vmul.f32 1.442695, %v2456_v32 }
 0xc03   : > { %v3315_v45 = vpop.permute.xlu1 %3314 }
 0xc04   : > { %7271 = vpow2.f32 %v2458_v36 }
 0xc0e   : > { %v7272_v39 = vpop.eup %7271 }
 0xc0f   : > { %v2462_v40 = vsel %vm792_vm0, %v7272_v39, 0.0 }
 0xc15   : > { %2080 = vadd.xlane.f32.xlu0 %v2079_v38 }
 0xc19   : > { %2463 = vadd.xlane.f32.xlu0 %v2462_v40 }
 0xc69   : > { %v2850_v41 = vpop.xlane.xlu0 %2849 }
 0xc6a   : > { %7273 = vrcp.f32 %v2850_v41 }
 0xc6d   : > { %v2932_v42 = vpop.permute.xlu0 %2931 }
 0xc6e   : > { %7065 = vmatpush3.msra.mxu0 %v2932_v42 }
 0xc6f   : > { %7075 = vmatprep.subr.mxu0 %v7438_v4 }
 0xc71   : > { %v3141_v29 = vpop.permute.xlu0 %3140 }
 0xc74   : > { %v7274_v43 = vpop.eup %7273 }
 0xc75   : > { %v2854_v44 = vmul.f32 %v7274_v43, %v7268_v25 }
 0xc77   : > { %7067 = vmatmul.mubr.msk.f32.vlgmr.msra.gmra.mrb[34].mxu0 %vm792_vm0, %v2854_v44 }
 0xc78   : > { %7076 = vmatpush3.xpose.msk.msra.mxu0 %vm1156_vm2, %v3063_v18  ;;  %7077 = vmatprep.mubr.msk.f32.mxu0 %vm7440_vm1, %v7438_v4 }
 0xc79   : > { %7080 = vmatprep.subr.mxu0 %v7438_v4 }
 0xc7b   : > { %7078 = vmatmul.mubr.msk.f32.vlgmr.msra.gmra.mrb[36].mxu0 %vm1156_vm2, %v3061_v19 }
 0xc7c   : > { %7081 = vmatpush3.xpose.msk.msra.mxu0 %vm1156_vm2, %v3141_v29  ;;  %7082 = vmatprep.mubr.msk.f32.mxu0 %vm7440_vm1, %v7438_v4 }
 0xc7d   : > { %7090 = vmatprep.subr.mxu0 %v7438_v4 }
 0xc7f   : > { %7083 = vmatmul.mubr.msk.f32.vlgmr.msra.gmra.mrb[38].mxu0 %vm1156_vm2, %v3139_v20 }
 0xc80   : > { %7091 = vmatpush3.msra.mxu0 %v3315_v45  ;;  %7092 = vmatprep.mubr.msk.f32.mxu0 %vm7440_vm1, %v7438_v4 }
 0xc81   : > { %7101 = vmatprep.subr.mxu0 %v7438_v4 }
 0xca2   : > { %v2081_v46 = vpop.xlane.xlu0 %2080 }
 0xca3   : > { %7275 = vrcp.f32 %v2081_v46 }
 0xca6   : > { %v2464_v55 = vpop.xlane.xlu0 %2463 }
 0xca7   : > { %7277 = vrcp.f32 %v2464_v55 }
 0xcad   : > { %v7276_v47 = vpop.eup %7275 }
 0xcae   : > { %v2087_v48 = vmul.f32 %v7276_v47, %v7270_v37 }
 0xcb0   : > { %7010 = vmatmul.mubr.msk.f32.vlgmr.msra.gmra.mrb[16].mxu1 %vm792_vm0, %v2087_v48 }
 0xcb1   : > { %7019 = vmatprep.mubr.msk.bf16.mxu1 %vm7440_vm1, %v7438_v4  ;;  %7018 = vmatpush3.bf16.msra.mxu1 %v7237_v50  ;;  %v7278_v7 = vpop.eup %7277 }
 0xcb2   : > { %7033 = vmatprep.subr.mxu1 %v7438_v4  ;;  %v2470_v12 = vmul.f32 %v7278_v7, %v7272_v39 }
 0xd4a   : > { %v8080_v51 = vpop.f32.mrb[34].mxu0 }
 0xd4b   : > { %v7068_v53 = vpop.f32.mrb[35].mxu0 }
 0xd4e   : > { %v8082_v56 = vpop.f32.mrb[36].mxu0 }
 0xd4f   : > { %v7079_v62 = vpop.f32.mrb[37].mxu0  ;;  %v3216_v16 = vsel %vm792_vm0, %v8082_v56, -inf }
 0xd52   : > { %v3212_v0 = vpop.f32.mrb[38].mxu0 }
 0xd53   : > { %v7084_v1 = vpop.f32.mrb[39].mxu0  ;;  %v3219_v2 = vsel %vm792_vm0, %v3212_v0, -inf }
 0xd54   : > { %3220 = vmax.xlane.f32.xlu0 %v3219_v2 }
 0xd6a   : > { %2472 = vrot.lane.b32.xlu0 %v7856_v49, %s7443_s23 }
 0xd6e   : > { %3445 = vrot.lane.b32.xlu0 %v7858_v52, %s7446_s1 }
 0xd72   : > { %3523 = vrot.lane.b32.xlu0 %v7861_v58, %s7446_s1 }
 0xd76   : > { %3521 = vrot.lane.b32.xlu0 %v7873_v60, %s7446_s1 }
 0xd83   : > { %v2161_v3 = vpop.f32.mrb[16].mxu1 }
 0xd84   : > { %v2241_v5 = vpack.c.bf16 %v7990_v27, %v2161_v3  ;;  %v7011_v6 = vpop.f32.mrb[17].mxu1 }
 0xd86   : > { %7020 = vmatmul.mubr.msk.bf16.vlgmr.msra.gmra.mrb[20].mxu1 %vm1156_vm2, %v2241_v5 }
 0xd87   : > { %7035 = vmatprep.mubr.msk.f32.mxu1 %vm7440_vm1, %v7438_v4 }
 0xde1   : > { %v3221_v57 = vpop.xlane.xlu0 %3220 }
 0xde2   : > { %v3223_v9 = vsub.f32 %v3212_v0, %v3221_v57 }
 0xde4   : > { %v3226_v11 = vmul.f32 1.442695, %v3223_v9 }
 0xde5   : > { %v2473_v13 = vpop.permute.xlu0 %2472 }
 0xde6   : > { %7279 = vpow2.f32 %v3226_v11  ;;  %7034 = vmatpush3.msra.mxu1 %v2473_v13 }
 0xde7   : > { %7036 = vmatmul.mubr.msk.f32.vlgmr.msra.gmra.mrb[18].mxu1 %vm792_vm0, %v2470_v12  ;;  %7043 = vmatprep.subr.bf16.mxu1 %v7438_v4 }
 0xde8   : > { %7045 = vmatprep.mubr.msk.bf16.mxu1 %vm7440_vm1, %v7438_v4  ;;  %7044 = vmatpush3.bf16.msra.mxu1 %v7238_v17 }
 0xde9   : > { %7059 = vmatprep.subr.mxu1 %v7438_v4  ;;  %v3446_v25 = vpop.permute.xlu0 %3445  ;;  %v8120_v4 = vld [vmem:[#allocation3] sm:$0xff] }
 0xded   : > { %v3524_v30 = vpop.permute.xlu0 %3523 }
 0xdf0   : > { %v7280_v27 = vpop.eup %7279 }
 0xdf1   : > { %v3231_v14 = vsel %vm792_vm0, %v7280_v27, 0.0 }
 0xdf2   : > { %3232 = vadd.xlane.f32.xlu1 %v3231_v14 }
 0xe03   : > { %3443 = vrot.lane.b32.xlu1 %v7866_v59, %s7446_s1 }
 0xe27   : > { %2834 = vmax.xlane.f32.xlu1 %v2833_v15 }
 0xe2b   : > { %3217 = vmax.xlane.f32.xlu1 %v3216_v16 }
 0xe59   : > { %v2285_v18 = vpop.f32.mrb[20].mxu1 }
 0xe5a   : > { %v8113_v19 = vadd.f32 %v2285_v18, %v8010_v54  ;;  %v7021_v20 = vpop.f32.mrb[21].mxu1 }
 0xe5b   : > { %v2288_v21 = vpop.f32.mrb[22].mxu1 }
 0xe5c   : > { %v8116_v22 = vadd.f32 %v2288_v21, %v8013_v63  ;;  %v7022_v23 = vpop.f32.mrb[23].mxu1  ;;  %v3522_v63 = vpop.permute.xlu0 %3521 }
 0xe7f   : > { %v3233_v24 = vpop.xlane.xlu1 %3232 }
 0xe80   : > { %7281 = vrcp.f32 %v3233_v24 }
 0xe83   : > { %v3444_v54 = vpop.permute.xlu1 %3443 }
 0xe8a   : > { %v7282_v26 = vpop.eup %7281 }
 0xe8b   : > { %v3237_v28 = vmul.f32 %v7282_v26, %v7280_v27 }
 0xe8d   : > { %7093 = vmatmul.mubr.msk.f32.vlgmr.msra.gmra.mrb[40].mxu0 %vm792_vm0, %v3237_v28 }
 0xe8e   : > { %7102 = vmatpush3.xpose.msk.msra.mxu0 %vm1156_vm2, %v3446_v25  ;;  %7103 = vmatprep.mubr.msk.f32.mxu0 %vm7440_vm1, %v8120_v4 }
 0xe8f   : > { %7106 = vmatprep.subr.mxu0 %v8120_v4 }
 0xe91   : > { %7104 = vmatmul.mubr.msk.f32.vlgmr.msra.gmra.mrb[42].mxu0 %vm1156_vm2, %v3444_v54 }
 0xe92   : > { %7107 = vmatpush3.xpose.msk.msra.mxu0 %vm1156_vm2, %v3524_v30  ;;  %7108 = vmatprep.mubr.msk.f32.mxu0 %vm7440_vm1, %v8120_v4  ;;  %v7240_v30 = vld [vmem:[%s8594_s5 + $0x28] sm:$0xff]  }
 0xe93   : > { %7116 = vmatprep.subr.mxu0 %v8120_v4 }
 0xe95   : > { %7109 = vmatmul.mubr.msk.f32.vlgmr.msra.gmra.mrb[44].mxu0 %vm1156_vm2, %v3522_v63 }
 0xe96   : > { %7118 = vmatprep.mubr.msk.f32.mxu0 %vm7440_vm1, %v8120_v4 }
 0xeb4   : > { %v2835_v32 = vpop.xlane.xlu1 %2834 }
 0xeb5   : > { %v2839_v36 = vsub.f32 %v8034_v10, %v2835_v32 }
 0xeb7   : > { %v2841_v37 = vmul.f32 1.442695, %v2839_v36 }
 0xeb8   : > { %v3218_v10 = vpop.xlane.xlu1 %3217 }
 0xeb9   : > { %7283 = vpow2.f32 %v2841_v37 }
 0xeba   : > { %v2544_v38 = vpop.f32.mrb[18].mxu1 }
 0xebb   : > { %v2624_v39 = vpack.c.bf16 %v8032_v8, %v2544_v38  ;;  %v7037_v40 = vpop.f32.mrb[19].mxu1  ;;  %v3222_v8 = vsub.f32 %v8082_v56, %v3218_v10 }
 0xebd   : > { %7046 = vmatmul.mubr.msk.bf16.vlgmr.msra.gmra.mrb[24].mxu1 %vm1156_vm2, %v2624_v39  ;;  %v3224_v29 = vmul.f32 1.442695, %v3222_v8 }
 0xebe   : > { %7061 = vmatprep.mubr.msk.f32.mxu1 %vm7440_vm1, %v8120_v4 }
 0xec3   : > { %v7284_v41 = vpop.eup %7283 }
 0xec4   : > { %v2845_v42 = vsel %vm792_vm0, %v7284_v41, 0.0 }
 0xec5   : > { %2846 = vadd.xlane.f32.xlu0 %v2845_v42 }
 0xedb   : > { %2855 = vrot.lane.b32.xlu0 %v7856_v49, %s7444_s25 }
 0xf52   : > { %v2847_v43 = vpop.xlane.xlu0 %2846 }
 0xf53   : > { %7285 = vrcp.f32 %v2847_v43 }
 0xf54   : > { %7287 = vpow2.f32 %v3224_v29 }
 0xf56   : > { %v2856_v44 = vpop.permute.xlu0 %2855 }
 0xf57   : > { %7060 = vmatpush3.msra.mxu1 %v2856_v44 }
 0xf58   : > { %7069 = vmatprep.subr.bf16.mxu1 %v8120_v4 }
 0xf5d   : > { %v7286_v45 = vpop.eup %7285 }
 0xf5e   : > { %v2853_v46 = vmul.f32 %v7286_v45, %v7284_v41  ;;  %v7288_v1 = vpop.eup %7287 }
 0xf5f   : > { %v3228_v2 = vsel %vm792_vm0, %v7288_v1, 0.0 }
 0xf60   : > { %7062 = vmatmul.mubr.msk.f32.vlgmr.msra.gmra.mrb[28].mxu1 %vm792_vm0, %v2853_v46  ;;  %v8144_v47 = vpop.f32.mrb[40].mxu0  ;;  %v7241_v46 = vld [vmem:[%s8594_s5 + $0x30] sm:$0xff]  }
 0xf61   : > { %v7094_v48 = vpop.f32.mrb[41].mxu0  ;;  %7071 = vmatprep.mubr.msk.bf16.mxu1 %vm7440_vm1, %v8120_v4 }
 0xf64   : > { %v3517_v50 = vpop.f32.mrb[42].mxu0 }
 0xf65   : > { %v7105_v53 = vpop.f32.mrb[43].mxu0 }
 0xf68   : > { %v3595_v62 = vpop.f32.mrb[44].mxu0 }
 0xf69   : > { %v7110_v0 = vpop.f32.mrb[45].mxu0  ;;  %v3602_v56 = vsel %vm792_vm0, %v3595_v62, -inf }
 0xf6a   : > { %3603 = vmax.xlane.f32.xlu1 %v3602_v56 }
 0xf6e   : > { %3229 = vadd.xlane.f32.xlu1 %v3228_v2 }
 0xf7f   : > { %3238 = vrot.lane.b32.xlu1 %v7856_v49, %s7445_s20 }
 0xf83   : > { %3697 = vrot.lane.b32.xlu1 %v7880_v61, %s7446_s1 }
 0xf87   : > { %3828 = vrot.lane.b32.xlu1 %v7858_v52, %s7447_s22  ;;  %v7239_v52 = vld [vmem:[%s8594_s5 + $0x20] sm:$0xff]  }
 0xf88   : > { %7070 = vmatpush3.bf16.msra.mxu1 %v7239_v52 }
 0xf89   : > { %7085 = vmatprep.subr.mxu1 %v8120_v4 }
 0xf8b   : > { %3826 = vrot.lane.b32.xlu1 %v7866_v59, %s7447_s22 }
 0xf8f   : > { %3906 = vrot.lane.b32.xlu1 %v7861_v58, %s7447_s22  ;;  %v3599_v58 = vsel %vm792_vm0, %v3517_v50, -inf }
 0xf90   : > { %v2668_v3 = vpop.f32.mrb[24].mxu1 }
 0xf91   : > { %v8161_v5 = vadd.f32 %v2668_v3, %v8113_v19  ;;  %v7047_v6 = vpop.f32.mrb[25].mxu1 }
 0xf92   : > { %v2671_v55 = vpop.f32.mrb[26].mxu1 }
 0xf93   : > { %v8164_v57 = vadd.f32 %v2671_v55, %v8116_v22  ;;  %v7048_v7 = vpop.f32.mrb[27].mxu1  ;;  %3904 = vrot.lane.b32.xlu1 %v7873_v60, %s7447_s22 }
 0xfb7   : > { %3600 = vmax.xlane.f32.xlu1 %v3599_v58 }
 0xff7   : > { %v3604_v59 = vpop.xlane.xlu1 %3603 }
 0xff8   : > { %v3606_v9 = vsub.f32 %v3595_v62, %v3604_v59 }
 0xffa   : > { %v3609_v11 = vmul.f32 1.442695, %v3606_v9 }
 0xffb   : > { %v3230_v12 = vpop.xlane.xlu1 %3229 }
 0xffc   : > { %7289 = vpow2.f32 %v3609_v11 }
 0xffd   : > { %7291 = vrcp.f32 %v3230_v12 }
 0xfff   : > { %v3239_v13 = vpop.permute.xlu1 %3238 }
0x1003   : > { %v3698_v27 = vpop.permute.xlu1 %3697 }
0x1004   : > { %7117 = vmatpush3.msra.mxu0 %v3698_v27 }
0x1005   : > { %7127 = vmatprep.subr.mxu0 %v8120_v4 }
0x1006   : > { %v7290_v60 = vpop.eup %7289 }
0x1007   : > { %v3614_v14 = vsel %vm792_vm0, %v7290_v60, 0.0  ;;  %v3829_v15 = vpop.permute.xlu1 %3828  ;;  %v7292_v20 = vpop.eup %7291 }
0x1008   : > { %3615 = vadd.xlane.f32.xlu0 %v3614_v14  ;;  %v3236_v22 = vmul.f32 %v7292_v20, %v7288_v1 }
0x100b   : > { %v3827_v17 = vpop.permute.xlu1 %3826 }
0x100f   : > { %v3907_v21 = vpop.permute.xlu1 %3906 }
0x1013   : > { %v3905_v23 = vpop.permute.xlu1 %3904 }
0x1033   : > { %v2927_v16 = vpop.f32.mrb[28].mxu1 }
0x1034   : > { %v3007_v18 = vpack.c.bf16 %v8080_v51, %v2927_v16  ;;  %v7063_v19 = vpop.f32.mrb[29].mxu1 }
0x1036   : > { %7072 = vmatmul.mubr.msk.bf16.vlgmr.msra.gmra.mrb[32].mxu1 %vm1156_vm2, %v3007_v18 }
0x1037   : > { %7086 = vmatpush3.msra.mxu1 %v3239_v13  ;;  %7087 = vmatprep.mubr.msk.f32.mxu1 %vm7440_vm1, %v8120_v4 }
0x1038   : > { %7095 = vmatprep.subr.bf16.mxu1 %v8120_v4 }
0x103e   : > { %7088 = vmatmul.mubr.msk.f32.vlgmr.msra.gmra.mrb[30].mxu1 %vm792_vm0, %v3236_v22 }
0x103f   : > { %7097 = vmatprep.mubr.msk.bf16.mxu1 %vm7440_vm1, %v8120_v4  ;;  %7096 = vmatpush3.bf16.msra.mxu1 %v7240_v30  ;;  %v7242_v30 = vld [vmem:[%s8594_s5 + $0x38] sm:$0xff]  }
0x1040   : > { %7111 = vmatprep.subr.mxu1 %v8120_v4 }
0x1044   : > { %v3601_v24 = vpop.xlane.xlu1 %3600 }
0x1045   : > { %v3605_v51 = vsub.f32 %v3517_v50, %v3601_v24 }
0x1047   : > { %v3607_v25 = vmul.f32 1.442695, %v3605_v51 }
0x1049   : > { %7293 = vpow2.f32 %v3607_v25 }
0x1053   : > { %v7294_v26 = vpop.eup %7293 }
0x1054   : > { %v3611_v28 = vsel %vm792_vm0, %v7294_v26, 0.0 }
0x1055   : > { %3612 = vadd.xlane.f32.xlu0 %v3611_v28 }
0x106b   : > { %3621 = vrot.lane.b32.xlu0 %v7856_v49, %s7446_s1 }
0x1095   : > { %v3616_v54 = vpop.xlane.xlu0 %3615 }
0x1096   : > { %7295 = vrcp.f32 %v3616_v54 }
0x10a0   : > { %v7296_v63 = vpop.eup %7295 }
0x10a1   : > { %v3620_v32 = vmul.f32 %v7296_v63, %v7290_v60 }
0x10a3   : > { %7119 = vmatmul.mubr.msk.f32.vlgmr.msra.gmra.mrb[46].mxu0 %vm792_vm0, %v3620_v32 }
0x10a4   : > { %7128 = vmatpush3.xpose.msk.msra.mxu0 %vm1156_vm2, %v3829_v15  ;;  %7129 = vmatprep.mubr.msk.f32.mxu0 %vm7440_vm1, %v8120_v4 }
0x10a5   : > { %7132 = vmatprep.subr.mxu0 %v8120_v4 }
0x10a7   : > { %7130 = vmatmul.mubr.msk.f32.vlgmr.msra.gmra.mrb[48].mxu0 %vm1156_vm2, %v3827_v17 }
0x10a8   : > { %7133 = vmatpush3.xpose.msk.msra.mxu0 %vm1156_vm2, %v3907_v21  ;;  %7134 = vmatprep.mubr.msk.f32.mxu0 %vm7440_vm1, %v8120_v4 }
0x10a9   : > { %7142 = vmatprep.subr.mxu0 %v8120_v4 }
0x10ab   : > { %7135 = vmatmul.mubr.msk.f32.vlgmr.msra.gmra.mrb[50].mxu0 %vm1156_vm2, %v3905_v23 }
0x10ac   : > { %7144 = vmatprep.mubr.msk.f32.mxu0 %vm7440_vm1, %v8120_v4 }
0x10e2   : > { %v3613_v37 = vpop.xlane.xlu0 %3612 }
0x10e3   : > { %7297 = vrcp.f32 %v3613_v37 }
0x10e6   : > { %v3622_v8 = vpop.permute.xlu0 %3621 }
0x10ed   : > { %v7298_v29 = vpop.eup %7297 }
0x10ee   : > { %v3619_v45 = vmul.f32 %v7298_v29, %v7294_v26 }
0x1109   : > { %v3051_v36 = vpop.f32.mrb[32].mxu1 }
0x110a   : > { %v3058_v38 = vadd.f32 %v3051_v36, %v8161_v5  ;;  %v7073_v39 = vpop.f32.mrb[33].mxu1 }
0x110b   : > { %v3054_v40 = vpop.f32.mrb[34].mxu1 }
0x110c   : > { %v3059_v41 = vadd.f32 %v3054_v40, %v8164_v57  ;;  %v7074_v42 = vpop.f32.mrb[35].mxu1 }
0x1111   : > { %v3310_v43 = vpop.f32.mrb[30].mxu1 }
0x1112   : > { %v3390_v10 = vpack.c.bf16 %v8144_v47, %v3310_v43  ;;  %v7089_v44 = vpop.f32.mrb[31].mxu1 }
0x1114   : > { %7098 = vmatmul.mubr.msk.bf16.vlgmr.msra.gmra.mrb[36].mxu1 %vm1156_vm2, %v3390_v10 }
0x1115   : > { %7112 = vmatpush3.msra.mxu1 %v3622_v8  ;;  %7113 = vmatprep.mubr.msk.f32.mxu1 %vm7440_vm1, %v8120_v4 }
0x1116   : > { %7121 = vmatprep.subr.bf16.mxu1 %v8120_v4 }
0x111c   : > { %7114 = vmatmul.mubr.msk.f32.vlgmr.msra.gmra.mrb[40].mxu1 %vm792_vm0, %v3619_v45 }
0x111d   : > { %7123 = vmatprep.mubr.msk.bf16.mxu1 %vm7440_vm1, %v8120_v4  ;;  %7122 = vmatpush3.bf16.msra.mxu1 %v7241_v46 }
0x111e   : > { %7137 = vmatprep.subr.mxu1 %v8120_v4 }
0x1176   : > { %v3769_v47 = vpop.f32.mrb[46].mxu0 }
0x1177   : > { %v7120_v48 = vpop.f32.mrb[47].mxu0 }
0x117a   : > { %v3900_v50 = vpop.f32.mrb[48].mxu0 }
0x117b   : > { %v7131_v53 = vpop.f32.mrb[49].mxu0  ;;  %v3982_v62 = vsel %vm792_vm0, %v3900_v50, -inf }
0x117c   : > { %3983 = vmax.xlane.f32.xlu0 %v3982_v62 }
0x117e   : > { %v3978_v0 = vpop.f32.mrb[50].mxu0 }
0x117f   : > { %v7136_v56 = vpop.f32.mrb[51].mxu0  ;;  %v3985_v1 = vsel %vm792_vm0, %v3978_v0, -inf }
0x1180   : > { %3986 = vmax.xlane.f32.xlu1 %v3985_v1 }
0x1192   : > { %4080 = vrot.lane.b32.xlu0 %v7880_v61, %s7447_s22 }
0x11e7   : > { %v3434_v2 = vpop.f32.mrb[36].mxu1 }
0x11e8   : > { %v3441_v3 = vadd.f32 %v3434_v2, %v3058_v38  ;;  %v7099_v5 = vpop.f32.mrb[37].mxu1  ;;  %v6599_v38 = vld [vmem:[%s8595_s6] ss:$0 sm:$0xff] }
0x11e9   : > { %v3437_v6 = vpop.f32.mrb[38].mxu1 }
0x11ea   : > { %v3442_v55 = vadd.f32 %v3437_v6, %v3059_v41  ;;  %v7100_v57 = vpop.f32.mrb[39].mxu1  ;;  %v6601_v6 = vld [vmem:[%s8597_s8] ss:$0 sm:$0xff] }
0x11ef   : > { %v3693_v7 = vpop.f32.mrb[40].mxu1 }
0x11f0   : > { %v3773_v52 = vpack.c.bf16 %v3769_v47, %v3693_v7  ;;  %v7115_v58 = vpop.f32.mrb[41].mxu1 }
0x11f2   : > { %7124 = vmatmul.mubr.msk.bf16.vlgmr.msra.gmra.mrb[44].mxu1 %vm1156_vm2, %v3773_v52 }
0x11f3   : > { %7139 = vmatprep.mubr.msk.f32.mxu1 %vm7440_vm1, %v8120_v4 }
0x1209   : > { %v3984_v59 = vpop.xlane.xlu0 %3983 }
0x120a   : > { %v3988_v9 = vsub.f32 %v3900_v50, %v3984_v59 }
0x120c   : > { %v3990_v11 = vmul.f32 1.442695, %v3988_v9 }
0x120d   : > { %v4081_v12 = vpop.permute.xlu0 %4080  ;;  %v3987_v13 = vpop.xlane.xlu1 %3986 }
0x120e   : > { %7299 = vpow2.f32 %v3990_v11  ;;  %v3989_v61 = vsub.f32 %v3978_v0, %v3987_v13  ;;  %7143 = vmatpush3.msra.mxu0 %v4081_v12 }
0x1210   : > { %v3992_v27 = vmul.f32 1.442695, %v3989_v61 }
0x1212   : > { %7301 = vpow2.f32 %v3992_v27 }
0x1218   : > { %v7300_v60 = vpop.eup %7299 }
0x1219   : > { %v3994_v14 = vsel %vm792_vm0, %v7300_v60, 0.0 }
0x121a   : > { %3995 = vadd.xlane.f32.xlu1 %v3994_v14 }
0x121c   : > { %v7302_v15 = vpop.eup %7301 }
0x121d   : > { %v3997_v16 = vsel %vm792_vm0, %v7302_v15, 0.0 }
0x121e   : > { %3998 = vadd.xlane.f32.xlu1 %v3997_v16 }
0x122f   : > { %4004 = vrot.lane.b32.xlu1 %v7856_v49, %s7447_s22 }
0x12a7   : > { %v3996_v17 = vpop.xlane.xlu1 %3995 }
0x12a8   : > { %7303 = vrcp.f32 %v3996_v17 }
0x12ab   : > { %v3999_v18 = vpop.xlane.xlu1 %3998 }
0x12ac   : > { %7305 = vrcp.f32 %v3999_v18 }
0x12af   : > { %v4005_v19 = vpop.permute.xlu1 %4004 }
0x12b0   : > { %7138 = vmatpush3.msra.mxu1 %v4005_v19 }
0x12b1   : > { %7147 = vmatprep.subr.bf16.mxu1 %v8120_v4 }
0x12b2   : > { %v7304_v20 = vpop.eup %7303 }
0x12b3   : > { %v4002_v21 = vmul.f32 %v7304_v20, %v7300_v60 }
0x12b5   : > { %7140 = vmatmul.mubr.msk.f32.vlgmr.msra.gmra.mrb[42].mxu1 %vm792_vm0, %v4002_v21 }
0x12b6   : > { %v7306_v22 = vpop.eup %7305  ;;  %7149 = vmatprep.mubr.msk.bf16.mxu1 %vm7440_vm1, %v8120_v4  ;;  %7148 = vmatpush3.bf16.msra.mxu1 %v7242_v30 }
0x12b7   : > { %v4003_v23 = vmul.f32 %v7306_v22, %v7302_v15 }
0x12b9   : > { %7145 = vmatmul.mubr.msk.f32.vlgmr.msra.gmra.mrb[52].mxu0 %vm792_vm0, %v4003_v23 }
0x12c5   : > { %v3817_v49 = vpop.f32.mrb[44].mxu1 }
0x12c6   : > { %v3824_v24 = vadd.f32 %v3817_v49, %v3441_v3  ;;  %v7125_v51 = vpop.f32.mrb[45].mxu1 }
0x12c7   : > { %v3820_v25 = vpop.f32.mrb[46].mxu1 }
0x12c8   : > { %v3825_v26 = vadd.f32 %v3820_v25, %v3442_v55  ;;  %v7126_v28 = vpop.f32.mrb[47].mxu1 }
0x1388   : > { %v4076_v54 = vpop.f32.mrb[42].mxu1 }
0x1389   : > { %v7141_v63 = vpop.f32.mrb[43].mxu1 }
0x138c   : > { %v4152_v32 = vpop.f32.mrb[52].mxu0 }
0x138d   : > { %v4156_v36 = vpack.c.bf16 %v4152_v32, %v4076_v54  ;;  %v7146_v37 = vpop.f32.mrb[53].mxu0 }
0x138f   : > { %7150 = vmatmul.mubr.msk.bf16.vlgmr.msra.gmra.mrb[48].mxu1 %vm1156_vm2, %v4156_v36 }
0x1462   : > { %v4200_v4 = vpop.f32.mrb[48].mxu1 }
0x1463   : > { %v4207_v39 = vadd.f32 %v4200_v4, %v3824_v24  ;;  %v7151_v40 = vpop.f32.mrb[49].mxu1 }
0x1464   : > { %v4203_v41 = vpop.f32.mrb[50].mxu1 }
0x1465   : > { %v4216_v42 = vadd.f32 %v6599_v38, %v4207_v39  ;;  %v4208_v43 = vadd.f32 %v4203_v41, %v3825_v26  ;;  %v7152_v10 = vpop.f32.mrb[51].mxu1 }
0x1467   : > { %v4217_v44 = vadd.f32 %v6599_v38, %v4208_v43  ;;  %v4218_v8 = vadd.f32 %v4216_v42, %v874_v35 }
0x1469   : > { %4222 = vadd.xlane.f32.xlu1 %v4218_v8  ;;  %v4219_v29 = vadd.f32 %v4217_v44, %v875_v34  ;;  %v6600_v34 = vld [vmem:[%s8596_s7] ss:$0 sm:$0xff] }
0x146b   : > { %4224 = vadd.xlane.f32.xlu0 %v4219_v29 }
0x14f6   : > { %v4223_v45 = vpop.xlane.xlu1 %4222 }
0x14f7   : > { %v4227_v46 = vmul.f32 0.0078125, %v4223_v45 }
0x14f8   : > { %v4225_v47 = vpop.xlane.xlu0 %4224 }
0x14f9   : > { %v4229_v48 = vsub.f32 %v4218_v8, %v4227_v46  ;;  %v4228_v50 = vmul.f32 0.0078125, %v4225_v47 }
0x14fb   : > { %v4230_v53 = vsub.f32 %v4219_v29, %v4228_v50  ;;  %v4231_v62 = vmul.f32 %v4229_v48, %v4229_v48 }
0x14fd   : > { %4233 = vadd.xlane.f32.xlu1 %v4231_v62  ;;  %v4232_v0 = vmul.f32 %v4230_v53, %v4230_v53 }
0x1501   : > { %4235 = vadd.xlane.f32.xlu1 %v4232_v0 }
0x158a   : > { %v4234_v56 = vpop.xlane.xlu1 %4233 }
0x158b   : > { %v4237_v1 = vmul.f32 0.0078125, %v4234_v56 }
0x158d   : > { %v4239_v2 = vadd.f32 1e-05, %v4237_v1 }
0x158e   : > { %v4236_v33 = vpop.xlane.xlu1 %4235 }
0x158f   : > { %7307 = vrsqrt.f32 %v4239_v2  ;;  %v4238_v35 = vmul.f32 0.0078125, %v4236_v33 }
0x1591   : > { %v4240_v3 = vadd.f32 1e-05, %v4238_v35 }
0x1593   : > { %7309 = vrsqrt.f32 %v4240_v3 }
0x1599   : > { %v7308_v31 = vpop.eup %7307 }
0x159a   : > { %v4243_v5 = vmul.f32 %v7308_v31, %v4229_v48 }
0x159c   : > { %v4251_v55 = vmul.f32 %v6600_v34, %v4243_v5 }
0x159d   : > { %v7310_v57 = vpop.eup %7309 }
0x159e   : > { %v4259_v7 = vadd.f32 %v6601_v6, %v4251_v55  ;;  %v4244_v52 = vmul.f32 %v7310_v57, %v4230_v53 }
0x15a0   : > { %4261 = vst [vmem:[#allocation2] sm:$0xff] %v4259_v7  ;;  %v4252_v58 = vmul.f32 %v6600_v34, %v4244_v52 }
0x15a2   : > { %v4260_v59 = vadd.f32 %v6601_v6, %v4252_v58 }
0x15a4   : > { %4262 = vst [vmem:[#allocation2 + $0x8] sm:$0xff] %v4260_v59 }
0x15a5 PF: > { %v4268_v9 = vld [vmem:[%s7736_s0] sm:$0xff]  ;;  %v4269_v12 = vld [vmem:[%s7736_s0 + $0x8] sm:$0xff]  ;;  %v7448_v15 = vmov 0   ;;  %v4270_v7 = vld [vmem:[%s7736_s0 + $0x10] sm:$0xff]  ;;  %p6730_p11 = scmp.ne.s32.totalorder %s7568_s21, 1 }
0x15a6   : > { %v4272_v11 = vld [vmem:[%s7736_s0 + $0x20] sm:$0xff]  ;;  %v4273_v61 = vld [vmem:[%s7736_s0 + $0x28] sm:$0xff]  ;;  %4726 = vmatprep.mubr.bf16.mxu0 %v7448_v15  ;;  %4769 = vmatprep.mubr.bf16.mxu1 %v7448_v15  ;;  %v4274_v59 = vld [vmem:[%s7736_s0 + $0x30] sm:$0xff]  ;;  %vm5694_vm3 = vcmask (!%p6730_p11), 1041408   ;;  %vm6421_vm4 = vcmask (!%p6730_p11), 9216  }
0x15a7   : > { %v6603_v13 = vcombine.high %v4268_v9, %v4272_v11  ;;  %v6602_v27 = vcombine.low %v4268_v9, %v4272_v11  ;;  %v4276_v60 = vld [vmem:[%s7736_s0 + $0x40] sm:$0xff]  ;;  %v6605_v16 = vcombine.high %v4269_v12, %v4273_v61  ;;  %v6604_v17 = vcombine.low %v4269_v12, %v4273_v61  ;;  %v4277_v19 = vld [vmem:[%s7736_s0 + $0x48] sm:$0xff]  ;;  %v4275_v61 = vld [vmem:[%s7736_s0 + $0x38] sm:$0xff] }
0x15a8   : > { %v4280_v14 = vld [vmem:[%s7736_s0 + $0x60] sm:$0xff]  ;;  %v4281_v20 = vld [vmem:[%s7736_s0 + $0x68] sm:$0xff] }
0x15a9   : > { %v6611_v18 = vcombine.high %v4276_v60, %v4280_v14  ;;  %v4284_v21 = vld [vmem:[%s7736_s0 + $0x80] sm:$0xff]  ;;  %4694 = vmatprep.subr.bf16.mxu0 %v6603_v13  ;;  %v6613_v22 = vcombine.high %v4277_v19, %v4281_v20  ;;  %v4285_v49 = vld [vmem:[%s7736_s0 + $0x88] sm:$0xff]  ;;  %4737 = vmatprep.subr.bf16.mxu1 %v6605_v16  ;;  %v6610_v51 = vcombine.low %v4276_v60, %v4280_v14  ;;  %v4271_v13 = vld [vmem:[%s7736_s0 + $0x18] sm:$0xff] }
0x15aa   : > { %v4288_v23 = vld [vmem:[%s7736_s0 + $0xa0] sm:$0xff]  ;;  %v4289_v24 = vld [vmem:[%s7736_s0 + $0xa8] sm:$0xff]  ;;  %4695 = vmatpush1.bf16.msra.mxu0 %v6602_v27  ;;  %4738 = vmatpush1.bf16.msra.mxu1 %v6604_v17  ;;  %v6612_v25 = vcombine.low %v4277_v19, %v4281_v20  ;;  %v4278_v60 = vld [vmem:[%s7736_s0 + $0x50] sm:$0xff]  ;;  %v6607_v16 = vcombine.high %v4270_v7, %v4274_v59 }
0x15ab   : > { %4696 = vmatprep.subr.bf16.mxu0 %v6611_v18  ;;  %v6619_v26 = vcombine.high %v4284_v21, %v4288_v23  ;;  %4739 = vmatprep.subr.bf16.mxu1 %v6613_v22  ;;  %v6621_v28 = vcombine.high %v4285_v49, %v4289_v24  ;;  %v4292_v30 = vld [vmem:[%s7736_s0 + $0xc0] sm:$0xff]  ;;  %v4293_v63 = vld [vmem:[%s7736_s0 + $0xc8] sm:$0xff]  ;;  %v6618_v36 = vcombine.low %v4284_v21, %v4288_v23  ;;  %v4282_v17 = vld [vmem:[%s7736_s0 + $0x70] sm:$0xff] }
0x15ac   : > { %v4296_v54 = vld [vmem:[%s7736_s0 + $0xe0] sm:$0xff]  ;;  %v4297_v32 = vld [vmem:[%s7736_s0 + $0xe8] sm:$0xff]  ;;  %v6620_v37 = vcombine.low %v4285_v49, %v4289_v24  ;;  %v6609_v18 = vcombine.high %v4271_v13, %v4275_v61  ;;  %v4279_v19 = vld [vmem:[%s7736_s0 + $0x58] sm:$0xff]  ;;  %v6606_v22 = vcombine.low %v4270_v7, %v4274_v59  ;;  %v6608_v49 = vcombine.low %v4271_v13, %v4275_v61 }
0x15ad   : > { %v6627_v4 = vcombine.high %v4292_v30, %v4296_v54  ;;  %v6629_v38 = vcombine.high %v4293_v63, %v4297_v32  ;;  %v4300_v39 = vld [vmem:[%s7736_s0 + $0x100] sm:$0xff]  ;;  %v4301_v41 = vld [vmem:[%s7736_s0 + $0x108] sm:$0xff]  ;;  %v6626_v43 = vcombine.low %v4292_v30, %v4296_v54  ;;  %v6628_v10 = vcombine.low %v4293_v63, %v4297_v32  ;;  %v4283_v21 = vld [vmem:[%s7736_s0 + $0x78] sm:$0xff] }
0x15ae   : > { %4697 = vmatpush1.bf16.msra.mxu0 %v6610_v51  ;;  %4740 = vmatpush1.bf16.msra.mxu1 %v6612_v25  ;;  %v4304_v40 = vld [vmem:[%s7736_s0 + $0x120] sm:$0xff]  ;;  %v4305_v42 = vld [vmem:[%s7736_s0 + $0x128] sm:$0xff]  ;;  %v4286_v23 = vld [vmem:[%s7736_s0 + $0x90] sm:$0xff]  ;;  %v6615_v24 = vcombine.high %v4278_v60, %v4282_v17  ;;  %v6617_v25 = vcombine.high %v4279_v19, %v4283_v21  ;;  %v6614_v30 = vcombine.low %v4278_v60, %v4282_v17 }
0x15af   : > { %4698 = vmatprep.subr.bf16.mxu0 %v6619_v26  ;;  %4741 = vmatprep.subr.bf16.mxu1 %v6621_v28  ;;  %v6635_v44 = vcombine.high %v4300_v39, %v4304_v40  ;;  %v6637_v8 = vcombine.high %v4301_v41, %v4305_v42  ;;  %v4308_v29 = vld [vmem:[%s7736_s0 + $0x140] sm:$0xff]  ;;  %v4309_v46 = vld [vmem:[%s7736_s0 + $0x148] sm:$0xff]  ;;  %v6634_v48 = vcombine.low %v4300_v39, %v4304_v40  ;;  %v4290_v51 = vld [vmem:[%s7736_s0 + $0xb0] sm:$0xff] }
0x15b0   : > { %v4312_v45 = vld [vmem:[%s7736_s0 + $0x160] sm:$0xff]  ;;  %v4313_v47 = vld [vmem:[%s7736_s0 + $0x168] sm:$0xff]  ;;  %v6636_v50 = vcombine.low %v4301_v41, %v4305_v42  ;;  %v4287_v26 = vld [vmem:[%s7736_s0 + $0x98] sm:$0xff]  ;;  %v6616_v63 = vcombine.low %v4279_v19, %v4283_v21  ;;  %v6623_v32 = vcombine.high %v4286_v23, %v4290_v51  ;;  %v6622_v39 = vcombine.low %v4286_v23, %v4290_v51 }
0x15b1   : > { %v6643_v53 = vcombine.high %v4308_v29, %v4312_v45  ;;  %v6645_v62 = vcombine.high %v4309_v46, %v4313_v47  ;;  %v4316_v0 = vld [vmem:[%s7736_s0 + $0x180] sm:$0xff]  ;;  %v4317_v1 = vld [vmem:[%s7736_s0 + $0x188] sm:$0xff]  ;;  %v6642_v33 = vcombine.low %v4308_v29, %v4312_v45  ;;  %v6644_v35 = vcombine.low %v4309_v46, %v4313_v47  ;;  %v4291_v28 = vld [vmem:[%s7736_s0 + $0xb8] sm:$0xff] }
0x15b2   : > { %4699 = vmatpush1.bf16.msra.mxu0 %v6618_v36  ;;  %4742 = vmatpush1.bf16.msra.mxu1 %v6620_v37  ;;  %v4320_v56 = vld [vmem:[%s7736_s0 + $0x1a0] sm:$0xff]  ;;  %v4321_v2 = vld [vmem:[%s7736_s0 + $0x1a8] sm:$0xff]  ;;  %v4294_v54 = vld [vmem:[%s7736_s0 + $0xd0] sm:$0xff]  ;;  %v6625_v37 = vcombine.high %v4287_v26, %v4291_v28  ;;  %v6624_v41 = vcombine.low %v4287_v26, %v4291_v28 }
0x15b3   : > { %4700 = vmatprep.subr.bf16.mxu0 %v6627_v4  ;;  %4743 = vmatprep.subr.bf16.mxu1 %v6629_v38  ;;  %v6651_v3 = vcombine.high %v4316_v0, %v4320_v56  ;;  %v4324_v31 = vld [vmem:[%s7736_s0 + $0x1c0] sm:$0xff]  ;;  %v6653_v5 = vcombine.high %v4317_v1, %v4321_v2  ;;  %v4325_v6 = vld [vmem:[%s7736_s0 + $0x1c8] sm:$0xff]  ;;  %v6650_v57 = vcombine.low %v4316_v0, %v4320_v56  ;;  %v4298_v36 = vld [vmem:[%s7736_s0 + $0xf0] sm:$0xff] }
0x15b4   : > { %v4328_v34 = vld [vmem:[%s7736_s0 + $0x1e0] sm:$0xff]  ;;  %v4329_v55 = vld [vmem:[%s7736_s0 + $0x1e8] sm:$0xff]  ;;  %v6652_v52 = vcombine.low %v4317_v1, %v4321_v2  ;;  %v4295_v4 = vld [vmem:[%s7736_s0 + $0xd8] sm:$0xff]  ;;  %v6631_v42 = vcombine.high %v4294_v54, %v4298_v36  ;;  %v6630_v29 = vcombine.low %v4294_v54, %v4298_v36 }
0x15b5   : > { %v6659_v58 = vcombine.high %v4324_v31, %v4328_v34  ;;  %v6661_v9 = vcombine.high %v4325_v6, %v4329_v55  ;;  %v4265_v11 = vld [vmem:[#allocation2] sm:$0xff]  ;;  %v4266_v12 = vld [vmem:[#allocation2 + $0x8] sm:$0xff]  ;;  %v6658_v27 = vcombine.low %v4324_v31, %v4328_v34  ;;  %v6660_v14 = vcombine.low %v4325_v6, %v4329_v55  ;;  %v4299_v38 = vld [vmem:[%s7736_s0 + $0xf8] sm:$0xff] }
0x15b6   : > { %4701 = vmatpush1.bf16.msra.mxu0 %v6626_v43  ;;  %4744 = vmatpush1.bf16.msra.mxu1 %v6628_v10  ;;  %v8291_v20 = vpack.c.bf16 %v4266_v12, %v4265_v11  ;;  %v4302_v40 = vld [vmem:[%s7736_s0 + $0x110] sm:$0xff]  ;;  %v6633_v10 = vcombine.high %v4295_v4, %v4299_v38  ;;  %v6632_v46 = vcombine.low %v4295_v4, %v4299_v38  ;;  %v4331_v7 = vld [vmem:[%s7736_s0 + $0x1f8] sm:$0xff]  ;;  %v7312_v12 = vld [vmem:[%s7734_s9 + $0x40] sm:$0xff]  }
0x15b7   : > { %4702 = vmatprep.subr.bf16.mxu0 %v6635_v44  ;;  %4745 = vmatprep.subr.bf16.mxu1 %v6637_v8  ;;  %v4306_v43 = vld [vmem:[%s7736_s0 + $0x130] sm:$0xff]  ;;  %v4303_v44 = vld [vmem:[%s7736_s0 + $0x118] sm:$0xff]  ;;  %v7313_v61 = vld [vmem:[%s7734_s9 + $0xc0] sm:$0xff]  }
0x15b8   : > { %v4307_v8 = vld [vmem:[%s7736_s0 + $0x138] sm:$0xff]  ;;  %v4314_v45 = vld [vmem:[%s7736_s0 + $0x170] sm:$0xff]  ;;  %v6639_v47 = vcombine.high %v4302_v40, %v4306_v43  ;;  %v7314_v60 = vld [vmem:[%s7734_s9] sm:$0xff]  }
0x15b9   : > { %v4318_v0 = vld [vmem:[%s7736_s0 + $0x190] sm:$0xff]  ;;  %v6640_v1 = vcombine.low %v4303_v44, %v4307_v8  ;;  %v7317_v17 = vld [vmem:[%s7734_s9 + $0xc8] sm:$0xff]   ;;  %v7325_v51 = vld [vmem:[%s7734_s9 + $0xd8] sm:$0xff]  }
0x15ba   : > { %4703 = vmatpush1.bf16.msra.mxu0 %v6634_v48  ;;  %4746 = vmatpush1.bf16.msra.mxu1 %v6636_v50  ;;  %v4311_v48 = vld [vmem:[%s7736_s0 + $0x158] sm:$0xff]  ;;  %v4322_v56 = vld [vmem:[%s7736_s0 + $0x1b0] sm:$0xff]  ;;  %v7319_v19 = vld [vmem:[%s7734_s9 + $0x88] sm:$0xff]  }
0x15bb   : > { %4704 = vmatprep.subr.bf16.mxu0 %v6643_v53  ;;  %4747 = vmatprep.subr.bf16.mxu1 %v6645_v62  ;;  %v4315_v50 = vld [vmem:[%s7736_s0 + $0x178] sm:$0xff]  ;;  %v6641_v53 = vcombine.high %v4303_v44, %v4307_v8  ;;  %v6638_v62 = vcombine.low %v4302_v40, %v4306_v43  ;;  %v4326_v34 = vld [vmem:[%s7736_s0 + $0x1d0] sm:$0xff]  ;;  %v6655_v55 = vcombine.high %v4318_v0, %v4322_v56  ;;  %v7328_v26 = vld [vmem:[%s7734_s9 + $0x60] sm:$0xff]  }
0x15bc   : > { %v6648_v6 = vcombine.low %v4311_v48, %v4315_v50  ;;  %v7320_v21 = vld [vmem:[%s7734_s9 + $0x50] sm:$0xff]   ;;  %v7329_v28 = vld [vmem:[%s7734_s9 + $0xe0] sm:$0xff]   ;;  %v7334_v36 = vld [vmem:[%s7734_s9 + $0x28] sm:$0xff]  }
0x15bd   : > { %v7322_v23 = vld [vmem:[%s7734_s9 + $0x10] sm:$0xff]   ;;  %v7331_v54 = vld [vmem:[%s7734_s9 + $0xa0] sm:$0xff]   ;;  %v7342_v43 = vld [vmem:[%s7734_s9 + $0x38] sm:$0xff]  }
0x15be   : > { %4705 = vmatpush1.bf16.msra.mxu0 %v6642_v33  ;;  %4748 = vmatpush1.bf16.msra.mxu1 %v6644_v35  ;;  %v4319_v33 = vld [vmem:[%s7736_s0 + $0x198] sm:$0xff]  ;;  %v7336_v4 = vld [vmem:[%s7734_s9 + $0x70] sm:$0xff]   ;;  %v7344_v44 = vld [vmem:[%s7734_s9 + $0x140] sm:$0xff]  }
0x15bf   : > { %4706 = vmatprep.subr.bf16.mxu0 %v6651_v3  ;;  %4749 = vmatprep.subr.bf16.mxu1 %v6653_v5  ;;  %v4323_v35 = vld [vmem:[%s7736_s0 + $0x1b8] sm:$0xff]  ;;  %v6649_v3 = vcombine.high %v4311_v48, %v4315_v50  ;;  %v4330_v5 = vld [vmem:[%s7736_s0 + $0x1f0] sm:$0xff]  ;;  %v7345_v8 = vld [vmem:[%s7734_s9 + $0x1c0] sm:$0xff]  }
0x15c0   : > { %v6656_v59 = vcombine.low %v4319_v33, %v4323_v35  ;;  %v6662_v13 = vcombine.low %v4326_v34, %v4330_v5  ;;  %v7337_v38 = vld [vmem:[%s7734_s9 + $0xf0] sm:$0xff]  }
0x15c1   : > { %v7339_v40 = vld [vmem:[%s7734_s9 + $0xb0] sm:$0xff]  }
0x15c2   : > { %4707 = vmatpush1.bf16.msra.mxu0 %v6650_v57  ;;  %4750 = vmatpush1.bf16.msra.mxu1 %v6652_v52  ;;  %v4327_v57 = vld [vmem:[%s7736_s0 + $0x1d8] sm:$0xff]  ;;  %v6657_v52 = vcombine.high %v4319_v33, %v4323_v35 }
0x15c3   : > { %4708 = vmatprep.subr.bf16.mxu0 %v6659_v58  ;;  %4751 = vmatprep.subr.bf16.mxu1 %v6661_v9  ;;  %v6654_v58 = vcombine.low %v4318_v0, %v4322_v56  ;;  %v6663_v9 = vcombine.high %v4326_v34, %v4330_v5  ;;  %v6665_v11 = vcombine.high %v4327_v57, %v4331_v7 }
0x15c6   : > { %4709 = vmatpush1.bf16.msra.mxu0 %v6658_v27  ;;  %4752 = vmatpush1.bf16.msra.mxu1 %v6660_v14  ;;  %v6664_v27 = vcombine.low %v4327_v57, %v4331_v7  ;;  %v7315_v14 = vld [vmem:[%s7734_s9 + $0x80] sm:$0xff]  }
0x15c7   : > { %4780 = vmatprep.subr.bf16.mxu0 %v6607_v16  ;;  %4823 = vmatprep.subr.bf16.mxu1 %v6609_v18  ;;  %v7316_v16 = vld [vmem:[%s7734_s9 + $0x48] sm:$0xff]  }
0x15c8   : > { %v7318_v18 = vld [vmem:[%s7734_s9 + $0x8] sm:$0xff]  }
0x15c9   : > { %4727 = vmatmul.mubr.bf16.vlgmr.msra.gmra.mrb[0].mxu0 %v8291_v20  ;;  %4770 = vmatmul.mubr.bf16.vlgmr.msra.gmra.mrb[0].mxu1 %v8291_v20 }
0x15ca   : > { %4781 = vmatpush1.bf16.msra.mxu0 %v6606_v22  ;;  %4824 = vmatpush1.bf16.msra.mxu1 %v6608_v49  ;;  %v7321_v22 = vld [vmem:[%s7734_s9 + $0xd0] sm:$0xff]  }
0x15cb   : > { %4782 = vmatprep.subr.bf16.mxu0 %v6615_v24  ;;  %4825 = vmatprep.subr.bf16.mxu1 %v6617_v25  ;;  %v7323_v49 = vld [vmem:[%s7734_s9 + $0x90] sm:$0xff]   ;;  %v7324_v24 = vld [vmem:[%s7734_s9 + $0x58] sm:$0xff]  }
0x15cc   : > { %4812 = vmatprep.mubr.bf16.mxu0 %v7448_v15  ;;  %4855 = vmatprep.mubr.bf16.mxu1 %v7448_v15  ;;  %v4310_v15 = vld [vmem:[%s7736_s0 + $0x150] sm:$0xff]  ;;  %v7327_v25 = vld [vmem:[%s7734_s9 + $0x98] sm:$0xff]  }
0x15cd   : > { %v6647_v2 = vcombine.high %v4310_v15, %v4314_v45  ;;  %v6646_v31 = vcombine.low %v4310_v15, %v4314_v45 }
0x15ce   : > { %4783 = vmatpush1.bf16.msra.mxu0 %v6614_v30  ;;  %4826 = vmatpush1.bf16.msra.mxu1 %v6616_v63  ;;  %v7330_v30 = vld [vmem:[%s7734_s9 + $0x20] sm:$0xff]   ;;  %v7332_v63 = vld [vmem:[%s7734_s9 + $0x68] sm:$0xff]  }
0x15cf   : > { %4784 = vmatprep.subr.bf16.mxu0 %v6623_v32  ;;  %4827 = vmatprep.subr.bf16.mxu1 %v6625_v37  ;;  %v7333_v32 = vld [vmem:[%s7734_s9 + $0xe8] sm:$0xff]  }
0x15d0   : > { %v7335_v37 = vld [vmem:[%s7734_s9 + $0xa8] sm:$0xff]  }
0x15d2   : > { %4785 = vmatpush1.bf16.msra.mxu0 %v6622_v39  ;;  %4828 = vmatpush1.bf16.msra.mxu1 %v6624_v41  ;;  %v7338_v39 = vld [vmem:[%s7734_s9 + $0x30] sm:$0xff]   ;;  %v7340_v41 = vld [vmem:[%s7734_s9 + $0x78] sm:$0xff]  }
0x15d3   : > { %4786 = vmatprep.subr.bf16.mxu0 %v6631_v42  ;;  %4829 = vmatprep.subr.bf16.mxu1 %v6633_v10  ;;  %v7341_v42 = vld [vmem:[%s7734_s9 + $0xf8] sm:$0xff]  }
0x15d4   : > { %v7343_v10 = vld [vmem:[%s7734_s9 + $0xb8] sm:$0xff]  }
0x15d6   : > { %4787 = vmatpush1.bf16.msra.mxu0 %v6630_v29  ;;  %4830 = vmatpush1.bf16.msra.mxu1 %v6632_v46  ;;  %v4334_v29 = vlaneseq  ;;  %v8368_v46 = vld [vmem:[%s769_s27] sm:$0xff] }
0x15d7   : > { %4788 = vmatprep.subr.bf16.mxu0 %v6639_v47  ;;  %4831 = vmatprep.subr.bf16.mxu1 %v6641_v53 }
0x15d8   : > { %v8358_v15 = vshrl.u32 %v4334_v29, 7 }
0x15da   : > { %4789 = vmatpush1.bf16.msra.mxu0 %v6638_v62  ;;  %4832 = vmatpush1.bf16.msra.mxu1 %v6640_v1  ;;  %v8361_v45 = vsub.s32 0, %v8358_v15  ;;  %v8371_v47 = vsub.s32 2, %v8358_v15  ;;  %v8374_v48 = vsub.s32 1, %v8358_v15  ;;  %v8377_v50 = vsub.s32 3, %v8358_v15 }
0x15db   : > { %4790 = vmatprep.subr.bf16.mxu0 %v6647_v2  ;;  %4833 = vmatprep.subr.bf16.mxu1 %v6649_v3 }
0x15dc   : > { %v4337_v53 = vrot.slane %v8368_v46, %v8361_v45  ;;  %v4345_v62 = vrot.slane %v8368_v46, %v8371_v47  ;;  %v4341_v0 = vrot.slane %v8368_v46, %v8374_v48  ;;  %v4349_v56 = vrot.slane %v8368_v46, %v8377_v50 }
0x15de   : > { %4791 = vmatpush1.bf16.msra.mxu0 %v6646_v31  ;;  %4834 = vmatpush1.bf16.msra.mxu1 %v6648_v6 }
0x15df   : > { %4792 = vmatprep.subr.bf16.mxu0 %v6655_v55  ;;  %4835 = vmatprep.subr.bf16.mxu1 %v6657_v52 }
0x15e2   : > { %4793 = vmatpush1.bf16.msra.mxu0 %v6654_v58  ;;  %4836 = vmatpush1.bf16.msra.mxu1 %v6656_v59 }
0x15e3   : > { %4794 = vmatprep.subr.bf16.mxu0 %v6663_v9  ;;  %4837 = vmatprep.subr.bf16.mxu1 %v6665_v11 }
0x15e6   : > { %4795 = vmatpush1.bf16.msra.mxu0 %v6662_v13  ;;  %4838 = vmatpush1.bf16.msra.mxu1 %v6664_v27 }
0x15e7   : > { %6832 = vmatprep.subr.bf16.mxu0 %v7312_v12  ;;  %6854 = vmatprep.subr.bf16.mxu1 %v7313_v61 }
0x15e9   : > { %4813 = vmatmul.mubr.bf16.vlgmr.msra.gmra.mrb[4].mxu0 %v8291_v20  ;;  %4856 = vmatmul.mubr.bf16.vlgmr.msra.gmra.mrb[4].mxu1 %v8291_v20  ;;  %v7326_v20 = vld [vmem:[%s7734_s9 + $0x18] sm:$0xff]  }
0x15ea   : > { %6833 = vmatpush3.bf16.msra.mxu0 %v7314_v60  ;;  %6855 = vmatpush3.bf16.msra.mxu1 %v7315_v14 }
0x15eb   : > { %6834 = vmatprep.subr.bf16.mxu0 %v7316_v16  ;;  %6856 = vmatprep.subr.bf16.mxu1 %v7317_v17 }
0x15ee   : > { %6835 = vmatpush3.bf16.msra.mxu0 %v7318_v18  ;;  %6857 = vmatpush3.bf16.msra.mxu1 %v7319_v19 }
0x15ef   : > { %6836 = vmatprep.subr.bf16.mxu0 %v7320_v21  ;;  %6858 = vmatprep.subr.bf16.mxu1 %v7321_v22  ;;  %v7346_v21 = vld [vmem:[%s7734_s9 + $0x100] sm:$0xff]  }
0x15f2   : > { %6837 = vmatpush3.bf16.msra.mxu0 %v7322_v23  ;;  %6859 = vmatpush3.bf16.msra.mxu1 %v7323_v49  ;;  %v7347_v23 = vld [vmem:[%s7734_s9 + $0x180] sm:$0xff]   ;;  %v7348_v49 = vld [vmem:[%s7734_s9 + $0x148] sm:$0xff]  }
0x15f3   : > { %6838 = vmatprep.subr.bf16.mxu0 %v7324_v24  ;;  %6860 = vmatprep.subr.bf16.mxu1 %v7325_v51  ;;  %v7349_v24 = vld [vmem:[%s7734_s9 + $0x1c8] sm:$0xff]  }
0x15f4   : > { %v7350_v51 = vld [vmem:[%s7734_s9 + $0x108] sm:$0xff]  }
0x15f6   : > { %6839 = vmatpush3.bf16.msra.mxu0 %v7326_v20  ;;  %6861 = vmatpush3.bf16.msra.mxu1 %v7327_v25  ;;  %v7351_v20 = vld [vmem:[%s7734_s9 + $0x188] sm:$0xff]   ;;  %v7352_v25 = vld [vmem:[%s7734_s9 + $0x150] sm:$0xff]  }
0x15f7   : > { %6840 = vmatprep.subr.bf16.mxu0 %v7328_v26  ;;  %6862 = vmatprep.subr.bf16.mxu1 %v7329_v28  ;;  %v7353_v26 = vld [vmem:[%s7734_s9 + $0x1d0] sm:$0xff]  }
0x15f8   : > { %v7354_v28 = vld [vmem:[%s7734_s9 + $0x110] sm:$0xff]  }
0x15fa   : > { %6841 = vmatpush3.bf16.msra.mxu0 %v7330_v30  ;;  %6863 = vmatpush3.bf16.msra.mxu1 %v7331_v54  ;;  %v7355_v30 = vld [vmem:[%s7734_s9 + $0x190] sm:$0xff]   ;;  %v7356_v54 = vld [vmem:[%s7734_s9 + $0x158] sm:$0xff]  }
0x15fb   : > { %6842 = vmatprep.subr.bf16.mxu0 %v7332_v63  ;;  %6864 = vmatprep.subr.bf16.mxu1 %v7333_v32  ;;  %v7357_v63 = vld [vmem:[%s7734_s9 + $0x1d8] sm:$0xff]  }
0x15fc   : > { %v7358_v32 = vld [vmem:[%s7734_s9 + $0x118] sm:$0xff]  }
0x15fe   : > { %6843 = vmatpush3.bf16.msra.mxu0 %v7334_v36  ;;  %6865 = vmatpush3.bf16.msra.mxu1 %v7335_v37  ;;  %v7359_v36 = vld [vmem:[%s7734_s9 + $0x198] sm:$0xff]   ;;  %v7360_v37 = vld [vmem:[%s7734_s9 + $0x160] sm:$0xff]  }
0x15ff   : > { %6844 = vmatprep.subr.bf16.mxu0 %v7336_v4  ;;  %6866 = vmatprep.subr.bf16.mxu1 %v7337_v38  ;;  %v7361_v4 = vld [vmem:[%s7734_s9 + $0x1e0] sm:$0xff]  }
0x1600   : > { %v7362_v38 = vld [vmem:[%s7734_s9 + $0x120] sm:$0xff]  }
0x1602   : > { %6845 = vmatpush3.bf16.msra.mxu0 %v7338_v39  ;;  %6867 = vmatpush3.bf16.msra.mxu1 %v7339_v40  ;;  %v7363_v39 = vld [vmem:[%s7734_s9 + $0x1a0] sm:$0xff]   ;;  %v7364_v40 = vld [vmem:[%s7734_s9 + $0x168] sm:$0xff]  }
0x1603   : > { %6846 = vmatprep.subr.bf16.mxu0 %v7340_v41  ;;  %6868 = vmatprep.subr.bf16.mxu1 %v7341_v42  ;;  %v8407_v41 = vsub.s32 4, %v8358_v15  ;;  %v7365_v42 = vld [vmem:[%s7734_s9 + $0x1e8] sm:$0xff]  }
0x1605   : > { %v4353_v29 = vrot.slane %v8368_v46, %v8407_v41 }
0x1606   : > { %6847 = vmatpush3.bf16.msra.mxu0 %v7342_v43  ;;  %6869 = vmatpush3.bf16.msra.mxu1 %v7343_v10  ;;  %v8411_v43 = vsub.s32 6, %v8358_v15  ;;  %v8414_v10 = vsub.s32 5, %v8358_v15 }
0x1607   : > { %6876 = vmatprep.subr.bf16.mxu0 %v7344_v44  ;;  %6898 = vmatprep.subr.bf16.mxu1 %v7345_v8  ;;  %v8417_v44 = vsub.s32 7, %v8358_v15  ;;  %v7366_v8 = vld [vmem:[%s7734_s9 + $0x128] sm:$0xff]  }
0x169c   : > { %v4728_v1 = vpop.f32.mrb[0].mxu0  ;;  %v4771_v33 = vpop.f32.mrb[0].mxu1 }
0x169d   : > { %v4729_v2 = vadd.f32 %v4728_v1, %v4337_v53  ;;  %v4730_v35 = vpop.f32.mrb[1].mxu0  ;;  %v4772_v3 = vadd.f32 %v4771_v33, %v4345_v62  ;;  %v4773_v34 = vpop.f32.mrb[1].mxu1  ;;  %v7369_v1 = vld [vmem:[%s7734_s9 + $0x1f0] sm:$0xff]  }
0x169e   : > { %v4731_v31 = vadd.f32 %v4730_v35, %v4341_v0  ;;  %v4732_v5 = vpop.f32.mrb[2].mxu0  ;;  %v4774_v55 = vadd.f32 %v4773_v34, %v4349_v56  ;;  %v4775_v7 = vpop.f32.mrb[2].mxu1  ;;  %v7370_v35 = vld [vmem:[%s7734_s9 + $0x130] sm:$0xff]  }
0x169f   : > { %v4866_v6 = vmax.f32 %v4729_v2, 0.0  ;;  %v4733_v57 = vadd.f32 %v4732_v5, %v4337_v53  ;;  %v4734_v52 = vpop.f32.mrb[3].mxu0  ;;  %v4868_v58 = vmax.f32 %v4772_v3, 0.0  ;;  %v4776_v59 = vadd.f32 %v4775_v7, %v4345_v62  ;;  %v4777_v11 = vpop.f32.mrb[3].mxu1  ;;  %v7367_v53 = vld [vmem:[%s7734_s9 + $0x1a8] sm:$0xff]   ;;  %v7368_v62 = vld [vmem:[%s7734_s9 + $0x170] sm:$0xff]  }
0x16a0   : > { %v4735_v9 = vadd.f32 %v4734_v52, %v4341_v0  ;;  %v4869_v12 = vmax.f32 %v4774_v55, 0.0  ;;  %v4778_v61 = vadd.f32 %v4777_v11, %v4349_v56  ;;  %v4867_v27 = vmax.f32 %v4731_v31, 0.0  ;;  %v7371_v5 = vld [vmem:[%s7734_s9 + $0x1b0] sm:$0xff]  }
0x16a1   : > { %v4874_v13 = vmax.f32 %v4733_v57, 0.0  ;;  %v4876_v60 = vmax.f32 %v4776_v59, 0.0  ;;  %v4361_v0 = vrot.slane %v8368_v46, %v8411_v43  ;;  %v4357_v56 = vrot.slane %v8368_v46, %v8414_v10 }
0x16a2   : > { %v4875_v14 = vmax.f32 %v4735_v9, 0.0  ;;  %v4877_v17 = vmax.f32 %v4778_v61, 0.0  ;;  %v4365_v2 = vrot.slane %v8368_v46, %v8417_v44 }
0x16a3   : > { %v4884_v16 = vpack.c.bf16 %v4874_v13, %v4866_v6  ;;  %v4886_v18 = vpack.c.bf16 %v4876_v60, %v4868_v58  ;;  %v7372_v6 = vld [vmem:[%s7734_s9 + $0x178] sm:$0xff]  }
0x16a4   : > { %v4885_v19 = vpack.c.bf16 %v4875_v14, %v4867_v27  ;;  %v4887_v22 = vpack.c.bf16 %v4877_v17, %v4869_v12  ;;  %v7373_v58 = vld [vmem:[%s7734_s9 + $0x1f8] sm:$0xff]  }
0x16a5   : > { %v7374_v60 = vld [vmem:[%s7734_s9 + $0x138] sm:$0xff]  }
0x16a6   : > { %5436 = vmatprep.mubr.bf16.mxu0 %v4885_v19  ;;  %5477 = vmatprep.mubr.bf16.mxu1 %v4887_v22  ;;  %v7375_v19 = vld [vmem:[%s7734_s9 + $0x1b8] sm:$0xff]  }
0x16a7   : > { %5437 = vmatmul.mubr.bf16.vlgmr.msra.gmra.mrb[8].mxu0 %v4884_v16  ;;  %5478 = vmatmul.mubr.bf16.vlgmr.msra.gmra.mrb[8].mxu1 %v4886_v18 }
0x16a8   : > { %6877 = vmatpush3.bf16.msra.mxu0 %v7346_v21  ;;  %6899 = vmatpush3.bf16.msra.mxu1 %v7347_v23 }
0x16a9   : > { %6878 = vmatprep.subr.bf16.mxu0 %v7348_v49  ;;  %6900 = vmatprep.subr.bf16.mxu1 %v7349_v24 }
0x16ac   : > { %6879 = vmatpush3.bf16.msra.mxu0 %v7350_v51  ;;  %6901 = vmatpush3.bf16.msra.mxu1 %v7351_v20 }
0x16ad   : > { %6880 = vmatprep.subr.bf16.mxu0 %v7352_v25  ;;  %6902 = vmatprep.subr.bf16.mxu1 %v7353_v26 }
0x16b0   : > { %6881 = vmatpush3.bf16.msra.mxu0 %v7354_v28  ;;  %6903 = vmatpush3.bf16.msra.mxu1 %v7355_v30 }
0x16b1   : > { %6882 = vmatprep.subr.bf16.mxu0 %v7356_v54  ;;  %6904 = vmatprep.subr.bf16.mxu1 %v7357_v63 }
0x16b4   : > { %6883 = vmatpush3.bf16.msra.mxu0 %v7358_v32  ;;  %6905 = vmatpush3.bf16.msra.mxu1 %v7359_v36 }
0x16b5   : > { %6884 = vmatprep.subr.bf16.mxu0 %v7360_v37  ;;  %6906 = vmatprep.subr.bf16.mxu1 %v7361_v4 }
0x16b8   : > { %6885 = vmatpush3.bf16.msra.mxu0 %v7362_v38  ;;  %6907 = vmatpush3.bf16.msra.mxu1 %v7363_v39 }
0x16b9   : > { %6886 = vmatprep.subr.bf16.mxu0 %v7364_v40  ;;  %6908 = vmatprep.subr.bf16.mxu1 %v7365_v42 }
0x16bc   : > { %v4814_v33 = vpop.f32.mrb[4].mxu0  ;;  %6887 = vmatpush3.bf16.msra.mxu0 %v7366_v8  ;;  %v4857_v31 = vpop.f32.mrb[4].mxu1  ;;  %6909 = vmatpush3.bf16.msra.mxu1 %v7367_v53 }
0x16bd   : > { %v4815_v3 = vadd.f32 %v4814_v33, %v4353_v29  ;;  %v4816_v34 = vpop.f32.mrb[5].mxu0  ;;  %6888 = vmatprep.subr.bf16.mxu0 %v7368_v62  ;;  %v4858_v55 = vadd.f32 %v4857_v31, %v4361_v0  ;;  %v4859_v7 = vpop.f32.mrb[5].mxu1  ;;  %6910 = vmatprep.subr.bf16.mxu1 %v7369_v1 }
0x16be   : > { %v4817_v57 = vadd.f32 %v4816_v34, %v4357_v56  ;;  %v4818_v52 = vpop.f32.mrb[6].mxu0  ;;  %v4860_v59 = vadd.f32 %v4859_v7, %v4365_v2  ;;  %v4861_v9 = vpop.f32.mrb[6].mxu1  ;;  %v4883_v7 = vld [vmem:[#allocation3 + $0x8] sm:$0xff] }
0x16bf   : > { %v4819_v46 = vadd.f32 %v4818_v52, %v4353_v29  ;;  %v4820_v11 = vpop.f32.mrb[7].mxu0  ;;  %v4872_v12 = vmax.f32 %v4858_v55, 0.0  ;;  %v4862_v13 = vadd.f32 %v4861_v9, %v4361_v0  ;;  %v4863_v27 = vpop.f32.mrb[7].mxu1  ;;  %v4870_v14 = vmax.f32 %v4815_v3, 0.0  ;;  %v6731_v9 = vld [vmem:[%s8601_s12] ss:$0 sm:$0xff] (!%p6730_p11) }
0x16c0   : > { %v4821_v61 = vadd.f32 %v4820_v11, %v4357_v56  ;;  %6889 = vmatpush3.bf16.msra.mxu0 %v7370_v35  ;;  %v4873_v16 = vmax.f32 %v4860_v59, 0.0  ;;  %v4864_v18 = vadd.f32 %v4863_v27, %v4365_v2  ;;  %6911 = vmatpush3.bf16.msra.mxu1 %v7371_v5  ;;  %v4871_v21 = vmax.f32 %v4817_v57, 0.0  ;;  %v4882_v5 = vld [vmem:[#allocation3] sm:$0xff]  ;;  %v5587_v11 = vld [vmem:[#allocation2] sm:$0xff] (!%p6730_p11)  ;;  %v5588_v27 = vld [vmem:[#allocation2 + $0x8] sm:$0xff] (!%p6730_p11) }
0x16c1   : > { %v4878_v17 = vmax.f32 %v4819_v46, 0.0  ;;  %6890 = vmatprep.subr.bf16.mxu0 %v7372_v6  ;;  %v4880_v22 = vmax.f32 %v4862_v13, 0.0  ;;  %6912 = vmatprep.subr.bf16.mxu1 %v7373_v58 }
0x16c2   : > { %v4879_v23 = vmax.f32 %v4821_v61, 0.0  ;;  %v4881_v24 = vmax.f32 %v4864_v18, 0.0 }
0x16c3   : > { %v4888_v49 = vpack.c.bf16 %v4878_v17, %v4870_v14  ;;  %v4890_v51 = vpack.c.bf16 %v4880_v22, %v4872_v12 }
0x16c4   : > { %v4889_v20 = vpack.c.bf16 %v4879_v23, %v4871_v21  ;;  %6891 = vmatpush3.bf16.msra.mxu0 %v7374_v60  ;;  %v4891_v25 = vpack.c.bf16 %v4881_v24, %v4873_v16  ;;  %6913 = vmatpush3.bf16.msra.mxu1 %v7375_v19 }
0x16c6   : > { %5518 = vmatprep.mubr.bf16.mxu0 %v4889_v20  ;;  %5559 = vmatprep.mubr.bf16.mxu1 %v4891_v25 }
0x16c7   : > { %5519 = vmatmul.mubr.bf16.vlgmr.msra.gmra.mrb[12].mxu0 %v4888_v49  ;;  %5560 = vmatmul.mubr.bf16.vlgmr.msra.gmra.mrb[12].mxu1 %v4890_v51 }
0x177a   : > { %v6848_v26 = vpop.f32.mrb[8].mxu0  ;;  %v6870_v28 = vpop.f32.mrb[8].mxu1 }
0x177b   : > { %v6849_v30 = vpop.f32.mrb[9].mxu0  ;;  %v6871_v63 = vpop.f32.mrb[9].mxu1 }
0x177c   : > { %v6850_v54 = vadd.f32 %v6849_v30, %v6848_v26  ;;  %v6851_v32 = vpop.f32.mrb[10].mxu0  ;;  %v6872_v36 = vadd.f32 %v6871_v63, %v6870_v28  ;;  %v6873_v37 = vpop.f32.mrb[10].mxu1  ;;  %v7449_v63 = vmov (!%p6730_p11), 1966171168  }
0x177d   : > { %v6852_v4 = vpop.f32.mrb[11].mxu0  ;;  %v6874_v39 = vpop.f32.mrb[11].mxu1 }
0x177e   : > { %v6853_v38 = vadd.f32 %v6852_v4, %v6851_v32  ;;  %v5480_v40 = vadd.f32 %v6872_v36, %v6850_v54  ;;  %v6875_v42 = vadd.f32 %v6874_v39, %v6873_v37  ;;  %v5639_v32 = vunpack.c.l.s4 (!%p6730_p11), %v7449_v63  ;;  %v6732_v36 = vld [vmem:[%s8602_s13] ss:$0 sm:$0xff] (!%p6730_p11) }
0x1780   : > { %v5483_v8 = vadd.f32 %v6875_v42, %v6853_v38  ;;  %v5640_v39 = vunpack.c.0.s8 (!%p6730_p11), %v5639_v32 }
0x179a   : > { %v6892_v29 = vpop.f32.mrb[12].mxu0  ;;  %v6914_v53 = vpop.f32.mrb[12].mxu1 }
0x179b   : > { %v6893_v62 = vpop.f32.mrb[13].mxu0  ;;  %v6915_v56 = vpop.f32.mrb[13].mxu1 }
0x179c   : > { %v6894_v0 = vadd.f32 %v6893_v62, %v6892_v29  ;;  %v6895_v1 = vpop.f32.mrb[14].mxu0  ;;  %v6916_v2 = vadd.f32 %v6915_v56, %v6914_v53  ;;  %v6917_v33 = vpop.f32.mrb[14].mxu1  ;;  %v8448_v53 = vsub.s32 (!%p6730_p11), %v5640_v39, %v8358_v15 }
0x179d   : > { %v6896_v35 = vpop.f32.mrb[15].mxu0  ;;  %v6918_v34 = vpop.f32.mrb[15].mxu1 }
0x179e   : > { %v5521_v3 = vadd.f32 %v6894_v0, %v5480_v40  ;;  %v6897_v31 = vadd.f32 %v6896_v35, %v6895_v1  ;;  %v6919_v6 = vadd.f32 %v6918_v34, %v6917_v33  ;;  %v6733_v40 = vld [vmem:[%s8603_s14] ss:$0 sm:$0xff] (!%p6730_p11) }
0x17a0   : > { %v5562_v55 = vadd.f32 %v6916_v2, %v5521_v3  ;;  %v5524_v57 = vadd.f32 %v6897_v31, %v5483_v8  ;;  %5575 = sbr.rel (%p6730_p11) target bundleno = 6974 (0x1b3e), region = 127 }
0x17a2   : > { %v5568_v52 = vadd.f32 %v5562_v55, %v4882_v5  ;;  %v5565_v58 = vadd.f32 %v6919_v6, %v5524_v57 }
0x17a4   : > { %5570 = vst [vmem:[#allocation3] sm:$0xff] %v5568_v52  ;;  %v5569_v59 = vadd.f32 %v5565_v58, %v4883_v7 }
0x17a6   : > { %5571 = vst [vmem:[#allocation3 + $0x8] sm:$0xff] %v5569_v59 }
0x17ab   : > { %v5576_v46 = vld [vmem:[#allocation3] sm:$0xff] }
0x17ac   : > { %v5585_v12 = vadd.f32 %v6731_v9, %v5576_v46 }
0x17ad   : > { %v5577_v13 = vld [vmem:[#allocation3 + $0x8] sm:$0xff] }
0x17ae   : > { %v5586_v61 = vadd.f32 %v6731_v9, %v5577_v13  ;;  %v5589_v60 = vadd.f32 %v5587_v11, %v5585_v12 }
0x17b0   : > { %5593 = vadd.xlane.f32.xlu0 %v5589_v60  ;;  %v5590_v14 = vadd.f32 %v5588_v27, %v5586_v61 }
0x17b4   : > { %5595 = vadd.xlane.f32.xlu0 %v5590_v14 }
0x183d   : > { %v5594_v16 = vpop.xlane.xlu0 %5593 }
0x183e   : > { %v5598_v17 = vmul.f32 0.0078125, %v5594_v16 }
0x1840   : > { %v5600_v18 = vsub.f32 %v5589_v60, %v5598_v17 }
0x1841   : > { %v5596_v19 = vpop.xlane.xlu0 %5595 }
0x1842   : > { %v5599_v21 = vmul.f32 0.0078125, %v5596_v19  ;;  %v5602_v22 = vmul.f32 %v5600_v18, %v5600_v18 }
0x1844   : > { %v5601_v23 = vsub.f32 %v5590_v14, %v5599_v21  ;;  %5604 = vadd.xlane.f32.xlu1 %v5602_v22 }
0x1846   : > { %v5603_v49 = vmul.f32 %v5601_v23, %v5601_v23 }
0x1848   : > { %5606 = vadd.xlane.f32.xlu1 %v5603_v49 }
0x18d1   : > { %v5605_v24 = vpop.xlane.xlu1 %5604 }
0x18d2   : > { %v5608_v51 = vmul.f32 0.0078125, %v5605_v24 }
0x18d4   : > { %v5610_v20 = vadd.f32 1e-05, %v5608_v51 }
0x18d5   : > { %v5607_v25 = vpop.xlane.xlu1 %5606 }
0x18d6   : > { %7378 = vrsqrt.f32 %v5610_v20  ;;  %v5609_v26 = vmul.f32 0.0078125, %v5607_v25 }
0x18d8   : > { %v5611_v28 = vadd.f32 1e-05, %v5609_v26 }
0x18da   : > { %7380 = vrsqrt.f32 %v5611_v28 }
0x18e0   : > { %v7379_v30 = vpop.eup %7378 }
0x18e1   : > { %v5614_v54 = vmul.f32 %v7379_v30, %v5600_v18 }
0x18e3   : > { %v5622_v4 = vmul.f32 %v6732_v36, %v5614_v54 }
0x18e4   : > { %v7381_v37 = vpop.eup %7380 }
0x18e5   : > { %v5615_v38 = vmul.f32 %v7381_v37, %v5601_v23  ;;  %v5630_v8 = vadd.f32 %v6733_v40, %v5622_v4 }
0x18e7   : > { %v5623_v42 = vmul.f32 %v6732_v36, %v5615_v38 }
0x18e9   : > { %v5631_v29 = vadd.f32 %v6733_v40, %v5623_v42 }
0x18eb   : > { %v5636_v62 = vcombine.low %v5630_v8, %v5631_v29  ;;  %v5637_v0 = vcombine.high %v5630_v8, %v5631_v29 }
0x18ed   : > { %v5644_v56 = vrot.slane %v5636_v62, %v8448_v53  ;;  %v5651_v1 = vrot.slane %v5637_v0, %v8448_v53 }
0x18ef   : > { %v5652_v2 = vcombine.high %v5644_v56, %v5644_v56  ;;  %v5660_v33 = vrot.slane %v5644_v56, %v8448_v53  ;;  %v5653_v31 = vcombine.high %v5651_v1, %v5651_v1  ;;  %v5667_v57 = vrot.slane %v5651_v1, %v8448_v53 }
0x18f1   : > { %v5674_v35 = vrot.slane %v5652_v2, %v8448_v53  ;;  %v5682_v3 = vcombine.high %v5660_v33, %v5660_v33  ;;  %v5695_v5 = vsel %vm5694_vm3, %v5660_v33, 0.0  ;;  %v5681_v58 = vrot.slane %v5653_v31, %v8448_v53 }
0x18f2   : > { %v5683_v9 = vcombine.high %v5667_v57, %v5667_v57  ;;  %v5702_v11 = vsel %vm5694_vm3, %v5667_v57, 0.0 }
0x18f3   : > { %v5684_v34 = vcombine.high %v5674_v35, %v5674_v35  ;;  %v5696_v6 = vsel %vm5694_vm3, %v5674_v35, 0.0  ;;  %v5698_v7 = vsel %vm5694_vm3, %v5682_v3, 0.0  ;;  %v5685_v13 = vcombine.high %v5681_v58, %v5681_v58 }
0x18f4   : > { %v5697_v55 = vadd.f32 %v5696_v6, %v5695_v5  ;;  %v5704_v61 = vsel %vm5694_vm3, %v5681_v58, 0.0  ;;  %v5706_v60 = vsel %vm5694_vm3, %v5683_v9, 0.0  ;;  %v6029_v58 = vld [vmem:[%s8606_s17 + $0x8] sm:$0xff] }
0x18f5   : > { %v5700_v59 = vsel %vm5694_vm3, %v5684_v34, 0.0  ;;  %v5708_v16 = vsel %vm5694_vm3, %v5685_v13, 0.0 }
0x18f6   : > { %v5699_v52 = vadd.f32 %v5698_v7, %v5697_v55  ;;  %v7450_v55 = vmov 1983009808  }
0x18f7   : > { %v6101_v57 = vunpack.c.l.s4 %v7450_v55 }
0x18f8   : > { %v5701_v46 = vadd.f32 %v5700_v59, %v5699_v52  ;;  %v6028_v52 = vld [vmem:[%s8606_s17] sm:$0xff] }
0x18f9   : > { %v6102_v7 = vunpack.c.0.s8 %v6101_v57  ;;  %v6099_v13 = vcombine.high %v6028_v52, %v6028_v52 }
0x18fa   : > { %v5703_v12 = vadd.f32 %v5702_v11, %v5701_v46 }
0x18fb   : > { %v6105_v59 = vsub.s32 %v6102_v7, %v8358_v15 }
0x18fc   : > { %v5705_v27 = vadd.f32 %v5704_v61, %v5703_v12  ;;  %v6116_v61 = vcombine.high %v6029_v58, %v6029_v58 }
0x18fd   : > { %v6106_v46 = vrot.slane %v6028_v52, %v6105_v59  ;;  %v6123_v9 = vrot.slane %v6029_v58, %v6105_v59 }
0x18fe   : > { %v5707_v14 = vadd.f32 %v5706_v60, %v5705_v27  ;;  %v8495_v27 = vrot.slane %v6099_v13, %v6105_v59 }
0x18ff   : > { %v6114_v11 = vcombine.high %v6106_v46, %v6106_v46  ;;  %v6131_v12 = vcombine.high %v6123_v9, %v6123_v9 }
0x1900   : > { %v5709_v17 = vadd.f32 %v5708_v16, %v5707_v14  ;;  %v6115_v60 = vcombine.high %v8495_v27, %v8495_v27  ;;  %v8499_v14 = vrot.slane %v6116_v61, %v6105_v59  ;;  %v5632_v16 = vld [vmem:[%s8604_s15] sm:$0xff] }
0x1901   : > { %6141 = vmatprep.subr.mxu1 %v6114_v11  ;;  %6281 = vmatprep.subr.mxu0 %v6131_v12 }
0x1902   : > { %5710 = vadd.xlane.f32.xlu0 %v5709_v17  ;;  %6142 = vmatpush1.xpose.msra.mxu1 %v6106_v46  ;;  %v6132_v15 = vcombine.high %v8499_v14, %v8499_v14  ;;  %v5633_v17 = vld [vmem:[%s8605_s16] sm:$0xff] }
0x1903   : > { %6282 = vmatpush1.xpose.msra.mxu0 %v6123_v9  ;;  %6211 = vmatprep.subr.mxu1 %v6115_v60 }
0x1904   : > { %6351 = vmatprep.subr.mxu0 %v6132_v15 }
0x198f   : > { %v5711_v18 = vpop.xlane.xlu0 %5710 }
0x1990   : > { %v5713_v19 = vmul.f32 0.0009765625, %v5711_v18  ;;  %v5826_v18 = vrot.slane %v5632_v16, %v8361_v45 }
0x1992   : > { %v5718_v21 = vrot.slane %v5713_v19, %v8361_v45  ;;  %v5722_v22 = vrot.slane %v5713_v19, %v8374_v48  ;;  %v5830_v19 = vrot.slane %v5632_v16, %v8374_v48 }
0x1994   : > { %v8466_v23 = vsub.f32 %v5630_v8, %v5718_v21  ;;  %v8468_v49 = vsub.f32 %v5631_v29, %v5722_v22  ;;  %v5834_v21 = vrot.slane %v5632_v16, %v8371_v47  ;;  %v5838_v22 = vrot.slane %v5632_v16, %v8377_v50 }
0x1996   : > { %v5727_v24 = vmul.f32 %v8466_v23, %v8466_v23  ;;  %v5728_v51 = vmul.f32 %v8468_v49, %v8468_v49 }
0x1998   : > { %v5731_v20 = vcombine.low %v5727_v24, %v5728_v51  ;;  %v5732_v25 = vcombine.high %v5727_v24, %v5728_v51  ;;  %v5842_v24 = vrot.slane %v5632_v16, %v8407_v41  ;;  %v5846_v51 = vrot.slane %v5632_v16, %v8414_v10 }
0x199a   : > { %v5739_v26 = vrot.slane %v5731_v20, %v8448_v53  ;;  %v5746_v28 = vrot.slane %v5732_v25, %v8448_v53  ;;  %v5850_v20 = vrot.slane %v5632_v16, %v8411_v43  ;;  %v5854_v25 = vrot.slane %v5632_v16, %v8417_v44 }
0x199c   : > { %v5747_v30 = vcombine.high %v5739_v26, %v5739_v26  ;;  %v5755_v54 = vrot.slane %v5739_v26, %v8448_v53  ;;  %v5748_v37 = vcombine.high %v5746_v28, %v5746_v28  ;;  %v5762_v40 = vrot.slane %v5746_v28, %v8448_v53 }
0x199d   : > { %v5929_v26 = vrot.slane %v5633_v17, %v8361_v45  ;;  %v5933_v28 = vrot.slane %v5633_v17, %v8374_v48 }
0x199e   : > { %v5769_v63 = vrot.slane %v5747_v30, %v8448_v53  ;;  %v5777_v32 = vcombine.high %v5755_v54, %v5755_v54  ;;  %v5789_v36 = vsel %vm5694_vm3, %v5755_v54, 0.0  ;;  %v5776_v29 = vrot.slane %v5748_v37, %v8448_v53 }
0x199f   : > { %v5778_v56 = vcombine.high %v5762_v40, %v5762_v40  ;;  %v5796_v1 = vsel %vm5694_vm3, %v5762_v40, 0.0  ;;  %v5937_v30 = vrot.slane %v5633_v17, %v8371_v47  ;;  %v5941_v54 = vrot.slane %v5633_v17, %v8377_v50 }
0x19a0   : > { %v5779_v4 = vcombine.high %v5769_v63, %v5769_v63  ;;  %v5790_v38 = vsel %vm5694_vm3, %v5769_v63, 0.0  ;;  %v5792_v42 = vsel %vm5694_vm3, %v5777_v32, 0.0  ;;  %v5780_v33 = vcombine.high %v5776_v29, %v5776_v29 }
0x19a1   : > { %v5791_v39 = vadd.f32 %v5790_v38, %v5789_v36  ;;  %v5798_v35 = vsel %vm5694_vm3, %v5776_v29, 0.0  ;;  %v5800_v31 = vsel %vm5694_vm3, %v5778_v56, 0.0  ;;  %v5945_v63 = vrot.slane %v5633_v17, %v8407_v41 }
0x19a2   : > { %v5794_v62 = vsel %vm5694_vm3, %v5779_v4, 0.0  ;;  %v5802_v5 = vsel %vm5694_vm3, %v5780_v33, 0.0  ;;  %v5949_v32 = vrot.slane %v5633_v17, %v8414_v10  ;;  %v5953_v36 = vrot.slane %v5633_v17, %v8411_v43 }
0x19a3   : > { %v5793_v8 = vadd.f32 %v5792_v42, %v5791_v39  ;;  %v5957_v37 = vrot.slane %v5633_v17, %v8417_v44  ;;  %v5855_v38 = vcombine.low %v5826_v18, %v5830_v19  ;;  %v5856_v39 = vcombine.low %v5834_v21, %v5838_v22 }
0x19a4   : > { %v5857_v40 = vcombine.low %v5842_v24, %v5846_v51  ;;  %v5858_v42 = vcombine.low %v5850_v20, %v5854_v25  ;;  %v5958_v29 = vcombine.low %v5929_v26, %v5933_v28 }
0x19a5   : > { %v5795_v0 = vadd.f32 %v5794_v62, %v5793_v8  ;;  %v5959_v62 = vcombine.low %v5937_v30, %v5941_v54  ;;  %v5961_v47 = vcombine.low %v5953_v36, %v5957_v37  ;;  %v5865_v50 = vrot.slane %v5855_v38, %v8448_v53 }
0x19a6   : > { %v5872_v41 = vrot.slane %v5856_v39, %v8448_v53  ;;  %v5879_v10 = vrot.slane %v5857_v40, %v8448_v53  ;;  %v5886_v43 = vrot.slane %v5858_v42, %v8448_v53  ;;  %v5968_v44 = vrot.slane %v5958_v29, %v8448_v53 }
0x19a7   : > { %v5797_v2 = vadd.f32 %v5796_v1, %v5795_v0  ;;  %v5960_v0 = vcombine.low %v5945_v63, %v5949_v32  ;;  %v5975_v1 = vrot.slane %v5959_v62, %v8448_v53  ;;  %v5989_v33 = vrot.slane %v5961_v47, %v8448_v53 }
0x19a9   : > { %v5799_v3 = vadd.f32 %v5798_v35, %v5797_v2  ;;  %v5982_v2 = vrot.slane %v5960_v0, %v8448_v53  ;;  %v5887_v35 = vcombine.low %v5865_v50, %v5872_v41 }
0x19ab   : > { %v5801_v34 = vadd.f32 %v5800_v31, %v5799_v3  ;;  %v5888_v3 = vcombine.high %v5865_v50, %v5872_v41  ;;  %v5889_v31 = vcombine.low %v5879_v10, %v5886_v43  ;;  %v5992_v55 = vcombine.low %v5982_v2, %v5989_v33 }
0x19ac   : > { %v5993_v57 = vcombine.high %v5982_v2, %v5989_v33  ;;  %v5897_v7 = vrot.slane %v5887_v35, %v8448_v53 }
0x19ad   : > { %v5803_v6 = vadd.f32 %v5802_v5, %v5801_v34  ;;  %v5890_v34 = vcombine.high %v5879_v10, %v5886_v43  ;;  %v5990_v5 = vcombine.low %v5968_v44, %v5975_v1  ;;  %v5904_v52 = vrot.slane %v5888_v3, %v8448_v53 }
0x19ae   : > { %v5911_v58 = vrot.slane %v5889_v31, %v8448_v53  ;;  %v6014_v11 = vrot.slane %v5992_v55, %v8448_v53  ;;  %v6021_v12 = vrot.slane %v5993_v57, %v8448_v53 }
0x19af   : > { %5804 = vadd.xlane.f32.xlu1 %v5803_v6  ;;  %v5991_v6 = vcombine.high %v5968_v44, %v5975_v1  ;;  %v5918_v59 = vrot.slane %v5890_v34, %v8448_v53  ;;  %v6000_v46 = vrot.slane %v5990_v5, %v8448_v53 }
0x19b0   : > { %v5919_v15 = vcombine.low %v5897_v7, %v5911_v58 }
0x19b1   : > { %v6007_v9 = vrot.slane %v5991_v6, %v8448_v53  ;;  %v5920_v16 = vcombine.low %v5904_v52, %v5918_v59  ;;  %v6022_v19 = vcombine.low %v6000_v46, %v6014_v11 }
0x19b3   : > { %v6023_v21 = vcombine.low %v6007_v9, %v6021_v12 }
0x1a3c   : > { %v5805_v4 = vpop.xlane.xlu1 %5804 }
0x1a3d   : > { %v5806_v8 = vmul.f32 0.0009765625, %v5805_v4 }
0x1a3f   : > { %v5807_v56 = vadd.f32 1e-05, %v5806_v8 }
0x1a41   : > { %7382 = vrsqrt.f32 %v5807_v56 }
0x1a4b   : > { %v7383_v13 = vpop.eup %7382 }
0x1a4c   : > { %v5813_v61 = vrot.slane %v7383_v13, %v8361_v45  ;;  %v5817_v60 = vrot.slane %v7383_v13, %v8374_v48 }
0x1a4e   : > { %v5820_v17 = vmul.f32 %v5813_v61, %v8466_v23  ;;  %v5821_v18 = vmul.f32 %v5817_v60, %v8468_v49 }
0x1a50   : > { %v5923_v22 = vmul.f32 %v5919_v15, %v5820_v17  ;;  %v5924_v24 = vmul.f32 %v5920_v16, %v5821_v18 }
0x1a52   : > { %v6026_v51 = vadd.f32 %v6022_v19, %v5923_v22  ;;  %v6027_v20 = vadd.f32 %v6023_v21, %v5924_v24 }
0x1a54   : > { %v6039_v25 = vcombine.low %v6026_v51, %v6027_v20  ;;  %v6040_v26 = vcombine.high %v6026_v51, %v6027_v20 }
0x1a56   : > { %v6047_v28 = vrot.slane %v6039_v25, %v8448_v53  ;;  %v6054_v45 = vrot.slane %v6040_v26, %v8448_v53 }
0x1a58   : > { %v6055_v30 = vcombine.high %v6047_v28, %v6047_v28  ;;  %v6056_v48 = vcombine.high %v6054_v45, %v6054_v45  ;;  %v6063_v49 = vrot.slane %v6047_v28, %v8448_v53  ;;  %v6070_v63 = vrot.slane %v6054_v45, %v8448_v53 }
0x1a5a   : > { %v6077_v54 = vrot.slane %v6055_v30, %v8448_v53  ;;  %v6084_v23 = vrot.slane %v6056_v48, %v8448_v53  ;;  %v6085_v37 = vcombine.high %v6063_v49, %v6063_v49  ;;  %v6086_v4 = vcombine.high %v6070_v63, %v6070_v63  ;;  %v6734_v53 = vld [vmem:[%s8607_s18] ss:$0 sm:$0xff] }
0x1a5c   : > { %v6087_v32 = vcombine.high %v6077_v54, %v6077_v54  ;;  %6205 = vmatprep.mubr.f32.mxu1 %v6077_v54  ;;  %v6088_v36 = vcombine.high %v6084_v23, %v6084_v23  ;;  %6345 = vmatprep.mubr.f32.mxu0 %v6084_v23 }
0x1a5d   : > { %6206 = vmatmul.mubr.f32.vlgmr.msra.gmra.mrb[0].mxu1 %v6063_v49  ;;  %6346 = vmatmul.mubr.f32.vlgmr.msra.gmra.mrb[0].mxu0 %v6070_v63 }
0x1a5e   : > { %6212 = vmatpush1.xpose.msra.mxu1 %v8495_v27  ;;  %6275 = vmatprep.mubr.f32.mxu1 %v6087_v32 }
0x1a5f   : > { %6415 = vmatprep.mubr.f32.mxu0 %v6088_v36  ;;  %6352 = vmatpush1.xpose.msra.mxu0 %v8499_v14 }
0x1a65   : > { %6276 = vmatmul.mubr.f32.vlgmr.msra.gmra.mrb[0].mxu1 %v6085_v37  ;;  %6416 = vmatmul.mubr.f32.vlgmr.msra.gmra.mrb[0].mxu0 %v6086_v4 }
0x1b38   : > { %v6277_v38 = vpop.f32.mrb[0].mxu1  ;;  %v6417_v39 = vpop.f32.mrb[0].mxu0 }
0x1b39   : > { %v7153_v40 = vadd.f32 %v6734_v53, %v6277_v38  ;;  %v6279_v42 = vpop.f32.mrb[1].mxu1  ;;  %v6419_v8 = vpop.f32.mrb[1].mxu0 }
0x1b3b   : > { %v7154_v29 = vadd.f32 %v7153_v40, %v6417_v39 }
0x1b3d   : > { %6422 = vst.msk [vmem:[#allocation5] sm:$0x3] %vm6421_vm4, %v7154_v29 }
0x1b3e PF: > { %p7163_p12 = scmp.eq.s32.totalorder %s7568_s21, 1  ;;  %s7451_s27 = smov [#allocation5]  }
0x1b3f   : > { %s6430_s30 = sshll.u32 %s7451_s27, 4  ;;  %s6431_s30 = int_to_ptr.vmem [resolvable:$true] %s6430_s30 }
0x1b40   : > { %s7384_s1 = scalar_lea.vmem %s6431_s30, 32  ;;  %p7391_p2 = scmp.lt.s32.totalorder %s6431_s30, %s6431_s30 }
0x1b41   : > { %p7385_p13 = scmp.ne.s32.totalorder %s6431_s30, %s7384_s1  ;;  %p7392_p3 = scmp.lt.s32.totalorder %s7384_s1, %s7384_s1 }
0x1b43   : > { %p7386_p0 = pnand %p7385_p13, %p7163_p12  ;;  %p7393_p4 = por %p7392_p3, %p7391_p2 }
0x1b45   : > { %p7387_p1 = pneg %p7386_p0 }
0x1b47   : > { %p7394_p5 = pnand %p7393_p4, %p7387_p1 }
0x1b49   : > { %7397 = shalt.err (!%p7394_p5)
}
0x1b4a   : > { %s8629_s22 = sld [smem:[#allocation16_spill]] }
0x1b50   : > { %s7398_s25 = scalar_lea.hbm %s8629_s22, 32 }
0x1b51   : > { %p7399_p6 = scmp.ne.s32.totalorder %s8629_s22, %s7398_s25  ;;  %p7404_p9 = scmp.lt.u32.totalorder %s7398_s25, %s8629_s22 }
0x1b53   : > { %p7400_p7 = pnand %p7399_p6, %p7163_p12 }
0x1b55   : > { %p7401_p8 = pneg %p7400_p7 }
0x1b57   : > { %p7406_p10 = pnand %p7404_p9, %p7401_p8 }
0x1b59   : > { %7409 = shalt.err (!%p7406_p10)
}
0x1b5a   : > { %7160 = dma.vmem_to_hbm [thread:$0]  (%p7163_p12), %s6431_s30, 32, %s8629_s22, [#allocation6]  }
0x1b5b   : > { %7423 = dma.done.wait (%p7163_p12), [#allocation6], 32  }
0x1b5c   : > { %7425 = vsyncadd (%p7163_p12), [#allocation6], 4294967264 }
0x1b5d PF: > { %s8630_s20 = sld [smem:[#allocation9_spill]]  ;;  %s8631_s0 = sld [smem:[#allocation8_spill]] }
0x1b5e   : > { %s8632_s30 = sld [smem:[#allocation10_spill]] }
0x1b63   : > { %p27_p11 = scmp.ge.s32.totalorder %s8630_s20, 4  }
0x1b65   :  { %29 = sbr.rel (!%p27_p11) target bundleno = 9 (0x9), region = 165 }
0x1b6c   :  { %6443 = vsyncpa [#allocation6], 1 }
0x1b6d   :  { %6445 = vsyncpa [#allocation6 + $0x1], 1 }

</bundles_post_ra>
